<compile_context>
chip_gen: v6e
topology: v6e:2x2x1
jax: 0.10.0
libtpu: 0.0.40
codegen_flags: <defaults>
</compile_context>

<pallas_src>
import functools

import jax
import jax.numpy as jnp
from jax.experimental import pallas as pl
from jax.experimental.pallas import tpu as pltpu


_VMEM_LIMIT = 32 * 1024 * 1024    # scoped-VMEM limit: safe on v5e/v6e/v7x
_VMEM_BUDGET = 24 * 1024 * 1024   # tile-sizing budget (leave pipeline headroom)


def _round_up(x, m):
    return (x + m - 1) // m * m


def _pick_tile_m(m, k, cout, max_tile=512):
    """Largest multiple-of-8 row tile <= max_tile whose double-buffered working
    set (bf16 A tiles + f32 out tiles + resident bf16 B) fits the VMEM budget."""
    tm = min(_round_up(m, 8), _round_up(max_tile, 8))

    def working_set(t):
        return 2 * t * k * 2 + 2 * t * cout * 4 + k * cout * 2

    while tm > 8 and working_set(tm) > _VMEM_BUDGET:
        tm -= 8
    return tm


# ----------------------------------------------------------------------------
# Pallas kernels
# ----------------------------------------------------------------------------
def matmul_act_kernel(a_ref, b_ref, o_ref, *, act):
    """One (TILE_M, K) x (K, Cout) matmul tile + fused activation (f32 acc)."""
    acc = jnp.dot(a_ref[...], b_ref[...], preferred_element_type=jnp.float32)
    if act == "leaky":
        acc = jnp.where(acc > 0, acc, 0.2 * acc)
    elif act == "sigmoid":
        acc = 1.0 / (1.0 + jnp.exp(-acc))
    o_ref[...] = acc.astype(o_ref.dtype)


def matmul_stats_kernel(a_ref, b_ref, o_ref, stats_ref):
    """Conv matmul tile with fused per-tile BatchNorm statistics.

    stats_ref block is (1, 2, Cout): row 0 = per-channel sum, row 1 = sum of
    squares of the raw (pre-BN) conv output for this M-tile. Zero-padded rows
    contribute exactly zero, so the wrapper can divide by the true row count."""
    acc = jnp.dot(a_ref[...], b_ref[...], preferred_element_type=jnp.float32)
    ssum = jnp.sum(acc, axis=0, keepdims=True)
    ssq = jnp.sum(acc * acc, axis=0, keepdims=True)
    stats_ref[...] = jnp.concatenate([ssum, ssq], axis=0)[None, :, :]
    o_ref[...] = acc.astype(o_ref.dtype)


def affine_lrelu_kernel(x_ref, scale_ref, shift_ref, o_ref):
    """y = leaky_relu(x * scale + shift); BatchNorm normalize folded into
    per-channel scale/shift computed from the fused conv-epilogue stats."""
    y = x_ref[...] * scale_ref[...] + shift_ref[...]
    o_ref[...] = jnp.where(y > 0, y, 0.2 * y).astype(o_ref.dtype)


# ----------------------------------------------------------------------------
# Wrappers
# ----------------------------------------------------------------------------
def _im2col(x, kh, kw, stride, pad):
    """x: (N, H, W, C) -> (N, Ho, Wo, kh*kw*C) with (i, j, c), c fastest."""
    n, h, w, c = x.shape
    xp = jnp.pad(x, ((0, 0), (pad, pad), (pad, pad), (0, 0)))
    ho = (h + 2 * pad - kh) // stride + 1
    wo = (w + 2 * pad - kw) // stride + 1
    cols = []
    for i in range(kh):
        for j in range(kw):
            cols.append(xp[:, i:i + stride * ho:stride, j:j + stride * wo:stride, :])
    return jnp.concatenate(cols, axis=-1), ho, wo


def conv2d_pallas(x, w_kc, kh, kw, stride, pad, act="none",
                  collect_stats=False, max_tile=512):
    """x: (N, H, W, Cin) NHWC; w_kc: (kh*kw*Cin, Cout) bf16 (precomputed layout)."""
    n = x.shape[0]
    cols, ho, wo = _im2col(x, kh, kw, stride, pad)
    k, cout = w_kc.shape
    m = n * ho * wo
    a = cols.reshape(m, k).astype(jnp.bfloat16)

    tm = _pick_tile_m(m, k, cout, max_tile)
    m_pad = _round_up(m, tm)
    if m_pad != m:
        a = jnp.pad(a, ((0, m_pad - m), (0, 0)))   # zero rows: inert for stats
    grid = (m_pad // tm,)

    in_specs = [
        pl.BlockSpec((tm, k), lambda i: (i, 0)),    # A tile, pipelined over M
        pl.BlockSpec((k, cout), lambda i: (0, 0)),  # B resident across the grid
    ]
    out_spec = pl.BlockSpec((tm, cout), lambda i: (i, 0))
    cparams = pltpu.CompilerParams(
        dimension_semantics=("parallel",),
        vmem_limit_bytes=_VMEM_LIMIT,
    )

    if collect_stats:
        y, part = pl.pallas_call(
            matmul_stats_kernel,
            out_shape=(jax.ShapeDtypeStruct((m_pad, cout), jnp.float32),
                       jax.ShapeDtypeStruct((grid[0], 2, cout), jnp.float32)),
            grid=grid,
            in_specs=in_specs,
            out_specs=(out_spec,
                       pl.BlockSpec((1, 2, cout), lambda i: (i, 0, 0))),
            compiler_params=cparams,
        )(a, w_kc)
        stats = jnp.sum(part, axis=0)               # (2, Cout): [sum, sumsq]
        return y[:m].reshape(n, ho, wo, cout), stats

    y = pl.pallas_call(
        functools.partial(matmul_act_kernel, act=act),
        out_shape=jax.ShapeDtypeStruct((m_pad, cout), jnp.float32),
        grid=grid,
        in_specs=in_specs,
        out_specs=out_spec,
        compiler_params=cparams,
    )(a, w_kc)
    return y[:m].reshape(n, ho, wo, cout)


def _bn_fold(stats, count, gamma, beta, eps=1e-5):
    """Training-mode (biased-variance) BatchNorm folded to per-channel scale/shift."""
    mean = stats[0] / count
    var = jnp.maximum(stats[1] / count - mean * mean, 0.0)
    scale = gamma * jax.lax.rsqrt(var + eps)
    shift = beta - mean * scale
    return scale, shift


def batchnorm_lrelu_pallas(x, scale, shift, max_tile=512):
    """Apply y = leaky_relu(x*scale + shift) over the (N*H*W, C) slab, M-tiled."""
    n, h, w, c = x.shape
    m = n * h * w
    xf = x.reshape(m, c)
    tm = min(_round_up(m, 8), _round_up(max_tile, 8))
    m_pad = _round_up(m, tm)
    if m_pad != m:
        xf = jnp.pad(xf, ((0, m_pad - m), (0, 0)))
    out = pl.pallas_call(
        affine_lrelu_kernel,
        out_shape=jax.ShapeDtypeStruct((m_pad, c), jnp.float32),
        grid=(m_pad // tm,),
        in_specs=[
            pl.BlockSpec((tm, c), lambda i: (i, 0)),
            pl.BlockSpec((1, c), lambda i: (0, 0)),
            pl.BlockSpec((1, c), lambda i: (0, 0)),
        ],
        out_specs=pl.BlockSpec((tm, c), lambda i: (i, 0)),
        compiler_params=pltpu.CompilerParams(
            dimension_semantics=("parallel",),
            vmem_limit_bytes=_VMEM_LIMIT),
    )(xf, scale.reshape(1, c).astype(jnp.float32),
      shift.reshape(1, c).astype(jnp.float32))
    return out[:m].reshape(n, h, w, c)


# ----------------------------------------------------------------------------
# Discriminator parameters / forward
# ----------------------------------------------------------------------------
def make_params(key, channels, n_classes, ndf):
    """DCGAN-style init: conv weights ~ N(0, 0.02), BN gamma=1, beta=0.
    Weights are stored pre-reshaped to (KH*KW*Cin, Cout) bf16 (matmul layout)."""
    std = 0.02
    ks = jax.random.split(key, 5)

    def cw(k, cout, cin, kh=4, kw=4):
        return std * jax.random.normal(k, (cout, cin, kh, kw), jnp.float32)

    w_img = cw(ks[0], 7 * ndf // 8, channels)
    w_lbl = cw(ks[1], ndf // 8, n_classes)
    w1 = cw(ks[2], ndf * 2, ndf)
    w2 = cw(ks[3], ndf * 4, ndf * 2)
    w3 = cw(ks[4], 1, ndf * 4)

    def to_kc(w):  # (Cout, Cin, KH, KW) -> (KH*KW*Cin, Cout), matches im2col order
        co, ci, kh, kw = w.shape
        return (jnp.transpose(w, (2, 3, 1, 0))
                   .reshape(kh * kw * ci, co).astype(jnp.bfloat16))

    # Merge img_conv + label_conv into one block-diagonal conv over the
    # channel-concatenated input; LeakyReLU is elementwise, so the per-branch
    # results equal running the two convs separately and concatenating.
    c_img, c_lbl = channels, n_classes
    co_img, co_lbl = 7 * ndf // 8, ndf // 8
    wm = jnp.zeros((4, 4, c_img + c_lbl, co_img + co_lbl), jnp.float32)
    wm = wm.at[:, :, :c_img, :co_img].set(jnp.transpose(w_img, (2, 3, 1, 0)))
    wm = wm.at[:, :, c_img:, co_img:].set(jnp.transpose(w_lbl, (2, 3, 1, 0)))
    w0 = wm.reshape(4 * 4 * (c_img + c_lbl), co_img + co_lbl).astype(jnp.bfloat16)

    return {
        "w0": w0,
        "w1": to_kc(w1),
        "bn1_gamma": jnp.ones((ndf * 2,), jnp.float32),
        "bn1_beta": jnp.zeros((ndf * 2,), jnp.float32),
        "w2": to_kc(w2),
        "bn2_gamma": jnp.ones((ndf * 4,), jnp.float32),
        "bn2_beta": jnp.zeros((ndf * 4,), jnp.float32),
        "w3": to_kc(w3),
    }


@jax.jit
def discriminator_forward(params, images_nchw, labels_nchw):
    # NCHW -> NHWC; torch.cat([x, y], dim=1) == channel concat (last axis NHWC)
    x = jnp.concatenate([
        jnp.transpose(images_nchw, (0, 2, 3, 1)),
        jnp.transpose(labels_nchw, (0, 2, 3, 1)),
    ], axis=-1)

    # leaky_relu(img_conv(input)) ++ leaky_relu(label_conv(labels)):
    # one merged block-diagonal conv, activation fused into the matmul epilogue.
    h = conv2d_pallas(x, params["w0"], 4, 4, stride=2, pad=1, act="leaky")

    # conv -> BatchNorm (train-mode batch stats, reduction fused into the conv
    # epilogue) -> LeakyReLU(0.2)
    h, stats = conv2d_pallas(h, params["w1"], 4, 4, stride=2, pad=1,
                             collect_stats=True)
    count = h.shape[0] * h.shape[1] * h.shape[2]
    scale, shift = _bn_fold(stats, count, params["bn1_gamma"], params["bn1_beta"])
    h = batchnorm_lrelu_pallas(h, scale, shift)

    h, stats = conv2d_pallas(h, params["w2"], 4, 4, stride=2, pad=1,
                             collect_stats=True)
    count = h.shape[0] * h.shape[1] * h.shape[2]
    scale, shift = _bn_fold(stats, count, params["bn2_gamma"], params["bn2_beta"])
    h = batchnorm_lrelu_pallas(h, scale, shift)

    # final conv -> sigmoid; output.view(-1, 1).squeeze(1) -> (N,)
    h = conv2d_pallas(h, params["w3"], 4, 4, stride=1, pad=0, act="sigmoid")
    return h.reshape(-1)


# ----------------------------------------------------------------------------
if __name__ == "__main__":
    # Small, DCGAN-consistent shapes: 32x32 images, 3 channels, 10 classes,
    # ndf=16, batch=4 (exercises a multi-step M grid on the first layer).
    batch, channels, n_classes, ndf, img_size = 4, 3, 10, 16, 32

    key = jax.random.PRNGKey(0)
    k_params, k_img, k_lbl = jax.random.split(key, 3)

    params = make_params(k_params, channels, n_classes, ndf)
    images = jax.random.normal(k_img, (batch, channels, img_size, img_size),
                               jnp.float32)
    labels = jax.random.normal(k_lbl, (batch, n_classes, img_size, img_size),
                               jnp.float32)

    out = discriminator_forward(params, images, labels)
    out = jax.block_until_ready(out)

    assert out.shape == (batch,), out.shape
    assert bool(jnp.all(jnp.isfinite(out)))
    assert bool(jnp.all((out >= 0.0) & (out <= 1.0)))
    print("KERNEL_OK")
</pallas_src>

<mosaic_0001>
module attributes {stable_mosaic.version = 11 : i64} {
  func.func @matmul_act_kernel(%arg0: i32, %arg1: memref<512x208xbf16, #tpu.memory_space<vmem>>, %arg2: memref<208x16xbf16, #tpu.memory_space<vmem>>, %arg3: memref<512x16xf32, #tpu.memory_space<vmem>>) attributes {dimension_semantics = [#tpu.dimension_semantics<parallel>], iteration_bounds = array<i64: 2>, scalar_prefetch = 0 : i64, scratch_operands = 0 : i64, tpu.core_type = #tpu.core_type<tc>, window_params = [{transform_indices = @transform_0, window_bounds = array<i64: 512, 208>}, {pipeline_mode = #tpu.pipeline_mode<synchronous>, transform_indices = @transform_1, window_bounds = array<i64: 208, 16>}, {transform_indices = @transform_2, window_bounds = array<i64: 512, 16>}]} {
    %c0 = arith.constant 0 : index
    %c0_0 = arith.constant 0 : index
    %0 = vector.load %arg1[%c0, %c0_0] : memref<512x208xbf16, #tpu.memory_space<vmem>>, vector<512x208xbf16>
    %c0_1 = arith.constant 0 : index
    %c0_2 = arith.constant 0 : index
    %1 = vector.load %arg2[%c0_1, %c0_2] : memref<208x16xbf16, #tpu.memory_space<vmem>>, vector<208x16xbf16>
    %cst = arith.constant dense<0.000000e+00> : vector<512x16xf32>
    %2 = tpu.matmul %0, %1, %cst {dimension_numbers = #tpu.dot_dimension_numbers<[1], [0], [0], [1], [0, 0, 1, 1], [], []>} : vector<512x208xbf16>, vector<208x16xbf16>, vector<512x16xf32> -> vector<512x16xf32>
    %cst_3 = arith.constant 0.000000e+00 : f32
    %3 = vector.broadcast %cst_3 : f32 to vector<512x16xf32>
    %4 = arith.cmpf ogt, %2, %3 : vector<512x16xf32>
    %cst_4 = arith.constant 2.000000e-01 : f32
    %5 = vector.broadcast %cst_4 : f32 to vector<512x16xf32>
    %6 = arith.mulf %5, %2 : vector<512x16xf32>
    %7 = arith.select %4, %2, %6 : vector<512x16xi1>, vector<512x16xf32>
    %c0_5 = arith.constant 0 : index
    %c0_6 = arith.constant 0 : index
    %8 = vector.load %arg3[%c0_5, %c0_6] : memref<512x16xf32, #tpu.memory_space<vmem>>, vector<512x16xf32>
    tpu.vector_store %arg3[%c0_5, %c0_6], %7 {strides = array<i32>} : memref<512x16xf32, #tpu.memory_space<vmem>>, vector<512x16xf32>,
    return
  }
  func.func @transform_0(%arg0: i32) -> (i32, i32) {
    %c0_i32 = arith.constant 0 : i32
    %c0_i32_0 = arith.constant 0 : i32
    return %arg0, %c0_i32 : i32, i32
  }
  func.func @transform_1(%arg0: i32) -> (i32, i32) {
    %c0_i32 = arith.constant 0 : i32
    %c0_i32_0 = arith.constant 0 : i32
    %c0_i32_1 = arith.constant 0 : i32
    return %c0_i32, %c0_i32_0 : i32, i32
  }
  func.func @transform_2(%arg0: i32) -> (i32, i32) {
    %c0_i32 = arith.constant 0 : i32
    %c0_i32_0 = arith.constant 0 : i32
    return %arg0, %c0_i32 : i32, i32
  }
}

module attributes {stable_mosaic.version = 11 : i64} {
  func.func @affine_lrelu_kernel(%arg0: i32, %arg1: memref<256x32xf32, #tpu.memory_space<vmem>>, %arg2: memref<1x32xf32, #tpu.memory_space<vmem>>, %arg3: memref<1x32xf32, #tpu.memory_space<vmem>>, %arg4: memref<256x32xf32, #tpu.memory_space<vmem>>) attributes {dimension_semantics = [#tpu.dimension_semantics<parallel>], iteration_bounds = array<i64: 1>, scalar_prefetch = 0 : i64, scratch_operands = 0 : i64, tpu.core_type = #tpu.core_type<tc>, window_params = [{transform_indices = @transform_0, window_bounds = array<i64: 256, 32>}, {pipeline_mode = #tpu.pipeline_mode<synchronous>, transform_indices = @transform_1, window_bounds = array<i64: 1, 32>}, {pipeline_mode = #tpu.pipeline_mode<synchronous>, transform_indices = @transform_2, window_bounds = array<i64: 1, 32>}, {transform_indices = @transform_3, window_bounds = array<i64: 256, 32>}]} {
    %c0 = arith.constant 0 : index
    %c0_0 = arith.constant 0 : index
    %0 = vector.load %arg1[%c0, %c0_0] : memref<256x32xf32, #tpu.memory_space<vmem>>, vector<256x32xf32>
    %c0_1 = arith.constant 0 : index
    %c0_2 = arith.constant 0 : index
    %1 = vector.load %arg2[%c0_1, %c0_2] : memref<1x32xf32, #tpu.memory_space<vmem>>, vector<1x32xf32>
    %2 = vector.broadcast %1 : vector<1x32xf32> to vector<256x32xf32>
    %3 = arith.mulf %0, %2 : vector<256x32xf32>
    %c0_3 = arith.constant 0 : index
    %c0_4 = arith.constant 0 : index
    %4 = vector.load %arg3[%c0_3, %c0_4] : memref<1x32xf32, #tpu.memory_space<vmem>>, vector<1x32xf32>
    %5 = vector.broadcast %4 : vector<1x32xf32> to vector<256x32xf32>
    %6 = arith.addf %3, %5 : vector<256x32xf32>
    %cst = arith.constant 0.000000e+00 : f32
    %7 = vector.broadcast %cst : f32 to vector<256x32xf32>
    %8 = arith.cmpf ogt, %6, %7 : vector<256x32xf32>
    %cst_5 = arith.constant 2.000000e-01 : f32
    %9 = vector.broadcast %cst_5 : f32 to vector<256x32xf32>
    %10 = arith.mulf %9, %6 : vector<256x32xf32>
    %11 = arith.select %8, %6, %10 : vector<256x32xi1>, vector<256x32xf32>
    %c0_6 = arith.constant 0 : index
    %c0_7 = arith.constant 0 : index
    %12 = vector.load %arg4[%c0_6, %c0_7] : memref<256x32xf32, #tpu.memory_space<vmem>>, vector<256x32xf32>
    tpu.vector_store %arg4[%c0_6, %c0_7], %11 {strides = array<i32>} : memref<256x32xf32, #tpu.memory_space<vmem>>, vector<256x32xf32>,
    return
  }
  func.func @transform_0(%arg0: i32) -> (i32, i32) {
    %c0_i32 = arith.constant 0 : i32
    %c0_i32_0 = arith.constant 0 : i32
    return %arg0, %c0_i32 : i32, i32
  }
  func.func @transform_1(%arg0: i32) -> (i32, i32) {
    %c0_i32 = arith.constant 0 : i32
    %c0_i32_0 = arith.constant 0 : i32
    %c0_i32_1 = arith.constant 0 : i32
    return %c0_i32, %c0_i32_0 : i32, i32
  }
  func.func @transform_2(%arg0: i32) -> (i32, i32) {
    %c0_i32 = arith.constant 0 : i32
    %c0_i32_0 = arith.constant 0 : i32
    %c0_i32_1 = arith.constant 0 : i32
    return %c0_i32, %c0_i32_0 : i32, i32
  }
  func.func @transform_3(%arg0: i32) -> (i32, i32) {
    %c0_i32 = arith.constant 0 : i32
    %c0_i32_0 = arith.constant 0 : i32
    return %arg0, %c0_i32 : i32, i32
  }
}

module attributes {stable_mosaic.version = 11 : i64} {
  func.func @matmul_stats_kernel(%arg0: i32, %arg1: memref<256x256xbf16, #tpu.memory_space<vmem>>, %arg2: memref<256x32xbf16, #tpu.memory_space<vmem>>, %arg3: memref<256x32xf32, #tpu.memory_space<vmem>>, %arg4: memref<1x2x32xf32, #tpu.memory_space<vmem>>) attributes {dimension_semantics = [#tpu.dimension_semantics<parallel>], iteration_bounds = array<i64: 1>, scalar_prefetch = 0 : i64, scratch_operands = 0 : i64, tpu.core_type = #tpu.core_type<tc>, window_params = [{transform_indices = @transform_0, window_bounds = array<i64: 256, 256>}, {pipeline_mode = #tpu.pipeline_mode<synchronous>, transform_indices = @transform_1, window_bounds = array<i64: 256, 32>}, {transform_indices = @transform_2, window_bounds = array<i64: 256, 32>}, {transform_indices = @transform_3, window_bounds = array<i64: 1, 2, 32>}]} {
    %c0 = arith.constant 0 : index
    %c0_0 = arith.constant 0 : index
    %0 = vector.load %arg1[%c0, %c0_0] : memref<256x256xbf16, #tpu.memory_space<vmem>>, vector<256x256xbf16>
    %c0_1 = arith.constant 0 : index
    %c0_2 = arith.constant 0 : index
    %1 = vector.load %arg2[%c0_1, %c0_2] : memref<256x32xbf16, #tpu.memory_space<vmem>>, vector<256x32xbf16>
    %cst = arith.constant dense<0.000000e+00> : vector<256x32xf32>
    %2 = tpu.matmul %0, %1, %cst {dimension_numbers = #tpu.dot_dimension_numbers<[1], [0], [0], [1], [0, 0, 1, 1], [], []>} : vector<256x256xbf16>, vector<256x32xbf16>, vector<256x32xf32> -> vector<256x32xf32>
    %cst_3 = arith.constant dense<0.000000e+00> : vector<32xf32>
    %3 = vector.multi_reduction <add>, %2, %cst_3 [0] : vector<256x32xf32> to vector<32xf32>
    %4 = vector.shape_cast %3 : vector<32xf32> to vector<1x32xf32>
    %5 = arith.mulf %2, %2 : vector<256x32xf32>
    %cst_4 = arith.constant dense<0.000000e+00> : vector<32xf32>
    %6 = vector.multi_reduction <add>, %5, %cst_4 [0] : vector<256x32xf32> to vector<32xf32>
    %7 = vector.shape_cast %6 : vector<32xf32> to vector<1x32xf32>
    %8 = tpu.concatenate %4, %7 in 0 : vector<1x32xf32>, vector<1x32xf32> -> vector<2x32xf32>
    %9 = vector.shape_cast %8 : vector<2x32xf32> to vector<1x2x32xf32>
    %c0_5 = arith.constant 0 : index
    %c0_6 = arith.constant 0 : index
    %c0_7 = arith.constant 0 : index
    %10 = vector.load %arg4[%c0_5, %c0_6, %c0_7] : memref<1x2x32xf32, #tpu.memory_space<vmem>>, vector<1x2x32xf32>
    tpu.vector_store %arg4[%c0_5, %c0_6, %c0_7], %9 {strides = array<i32>} : memref<1x2x32xf32, #tpu.memory_space<vmem>>, vector<1x2x32xf32>,
    %c0_8 = arith.constant 0 : index
    %c0_9 = arith.constant 0 : index
    %11 = vector.load %arg3[%c0_8, %c0_9] : memref<256x32xf32, #tpu.memory_space<vmem>>, vector<256x32xf32>
    tpu.vector_store %arg3[%c0_8, %c0_9], %2 {strides = array<i32>} : memref<256x32xf32, #tpu.memory_space<vmem>>, vector<256x32xf32>,
    return
  }
  func.func @transform_0(%arg0: i32) -> (i32, i32) {
    %c0_i32 = arith.constant 0 : i32
    %c0_i32_0 = arith.constant 0 : i32
    return %arg0, %c0_i32 : i32, i32
  }
  func.func @transform_1(%arg0: i32) -> (i32, i32) {
    %c0_i32 = arith.constant 0 : i32
    %c0_i32_0 = arith.constant 0 : i32
    %c0_i32_1 = arith.constant 0 : i32
    return %c0_i32, %c0_i32_0 : i32, i32
  }
  func.func @transform_2(%arg0: i32) -> (i32, i32) {
    %c0_i32 = arith.constant 0 : i32
    %c0_i32_0 = arith.constant 0 : i32
    return %arg0, %c0_i32 : i32, i32
  }
  func.func @transform_3(%arg0: i32) -> (i32, i32, i32) {
    %c0_i32 = arith.constant 0 : i32
    %c0_i32_0 = arith.constant 0 : i32
    %c0_i32_1 = arith.constant 0 : i32
    return %arg0, %c0_i32, %c0_i32_0 : i32, i32, i32
  }
}

module attributes {stable_mosaic.version = 11 : i64} {
  func.func @matmul_stats_kernel(%arg0: i32, %arg1: memref<64x512xbf16, #tpu.memory_space<vmem>>, %arg2: memref<512x64xbf16, #tpu.memory_space<vmem>>, %arg3: memref<64x64xf32, #tpu.memory_space<vmem>>, %arg4: memref<1x2x64xf32, #tpu.memory_space<vmem>>) attributes {dimension_semantics = [#tpu.dimension_semantics<parallel>], iteration_bounds = array<i64: 1>, scalar_prefetch = 0 : i64, scratch_operands = 0 : i64, tpu.core_type = #tpu.core_type<tc>, window_params = [{transform_indices = @transform_0, window_bounds = array<i64: 64, 512>}, {pipeline_mode = #tpu.pipeline_mode<synchronous>, transform_indices = @transform_1, window_bounds = array<i64: 512, 64>}, {transform_indices = @transform_2, window_bounds = array<i64: 64, 64>}, {transform_indices = @transform_3, window_bounds = array<i64: 1, 2, 64>}]} {
    %c0 = arith.constant 0 : index
    %c0_0 = arith.constant 0 : index
    %0 = vector.load %arg1[%c0, %c0_0] : memref<64x512xbf16, #tpu.memory_space<vmem>>, vector<64x512xbf16>
    %c0_1 = arith.constant 0 : index
    %c0_2 = arith.constant 0 : index
    %1 = vector.load %arg2[%c0_1, %c0_2] : memref<512x64xbf16, #tpu.memory_space<vmem>>, vector<512x64xbf16>
    %cst = arith.constant dense<0.000000e+00> : vector<64x64xf32>
    %2 = tpu.matmul %0, %1, %cst {dimension_numbers = #tpu.dot_dimension_numbers<[1], [0], [0], [1], [0, 0, 1, 1], [], []>} : vector<64x512xbf16>, vector<512x64xbf16>, vector<64x64xf32> -> vector<64x64xf32>
    %cst_3 = arith.constant dense<0.000000e+00> : vector<64xf32>
    %3 = vector.multi_reduction <add>, %2, %cst_3 [0] : vector<64x64xf32> to vector<64xf32>
    %4 = vector.shape_cast %3 : vector<64xf32> to vector<1x64xf32>
    %5 = arith.mulf %2, %2 : vector<64x64xf32>
    %cst_4 = arith.constant dense<0.000000e+00> : vector<64xf32>
    %6 = vector.multi_reduction <add>, %5, %cst_4 [0] : vector<64x64xf32> to vector<64xf32>
    %7 = vector.shape_cast %6 : vector<64xf32> to vector<1x64xf32>
    %8 = tpu.concatenate %4, %7 in 0 : vector<1x64xf32>, vector<1x64xf32> -> vector<2x64xf32>
    %9 = vector.shape_cast %8 : vector<2x64xf32> to vector<1x2x64xf32>
    %c0_5 = arith.constant 0 : index
    %c0_6 = arith.constant 0 : index
    %c0_7 = arith.constant 0 : index
    %10 = vector.load %arg4[%c0_5, %c0_6, %c0_7] : memref<1x2x64xf32, #tpu.memory_space<vmem>>, vector<1x2x64xf32>
    tpu.vector_store %arg4[%c0_5, %c0_6, %c0_7], %9 {strides = array<i32>} : memref<1x2x64xf32, #tpu.memory_space<vmem>>, vector<1x2x64xf32>,
    %c0_8 = arith.constant 0 : index
    %c0_9 = arith.constant 0 : index
    %11 = vector.load %arg3[%c0_8, %c0_9] : memref<64x64xf32, #tpu.memory_space<vmem>>, vector<64x64xf32>
    tpu.vector_store %arg3[%c0_8, %c0_9], %2 {strides = array<i32>} : memref<64x64xf32, #tpu.memory_space<vmem>>, vector<64x64xf32>,
    return
  }
  func.func @transform_0(%arg0: i32) -> (i32, i32) {
    %c0_i32 = arith.constant 0 : i32
    %c0_i32_0 = arith.constant 0 : i32
    return %arg0, %c0_i32 : i32, i32
  }
  func.func @transform_1(%arg0: i32) -> (i32, i32) {
    %c0_i32 = arith.constant 0 : i32
    %c0_i32_0 = arith.constant 0 : i32
    %c0_i32_1 = arith.constant 0 : i32
    return %c0_i32, %c0_i32_0 : i32, i32
  }
  func.func @transform_2(%arg0: i32) -> (i32, i32) {
    %c0_i32 = arith.constant 0 : i32
    %c0_i32_0 = arith.constant 0 : i32
    return %arg0, %c0_i32 : i32, i32
  }
  func.func @transform_3(%arg0: i32) -> (i32, i32, i32) {
    %c0_i32 = arith.constant 0 : i32
    %c0_i32_0 = arith.constant 0 : i32
    %c0_i32_1 = arith.constant 0 : i32
    return %arg0, %c0_i32, %c0_i32_0 : i32, i32, i32
  }
}

module attributes {stable_mosaic.version = 11 : i64} {
  func.func @affine_lrelu_kernel(%arg0: i32, %arg1: memref<64x64xf32, #tpu.memory_space<vmem>>, %arg2: memref<1x64xf32, #tpu.memory_space<vmem>>, %arg3: memref<1x64xf32, #tpu.memory_space<vmem>>, %arg4: memref<64x64xf32, #tpu.memory_space<vmem>>) attributes {dimension_semantics = [#tpu.dimension_semantics<parallel>], iteration_bounds = array<i64: 1>, scalar_prefetch = 0 : i64, scratch_operands = 0 : i64, tpu.core_type = #tpu.core_type<tc>, window_params = [{transform_indices = @transform_0, window_bounds = array<i64: 64, 64>}, {pipeline_mode = #tpu.pipeline_mode<synchronous>, transform_indices = @transform_1, window_bounds = array<i64: 1, 64>}, {pipeline_mode = #tpu.pipeline_mode<synchronous>, transform_indices = @transform_2, window_bounds = array<i64: 1, 64>}, {transform_indices = @transform_3, window_bounds = array<i64: 64, 64>}]} {
    %c0 = arith.constant 0 : index
    %c0_0 = arith.constant 0 : index
    %0 = vector.load %arg1[%c0, %c0_0] : memref<64x64xf32, #tpu.memory_space<vmem>>, vector<64x64xf32>
    %c0_1 = arith.constant 0 : index
    %c0_2 = arith.constant 0 : index
    %1 = vector.load %arg2[%c0_1, %c0_2] : memref<1x64xf32, #tpu.memory_space<vmem>>, vector<1x64xf32>
    %2 = vector.broadcast %1 : vector<1x64xf32> to vector<64x64xf32>
    %3 = arith.mulf %0, %2 : vector<64x64xf32>
    %c0_3 = arith.constant 0 : index
    %c0_4 = arith.constant 0 : index
    %4 = vector.load %arg3[%c0_3, %c0_4] : memref<1x64xf32, #tpu.memory_space<vmem>>, vector<1x64xf32>
    %5 = vector.broadcast %4 : vector<1x64xf32> to vector<64x64xf32>
    %6 = arith.addf %3, %5 : vector<64x64xf32>
    %cst = arith.constant 0.000000e+00 : f32
    %7 = vector.broadcast %cst : f32 to vector<64x64xf32>
    %8 = arith.cmpf ogt, %6, %7 : vector<64x64xf32>
    %cst_5 = arith.constant 2.000000e-01 : f32
    %9 = vector.broadcast %cst_5 : f32 to vector<64x64xf32>
    %10 = arith.mulf %9, %6 : vector<64x64xf32>
    %11 = arith.select %8, %6, %10 : vector<64x64xi1>, vector<64x64xf32>
    %c0_6 = arith.constant 0 : index
    %c0_7 = arith.constant 0 : index
    %12 = vector.load %arg4[%c0_6, %c0_7] : memref<64x64xf32, #tpu.memory_space<vmem>>, vector<64x64xf32>
    tpu.vector_store %arg4[%c0_6, %c0_7], %11 {strides = array<i32>} : memref<64x64xf32, #tpu.memory_space<vmem>>, vector<64x64xf32>,
    return
  }
  func.func @transform_0(%arg0: i32) -> (i32, i32) {
    %c0_i32 = arith.constant 0 : i32
    %c0_i32_0 = arith.constant 0 : i32
    return %arg0, %c0_i32 : i32, i32
  }
  func.func @transform_1(%arg0: i32) -> (i32, i32) {
    %c0_i32 = arith.constant 0 : i32
    %c0_i32_0 = arith.constant 0 : i32
    %c0_i32_1 = arith.constant 0 : i32
    return %c0_i32, %c0_i32_0 : i32, i32
  }
  func.func @transform_2(%arg0: i32) -> (i32, i32) {
    %c0_i32 = arith.constant 0 : i32
    %c0_i32_0 = arith.constant 0 : i32
    %c0_i32_1 = arith.constant 0 : i32
    return %c0_i32, %c0_i32_0 : i32, i32
  }
  func.func @transform_3(%arg0: i32) -> (i32, i32) {
    %c0_i32 = arith.constant 0 : i32
    %c0_i32_0 = arith.constant 0 : i32
    return %arg0, %c0_i32 : i32, i32
  }
}

module attributes {stable_mosaic.version = 11 : i64} {
  func.func @matmul_act_kernel(%arg0: i32, %arg1: memref<8x1024xbf16, #tpu.memory_space<vmem>>, %arg2: memref<1024x1xbf16, #tpu.memory_space<vmem>>, %arg3: memref<8x1xf32, #tpu.memory_space<vmem>>) attributes {dimension_semantics = [#tpu.dimension_semantics<parallel>], iteration_bounds = array<i64: 1>, scalar_prefetch = 0 : i64, scratch_operands = 0 : i64, tpu.core_type = #tpu.core_type<tc>, window_params = [{transform_indices = @transform_0, window_bounds = array<i64: 8, 1024>}, {pipeline_mode = #tpu.pipeline_mode<synchronous>, transform_indices = @transform_1, window_bounds = array<i64: 1024, 1>}, {transform_indices = @transform_2, window_bounds = array<i64: 8, 1>}]} {
    %c0 = arith.constant 0 : index
    %c0_0 = arith.constant 0 : index
    %0 = vector.load %arg1[%c0, %c0_0] : memref<8x1024xbf16, #tpu.memory_space<vmem>>, vector<8x1024xbf16>
    %c0_1 = arith.constant 0 : index
    %c0_2 = arith.constant 0 : index
    %1 = vector.load %arg2[%c0_1, %c0_2] : memref<1024x1xbf16, #tpu.memory_space<vmem>>, vector<1024x1xbf16>
    %cst = arith.constant dense<0.000000e+00> : vector<8x1xf32>
    %2 = tpu.matmul %0, %1, %cst {dimension_numbers = #tpu.dot_dimension_numbers<[1], [0], [0], [1], [0, 0, 1, 1], [], []>} : vector<8x1024xbf16>, vector<1024x1xbf16>, vector<8x1xf32> -> vector<8x1xf32>
    %cst_3 = arith.constant 0.000000e+00 : f32
    %3 = vector.broadcast %cst_3 : f32 to vector<8x1xf32>
    %4 = arith.subf %3, %2 : vector<8x1xf32>
    %5 = math.exp %4 : vector<8x1xf32>
    %cst_4 = arith.constant 1.000000e+00 : f32
    %6 = vector.broadcast %cst_4 : f32 to vector<8x1xf32>
    %7 = arith.addf %6, %5 : vector<8x1xf32>
    %cst_5 = arith.constant 1.000000e+00 : f32
    %8 = vector.broadcast %cst_5 : f32 to vector<8x1xf32>
    %9 = arith.divf %8, %7 : vector<8x1xf32>
    %c0_6 = arith.constant 0 : index
    %c0_7 = arith.constant 0 : index
    %10 = vector.load %arg3[%c0_6, %c0_7] : memref<8x1xf32, #tpu.memory_space<vmem>>, vector<8x1xf32>
    tpu.vector_store %arg3[%c0_6, %c0_7], %9 {strides = array<i32>} : memref<8x1xf32, #tpu.memory_space<vmem>>, vector<8x1xf32>,
    return
  }
  func.func @transform_0(%arg0: i32) -> (i32, i32) {
    %c0_i32 = arith.constant 0 : i32
    %c0_i32_0 = arith.constant 0 : i32
    return %arg0, %c0_i32 : i32, i32
  }
  func.func @transform_1(%arg0: i32) -> (i32, i32) {
    %c0_i32 = arith.constant 0 : i32
    %c0_i32_0 = arith.constant 0 : i32
    %c0_i32_1 = arith.constant 0 : i32
    return %c0_i32, %c0_i32_0 : i32, i32
  }
  func.func @transform_2(%arg0: i32) -> (i32, i32) {
    %c0_i32 = arith.constant 0 : i32
    %c0_i32_0 = arith.constant 0 : i32
    return %arg0, %c0_i32 : i32, i32
  }
}

</mosaic_0001>

<bundles_post_ra>
// kernel: discriminator_forward.6
= control target key start
LH: loop header
LB: loop body
LE: loop exit
PB: predicated region body
PF: predicated region fallthrough
CT: control target
= control target key end

     0   :  { %s1596_s9 = smov 0   ;;  %s1913_s0 = inlined_call_operand.vmem [shape: bf16[1024,208], index: 0, kind: input, shape index: {}]   ;;  %s1914_s1 = inlined_call_operand.vmem [shape: bf16[208,16], index: 1, kind: input, shape index: {}]   ;;  %s1915_s2 = inlined_call_operand.vmem [shape: f32[1024,16], index: 2, kind: output, shape index: {}]  }
   0x1 LB: > { %s1306_s10 = sadd.s32 4294967295, %s1578_s9   ;;  %p1310_p0 = scmp.ge.s32.totalorder %s1578_s9, 1  ;;  %s1578_s9 = sphi %s1596_s9, %s12_s9  }
   0x2   : > { %p114_p1 = scmp.lt.s32.totalorder %s1578_s9, 3 }
   0x4   : > { %p115_p2 = pnand %p1310_p0, %p114_p1 }
   0x5   : > { %s1311_s13 = sshll.u32 (!%p115_p2), %s1306_s10, 6 }
   0x6   : > { %118 = sbr.rel (%p115_p2) target bundleno = 385 (0x181), region = 28  ;;  %p138_p3 = scmp.lt.s32.totalorder (!%p115_p2), %s1311_s13, 127 }
   0xb   : > { %v1463_v0 = vld [vmem:[%s1914_s1 + $0x38] sm:$0xff]   ;;  %v1580_v1 = vmov 0   ;;  %v1464_v2 = vld [vmem:[%s1914_s1 + $0x30] sm:$0xff]   ;;  %s1917_s13 = smov (!%p138_p3, %s1311_s13), 127  ;;  %v1465_v3 = vld [vmem:[%s1914_s1 + $0x28] sm:$0xff]   ;;  %vm607_vm0 = vcmask 654336  }
   0xc   : > { %704 = vmatprep.subr.bf16.mxu0 %v1580_v1  ;;  %1428 = vmatprep.subr.bf16.mxu1 %v1580_v1  ;;  %s1427_s18 = sshll.u32 %s1917_s13, 3  ;;  %v1466_v4 = vld [vmem:[%s1914_s1 + $0x20] sm:$0xff]   ;;  %v1467_v5 = vld [vmem:[%s1914_s1 + $0x18] sm:$0xff]   ;;  %v1468_v8 = vld [vmem:[%s1914_s1 + $0x10] sm:$0xff]   ;;  %vm1185_vm1 = vcmask 130048  }
   0xd   : > { %705 = vmatpush1.bf16.msra.mxu0 %v1463_v0  ;;  %1441 = vmatpush1.bf16.msra.mxu1 %v1463_v0  ;;  %s1632_s23 = scalar_lea.vmem %s1913_s0, %s1427_s18  ;;  %v1469_v9 = vld [vmem:[%s1914_s1 + $0x8] sm:$0xff]   ;;  %v1470_v10 = vld [vmem:[%s1914_s1] sm:$0xff]   ;;  %v1472_v12 = vld [vmem:[%s1914_s1 + $0x58] sm:$0xff]   ;;  %s1780_s19 = scalar_lea.vmem %s1915_s2, %s1427_s18 }
   0xe   : > { %706 = vmatprep.subr.bf16.mxu0 %v1580_v1  ;;  %1429 = vmatprep.subr.bf16.mxu1 %v1580_v1  ;;  %v1478_v6 = vld [vmem:[%s1632_s23 + $0x4] ss:$8 sps:$4 sm:$0xff]   ;;  %v1473_v13 = vld [vmem:[%s1914_s1 + $0x50] sm:$0xff]   ;;  %v1476_v16 = vld [vmem:[%s1632_s23] ss:$8 sps:$4 sm:$0xff]  }
   0xf   : > { %v1481_v7 = vld [vmem:[%s1632_s23 + $0x104] ss:$8 sps:$4 sm:$0xff]   ;;  %1393 = vmatprep.mubr.msk.bf16.mxu0 %vm607_vm0, %v1478_v6  ;;  %v1479_v17 = vld [vmem:[%s1632_s23 + $0x100] ss:$8 sps:$4 sm:$0xff]   ;;  %v1482_v18 = vld [vmem:[%s1632_s23 + $0x14] ss:$8 sps:$4 sm:$0xff]  }
  0x10   : > { %1409 = vmatprep.mubr.msk.bf16.mxu1 %vm607_vm0, %v1481_v7  ;;  %v1471_v11 = vld [vmem:[%s1914_s1 + $0x60] sm:$0xff]   ;;  %v1474_v14 = vld [vmem:[%s1914_s1 + $0x48] sm:$0xff]   ;;  %v1484_v19 = vld [vmem:[%s1632_s23 + $0x114] ss:$8 sps:$4 sm:$0xff]  }
  0x11   : > { %707 = vmatpush1.bf16.msra.mxu0 %v1464_v2  ;;  %1442 = vmatpush1.bf16.msra.mxu1 %v1464_v2  ;;  %v1475_v15 = vld [vmem:[%s1914_s1 + $0x40] sm:$0xff]   ;;  %v1486_v20 = vld [vmem:[%s1632_s23 + $0x10] ss:$8 sps:$4 sm:$0xff]   ;;  %v1494_v26 = vld [vmem:[%s1632_s23 + $0x34] ss:$8 sps:$4 sm:$0xff]  }
  0x12   : > { %708 = vmatprep.subr.bf16.mxu0 %v1580_v1  ;;  %1430 = vmatprep.subr.bf16.mxu1 %v1580_v1  ;;  %v1487_v21 = vld [vmem:[%s1632_s23 + $0x110] ss:$8 sps:$4 sm:$0xff]   ;;  %v1488_v22 = vld [vmem:[%s1632_s23 + $0x24] ss:$8 sps:$4 sm:$0xff]   ;;  %v1492_v24 = vld [vmem:[%s1632_s23 + $0x20] ss:$8 sps:$4 sm:$0xff]  }
  0x13   : > { %v1490_v23 = vld [vmem:[%s1632_s23 + $0x124] ss:$8 sps:$4 sm:$0xff]   ;;  %v1493_v25 = vld [vmem:[%s1632_s23 + $0x120] ss:$8 sps:$4 sm:$0xff]   ;;  %v1496_v27 = vld [vmem:[%s1632_s23 + $0x134] ss:$8 sps:$4 sm:$0xff]  }
  0x14   : > { %v1498_v28 = vld [vmem:[%s1632_s23 + $0x30] ss:$8 sps:$4 sm:$0xff]   ;;  %v1500_v30 = vld [vmem:[%s1632_s23 + $0x44] ss:$8 sps:$4 sm:$0xff]   ;;  %v1504_v32 = vld [vmem:[%s1632_s23 + $0x40] ss:$8 sps:$4 sm:$0xff]  }
  0x15   : > { %709 = vmatpush1.bf16.msra.mxu0 %v1465_v3  ;;  %1443 = vmatpush1.bf16.msra.mxu1 %v1465_v3  ;;  %v1499_v29 = vld [vmem:[%s1632_s23 + $0x130] ss:$8 sps:$4 sm:$0xff]   ;;  %v1502_v31 = vld [vmem:[%s1632_s23 + $0x144] ss:$8 sps:$4 sm:$0xff]   ;;  %v1505_v33 = vld [vmem:[%s1632_s23 + $0x140] ss:$8 sps:$4 sm:$0xff]  }
  0x16   : > { %710 = vmatprep.subr.bf16.mxu0 %v1580_v1  ;;  %1431 = vmatprep.subr.bf16.mxu1 %v1580_v1  ;;  %v1506_v34 = vld [vmem:[%s1632_s23 + $0x54] ss:$8 sps:$4 sm:$0xff]   ;;  %v1510_v36 = vld [vmem:[%s1632_s23 + $0x50] ss:$8 sps:$4 sm:$0xff]   ;;  %v1512_v38 = vld [vmem:[%s1632_s23 + $0x64] ss:$8 sps:$4 sm:$0xff]  }
  0x17   : > { %v1508_v35 = vld [vmem:[%s1632_s23 + $0x154] ss:$8 sps:$4 sm:$0xff]   ;;  %v1511_v37 = vld [vmem:[%s1632_s23 + $0x150] ss:$8 sps:$4 sm:$0xff]   ;;  %v1514_v39 = vld [vmem:[%s1632_s23 + $0x164] ss:$8 sps:$4 sm:$0xff]  }
  0x18   : > { %v1516_v40 = vld [vmem:[%s1632_s23 + $0x60] ss:$8 sps:$4 sm:$0xff]   ;;  %v1518_v42 = vld [vmem:[%s1632_s23 + $0x74] ss:$8 sps:$4 sm:$0xff]   ;;  %v1522_v44 = vld [vmem:[%s1632_s23 + $0x70] ss:$8 sps:$4 sm:$0xff]  }
  0x19   : > { %711 = vmatpush1.bf16.msra.mxu0 %v1466_v4  ;;  %1444 = vmatpush1.bf16.msra.mxu1 %v1466_v4  ;;  %v1517_v41 = vld [vmem:[%s1632_s23 + $0x160] ss:$8 sps:$4 sm:$0xff]   ;;  %v1520_v43 = vld [vmem:[%s1632_s23 + $0x174] ss:$8 sps:$4 sm:$0xff]   ;;  %v1523_v45 = vld [vmem:[%s1632_s23 + $0x170] ss:$8 sps:$4 sm:$0xff]  }
  0x1a   : > { %712 = vmatprep.subr.bf16.mxu0 %v1580_v1  ;;  %1432 = vmatprep.subr.bf16.mxu1 %v1580_v1  ;;  %v1524_v46 = vld [vmem:[%s1632_s23 + $0x84] ss:$8 sps:$4 sm:$0xff]   ;;  %v1528_v48 = vld [vmem:[%s1632_s23 + $0x80] ss:$8 sps:$4 sm:$0xff]   ;;  %v1530_v50 = vld [vmem:[%s1632_s23 + $0x94] ss:$8 sps:$4 sm:$0xff]  }
  0x1b   : > { %v1526_v47 = vld [vmem:[%s1632_s23 + $0x184] ss:$8 sps:$4 sm:$0xff]   ;;  %v1529_v49 = vld [vmem:[%s1632_s23 + $0x180] ss:$8 sps:$4 sm:$0xff]   ;;  %v1532_v51 = vld [vmem:[%s1632_s23 + $0x194] ss:$8 sps:$4 sm:$0xff]  }
  0x1c   : > { %v1534_v52 = vld [vmem:[%s1632_s23 + $0x90] ss:$8 sps:$4 sm:$0xff]   ;;  %v1536_v54 = vld [vmem:[%s1632_s23 + $0xa4] ss:$8 sps:$4 sm:$0xff]   ;;  %v1540_v56 = vld [vmem:[%s1632_s23 + $0xa0] ss:$8 sps:$4 sm:$0xff]  }
  0x1d   : > { %713 = vmatpush1.bf16.msra.mxu0 %v1467_v5  ;;  %1445 = vmatpush1.bf16.msra.mxu1 %v1467_v5  ;;  %v1535_v53 = vld [vmem:[%s1632_s23 + $0x190] ss:$8 sps:$4 sm:$0xff]   ;;  %v1538_v55 = vld [vmem:[%s1632_s23 + $0x1a4] ss:$8 sps:$4 sm:$0xff]   ;;  %v1541_v57 = vld [vmem:[%s1632_s23 + $0x1a0] ss:$8 sps:$4 sm:$0xff]  }
  0x1e   : > { %714 = vmatprep.subr.bf16.mxu0 %v1580_v1  ;;  %1433 = vmatprep.subr.bf16.mxu1 %v1580_v1  ;;  %v1542_v58 = vld [vmem:[%s1632_s23 + $0xb4] ss:$8 sps:$4 sm:$0xff]   ;;  %v1546_v60 = vld [vmem:[%s1632_s23 + $0xb0] ss:$8 sps:$4 sm:$0xff]   ;;  %v1548_v62 = vld [vmem:[%s1632_s23 + $0xc4] ss:$8 sps:$4 sm:$0xff]  }
  0x1f   : > { %v1544_v59 = vld [vmem:[%s1632_s23 + $0x1b4] ss:$8 sps:$4 sm:$0xff]   ;;  %v1547_v61 = vld [vmem:[%s1632_s23 + $0x1b0] ss:$8 sps:$4 sm:$0xff]   ;;  %v1550_v63 = vld [vmem:[%s1632_s23 + $0x1c4] ss:$8 sps:$4 sm:$0xff]  }
  0x20   : > { %v1552_v0 = vld [vmem:[%s1632_s23 + $0xc0] ss:$8 sps:$4 sm:$0xff]   ;;  %v1554_v2 = vld [vmem:[%s1632_s23 + $0xd4] ss:$8 sps:$4 sm:$0xff]   ;;  %v1558_v4 = vld [vmem:[%s1632_s23 + $0xd0] ss:$8 sps:$4 sm:$0xff]  }
  0x21   : > { %715 = vmatpush1.bf16.msra.mxu0 %v1468_v8  ;;  %1446 = vmatpush1.bf16.msra.mxu1 %v1468_v8  ;;  %v1556_v3 = vld [vmem:[%s1632_s23 + $0x1d4] ss:$8 sps:$4 sm:$0xff]   ;;  %v1559_v5 = vld [vmem:[%s1632_s23 + $0x1d0] ss:$8 sps:$4 sm:$0xff]   ;;  %v1560_v6 = vld [vmem:[%s1632_s23 + $0xe4] ss:$8 sps:$4 sm:$0xff]  }
  0x22   : > { %716 = vmatprep.subr.bf16.mxu0 %v1580_v1  ;;  %1434 = vmatprep.subr.bf16.mxu1 %v1580_v1  ;;  %v1562_v7 = vld [vmem:[%s1632_s23 + $0x1e4] ss:$8 sps:$4 sm:$0xff]   ;;  %v1564_v8 = vld [vmem:[%s1632_s23 + $0xe0] ss:$8 sps:$4 sm:$0xff]  }
  0x25   : > { %717 = vmatpush1.bf16.msra.mxu0 %v1469_v9  ;;  %1447 = vmatpush1.bf16.msra.mxu1 %v1469_v9  ;;  %v1565_v9 = vld [vmem:[%s1632_s23 + $0x1e0] ss:$8 sps:$4 sm:$0xff]  }
  0x26   : > { %718 = vmatprep.subr.bf16.mxu0 %v1580_v1  ;;  %1435 = vmatprep.subr.bf16.mxu1 %v1580_v1 }
  0x29   : > { %719 = vmatpush1.bf16.msra.mxu0 %v1470_v10  ;;  %1448 = vmatpush1.bf16.msra.mxu1 %v1470_v10  ;;  %v1566_v10 = vld [vmem:[%s1632_s23 + $0xf4] ss:$8 sps:$4 sm:$0xff]  }
  0x2a   : > { %726 = vmatprep.subr.bf16.mxu0 %v1580_v1  ;;  %1436 = vmatprep.subr.bf16.mxu1 %v1580_v1 }
  0x2d   : > { %727 = vmatpush2.bf16.msra.mxu0 %v1471_v11  ;;  %1449 = vmatpush2.bf16.msra.mxu1 %v1471_v11  ;;  %v1568_v11 = vld [vmem:[%s1632_s23 + $0x1f4] ss:$8 sps:$4 sm:$0xff]  }
  0x2e   : > { %728 = vmatprep.subr.bf16.mxu0 %v1580_v1  ;;  %1437 = vmatprep.subr.bf16.mxu1 %v1580_v1 }
  0x31   : > { %729 = vmatpush2.bf16.msra.mxu0 %v1472_v12  ;;  %1450 = vmatpush2.bf16.msra.mxu1 %v1472_v12  ;;  %v1570_v12 = vld [vmem:[%s1632_s23 + $0xf0] ss:$8 sps:$4 sm:$0xff]  }
  0x32   : > { %730 = vmatprep.subr.bf16.mxu0 %v1580_v1  ;;  %1438 = vmatprep.subr.bf16.mxu1 %v1580_v1 }
  0x35   : > { %731 = vmatpush2.bf16.msra.mxu0 %v1473_v13  ;;  %1451 = vmatpush2.bf16.msra.mxu1 %v1473_v13  ;;  %v1571_v13 = vld [vmem:[%s1632_s23 + $0x1f0] ss:$8 sps:$4 sm:$0xff]  }
  0x36   : > { %732 = vmatprep.subr.bf16.mxu0 %v1580_v1  ;;  %1439 = vmatprep.subr.bf16.mxu1 %v1580_v1 }
  0x39   : > { %733 = vmatpush2.bf16.msra.mxu0 %v1474_v14  ;;  %1452 = vmatpush2.bf16.msra.mxu1 %v1474_v14 }
  0x3a   : > { %734 = vmatprep.subr.bf16.mxu0 %v1580_v1  ;;  %1440 = vmatprep.subr.bf16.mxu1 %v1580_v1  ;;  %v1553_v1 = vld [vmem:[%s1632_s23 + $0x1c0] ss:$8 sps:$4 sm:$0xff]  }
  0x3d   : > { %735 = vmatpush2.bf16.msra.mxu0 %v1475_v15  ;;  %1453 = vmatpush2.bf16.msra.mxu1 %v1475_v15 }
  0x40   : > { %737 = vmatmul.mubr.bf16.vlgmr.msra.gmra.mxu0 %v1476_v16  ;;  %865 = vmatmul.mubr.bf16.vlgmr.msra.gmra.mxu1 %v1479_v17 }
  0x41   : > { %1394 = vmatprep.mubr.msk.bf16.mxu0 %vm607_vm0, %v1482_v18  ;;  %1410 = vmatprep.mubr.msk.bf16.mxu1 %vm607_vm0, %v1484_v19 }
  0x48   : > { %745 = vmatmul.mubr.bf16.gmra.mxu0 %v1486_v20  ;;  %873 = vmatmul.mubr.bf16.gmra.mxu1 %v1487_v21 }
  0x49   : > { %1395 = vmatprep.mubr.msk.bf16.mxu0 %vm607_vm0, %v1488_v22  ;;  %1411 = vmatprep.mubr.msk.bf16.mxu1 %vm607_vm0, %v1490_v23 }
  0x50   : > { %753 = vmatmul.mubr.bf16.gmra.mxu0 %v1492_v24  ;;  %881 = vmatmul.mubr.bf16.gmra.mxu1 %v1493_v25 }
  0x51   : > { %1396 = vmatprep.mubr.msk.bf16.mxu0 %vm607_vm0, %v1494_v26  ;;  %1412 = vmatprep.mubr.msk.bf16.mxu1 %vm607_vm0, %v1496_v27 }
  0x58   : > { %761 = vmatmul.mubr.bf16.gmra.mxu0 %v1498_v28  ;;  %889 = vmatmul.mubr.bf16.gmra.mxu1 %v1499_v29 }
  0x59   : > { %1397 = vmatprep.mubr.msk.bf16.mxu0 %vm607_vm0, %v1500_v30  ;;  %1413 = vmatprep.mubr.msk.bf16.mxu1 %vm607_vm0, %v1502_v31 }
  0x60   : > { %769 = vmatmul.mubr.bf16.gmra.mxu0 %v1504_v32  ;;  %897 = vmatmul.mubr.bf16.gmra.mxu1 %v1505_v33 }
  0x61   : > { %1398 = vmatprep.mubr.msk.bf16.mxu0 %vm607_vm0, %v1506_v34  ;;  %1414 = vmatprep.mubr.msk.bf16.mxu1 %vm607_vm0, %v1508_v35 }
  0x68   : > { %777 = vmatmul.mubr.bf16.gmra.mxu0 %v1510_v36  ;;  %905 = vmatmul.mubr.bf16.gmra.mxu1 %v1511_v37 }
  0x69   : > { %1399 = vmatprep.mubr.msk.bf16.mxu0 %vm607_vm0, %v1512_v38  ;;  %1415 = vmatprep.mubr.msk.bf16.mxu1 %vm607_vm0, %v1514_v39 }
  0x70   : > { %785 = vmatmul.mubr.bf16.gmra.mxu0 %v1516_v40  ;;  %913 = vmatmul.mubr.bf16.gmra.mxu1 %v1517_v41 }
  0x71   : > { %1400 = vmatprep.mubr.msk.bf16.mxu0 %vm607_vm0, %v1518_v42  ;;  %1416 = vmatprep.mubr.msk.bf16.mxu1 %vm607_vm0, %v1520_v43 }
  0x78   : > { %793 = vmatmul.mubr.bf16.gmra.mxu0 %v1522_v44  ;;  %921 = vmatmul.mubr.bf16.gmra.mxu1 %v1523_v45 }
  0x79   : > { %1401 = vmatprep.mubr.msk.bf16.mxu0 %vm607_vm0, %v1524_v46  ;;  %1417 = vmatprep.mubr.msk.bf16.mxu1 %vm607_vm0, %v1526_v47 }
  0x80   : > { %801 = vmatmul.mubr.bf16.gmra.mxu0 %v1528_v48  ;;  %929 = vmatmul.mubr.bf16.gmra.mxu1 %v1529_v49 }
  0x81   : > { %1402 = vmatprep.mubr.msk.bf16.mxu0 %vm607_vm0, %v1530_v50  ;;  %1418 = vmatprep.mubr.msk.bf16.mxu1 %vm607_vm0, %v1532_v51 }
  0x88   : > { %809 = vmatmul.mubr.bf16.gmra.mxu0 %v1534_v52  ;;  %937 = vmatmul.mubr.bf16.gmra.mxu1 %v1535_v53 }
  0x89   : > { %1403 = vmatprep.mubr.msk.bf16.mxu0 %vm607_vm0, %v1536_v54  ;;  %1419 = vmatprep.mubr.msk.bf16.mxu1 %vm607_vm0, %v1538_v55 }
  0x90   : > { %817 = vmatmul.mubr.bf16.gmra.mxu0 %v1540_v56  ;;  %945 = vmatmul.mubr.bf16.gmra.mxu1 %v1541_v57 }
  0x91   : > { %1404 = vmatprep.mubr.msk.bf16.mxu0 %vm607_vm0, %v1542_v58  ;;  %1420 = vmatprep.mubr.msk.bf16.mxu1 %vm607_vm0, %v1544_v59 }
  0x98   : > { %825 = vmatmul.mubr.bf16.gmra.mxu0 %v1546_v60  ;;  %953 = vmatmul.mubr.bf16.gmra.mxu1 %v1547_v61 }
  0x99   : > { %1405 = vmatprep.mubr.msk.bf16.mxu0 %vm607_vm0, %v1548_v62  ;;  %1421 = vmatprep.mubr.msk.bf16.mxu1 %vm607_vm0, %v1550_v63 }
  0xa0   : > { %833 = vmatmul.mubr.bf16.gmra.mxu0 %v1552_v0  ;;  %961 = vmatmul.mubr.bf16.gmra.mxu1 %v1553_v1 }
  0xa1   : > { %1406 = vmatprep.mubr.msk.bf16.mxu0 %vm607_vm0, %v1554_v2  ;;  %1422 = vmatprep.mubr.msk.bf16.mxu1 %vm607_vm0, %v1556_v3 }
  0xa8   : > { %841 = vmatmul.mubr.bf16.gmra.mxu0 %v1558_v4  ;;  %969 = vmatmul.mubr.bf16.gmra.mxu1 %v1559_v5 }
  0xa9   : > { %1407 = vmatprep.mubr.msk.bf16.mxu0 %vm607_vm0, %v1560_v6  ;;  %1423 = vmatprep.mubr.msk.bf16.mxu1 %vm607_vm0, %v1562_v7 }
  0xb0   : > { %849 = vmatmul.mubr.bf16.gmra.mxu0 %v1564_v8  ;;  %977 = vmatmul.mubr.bf16.gmra.mxu1 %v1565_v9 }
  0xb1   : > { %1408 = vmatprep.mubr.msk.bf16.mxu0 %vm607_vm0, %v1566_v10  ;;  %1424 = vmatprep.mubr.msk.bf16.mxu1 %vm607_vm0, %v1568_v11 }
  0xb8   : > { %857 = vmatmul.mubr.bf16.gmra.mxu0 %v1570_v12  ;;  %985 = vmatmul.mubr.bf16.gmra.mxu1 %v1571_v13 }
 0x100   : > { %v738_v14 = vpop.f32.mrf.mxu0  ;;  %v866_v15 = vpop.f32.mrf.mxu1 }
 0x101   : > { %vm993_vm2 = vcmp.gt.f32.partialorder %v738_v14, 0.0  ;;  %v1057_v16 = vmul.f32 0.2, %v738_v14  ;;  %vm1025_vm3 = vcmp.gt.f32.partialorder %v866_v15, 0.0  ;;  %v1089_v17 = vmul.f32 0.2, %v866_v15 }
 0x102   : > { %v740_v18 = vpop.f32.mrf.mxu0  ;;  %v868_v19 = vpop.f32.mrf.mxu1 }
 0x103   : > { %v1121_v20 = vsel %vm993_vm2, %v738_v14, %v1057_v16  ;;  %v1153_v21 = vsel %vm1025_vm3, %v866_v15, %v1089_v17 }
 0x104   : > { %1186 = vst.msk [vmem:[%s1780_s19] sm:$0xff] %vm1185_vm1, %v1121_v20  ;;  %1218 = vst.msk [vmem:[%s1780_s19 + $0x100] sm:$0xff] %vm1185_vm1, %v1153_v21  ;;  %v741_v22 = vpop.f32.mrf.mxu0  ;;  %v869_v23 = vpop.f32.mrf.mxu1 }
 0x105   : > { %vm994_vm4 = vcmp.gt.f32.partialorder %v741_v22, 0.0  ;;  %v1058_v24 = vmul.f32 0.2, %v741_v22  ;;  %vm1026_vm5 = vcmp.gt.f32.partialorder %v869_v23, 0.0  ;;  %v1090_v25 = vmul.f32 0.2, %v869_v23 }
 0x106   : > { %v743_v26 = vpop.f32.mrf.mxu0  ;;  %v871_v27 = vpop.f32.mrf.mxu1 }
 0x107   : > { %v1122_v28 = vsel %vm994_vm4, %v741_v22, %v1058_v24  ;;  %v1154_v29 = vsel %vm1026_vm5, %v869_v23, %v1090_v25 }
 0x108   : > { %1187 = vst.msk [vmem:[%s1780_s19 + $0x8] sm:$0xff] %vm1185_vm1, %v1122_v28  ;;  %1219 = vst.msk [vmem:[%s1780_s19 + $0x108] sm:$0xff] %vm1185_vm1, %v1154_v29  ;;  %v746_v30 = vpop.f32.mrf.mxu0  ;;  %v874_v31 = vpop.f32.mrf.mxu1 }
 0x109   : > { %vm995_vm6 = vcmp.gt.f32.partialorder %v746_v30, 0.0  ;;  %v1059_v32 = vmul.f32 0.2, %v746_v30  ;;  %vm1027_vm7 = vcmp.gt.f32.partialorder %v874_v31, 0.0  ;;  %v1091_v33 = vmul.f32 0.2, %v874_v31 }
 0x10a   : > { %v748_v34 = vpop.f32.mrf.mxu0  ;;  %v876_v35 = vpop.f32.mrf.mxu1 }
 0x10b   : > { %v1123_v36 = vsel %vm995_vm6, %v746_v30, %v1059_v32  ;;  %v1155_v37 = vsel %vm1027_vm7, %v874_v31, %v1091_v33 }
 0x10c   : > { %1188 = vst.msk [vmem:[%s1780_s19 + $0x10] sm:$0xff] %vm1185_vm1, %v1123_v36  ;;  %1220 = vst.msk [vmem:[%s1780_s19 + $0x110] sm:$0xff] %vm1185_vm1, %v1155_v37  ;;  %v749_v38 = vpop.f32.mrf.mxu0  ;;  %v877_v39 = vpop.f32.mrf.mxu1 }
 0x10d   : > { %vm996_vm8 = vcmp.gt.f32.partialorder %v749_v38, 0.0  ;;  %v1060_v40 = vmul.f32 0.2, %v749_v38  ;;  %vm1028_vm9 = vcmp.gt.f32.partialorder %v877_v39, 0.0  ;;  %v1092_v41 = vmul.f32 0.2, %v877_v39 }
 0x10e   : > { %v751_v42 = vpop.f32.mrf.mxu0  ;;  %v879_v43 = vpop.f32.mrf.mxu1 }
 0x10f   : > { %v1124_v44 = vsel %vm996_vm8, %v749_v38, %v1060_v40  ;;  %v1156_v45 = vsel %vm1028_vm9, %v877_v39, %v1092_v41 }
 0x110   : > { %1189 = vst.msk [vmem:[%s1780_s19 + $0x18] sm:$0xff] %vm1185_vm1, %v1124_v44  ;;  %1221 = vst.msk [vmem:[%s1780_s19 + $0x118] sm:$0xff] %vm1185_vm1, %v1156_v45  ;;  %v754_v46 = vpop.f32.mrf.mxu0  ;;  %v882_v47 = vpop.f32.mrf.mxu1 }
 0x111   : > { %vm997_vm10 = vcmp.gt.f32.partialorder %v754_v46, 0.0  ;;  %v1061_v48 = vmul.f32 0.2, %v754_v46  ;;  %vm1029_vm11 = vcmp.gt.f32.partialorder %v882_v47, 0.0  ;;  %v1093_v49 = vmul.f32 0.2, %v882_v47 }
 0x112   : > { %v756_v50 = vpop.f32.mrf.mxu0  ;;  %v884_v51 = vpop.f32.mrf.mxu1 }
 0x113   : > { %v1125_v52 = vsel %vm997_vm10, %v754_v46, %v1061_v48  ;;  %v1157_v53 = vsel %vm1029_vm11, %v882_v47, %v1093_v49 }
 0x114   : > { %1190 = vst.msk [vmem:[%s1780_s19 + $0x20] sm:$0xff] %vm1185_vm1, %v1125_v52  ;;  %1222 = vst.msk [vmem:[%s1780_s19 + $0x120] sm:$0xff] %vm1185_vm1, %v1157_v53  ;;  %v757_v54 = vpop.f32.mrf.mxu0  ;;  %v885_v55 = vpop.f32.mrf.mxu1 }
 0x115   : > { %vm998_vm12 = vcmp.gt.f32.partialorder %v757_v54, 0.0  ;;  %v1062_v56 = vmul.f32 0.2, %v757_v54  ;;  %vm1030_vm13 = vcmp.gt.f32.partialorder %v885_v55, 0.0  ;;  %v1094_v57 = vmul.f32 0.2, %v885_v55 }
 0x116   : > { %v759_v58 = vpop.f32.mrf.mxu0  ;;  %v887_v59 = vpop.f32.mrf.mxu1 }
 0x117   : > { %v1126_v60 = vsel %vm998_vm12, %v757_v54, %v1062_v56  ;;  %v1158_v61 = vsel %vm1030_vm13, %v885_v55, %v1094_v57 }
 0x118   : > { %1191 = vst.msk [vmem:[%s1780_s19 + $0x28] sm:$0xff] %vm1185_vm1, %v1126_v60  ;;  %1223 = vst.msk [vmem:[%s1780_s19 + $0x128] sm:$0xff] %vm1185_vm1, %v1158_v61  ;;  %v762_v62 = vpop.f32.mrf.mxu0  ;;  %v890_v63 = vpop.f32.mrf.mxu1 }
 0x119   : > { %vm999_vm14 = vcmp.gt.f32.partialorder %v762_v62, 0.0  ;;  %v1063_v0 = vmul.f32 0.2, %v762_v62  ;;  %vm1031_vm15 = vcmp.gt.f32.partialorder %v890_v63, 0.0  ;;  %v1095_v1 = vmul.f32 0.2, %v890_v63 }
 0x11a   : > { %v764_v2 = vpop.f32.mrf.mxu0  ;;  %v892_v3 = vpop.f32.mrf.mxu1 }
 0x11b   : > { %v1127_v4 = vsel %vm999_vm14, %v762_v62, %v1063_v0  ;;  %v1159_v5 = vsel %vm1031_vm15, %v890_v63, %v1095_v1 }
 0x11c   : > { %1192 = vst.msk [vmem:[%s1780_s19 + $0x30] sm:$0xff] %vm1185_vm1, %v1127_v4  ;;  %1224 = vst.msk [vmem:[%s1780_s19 + $0x130] sm:$0xff] %vm1185_vm1, %v1159_v5  ;;  %v765_v6 = vpop.f32.mrf.mxu0  ;;  %v893_v7 = vpop.f32.mrf.mxu1 }
 0x11d   : > { %vm1000_vm0 = vcmp.gt.f32.partialorder %v765_v6, 0.0  ;;  %v1064_v8 = vmul.f32 0.2, %v765_v6  ;;  %vm1032_vm2 = vcmp.gt.f32.partialorder %v893_v7, 0.0  ;;  %v1096_v9 = vmul.f32 0.2, %v893_v7 }
 0x11e   : > { %v767_v10 = vpop.f32.mrf.mxu0  ;;  %v895_v11 = vpop.f32.mrf.mxu1 }
 0x11f   : > { %v1128_v12 = vsel %vm1000_vm0, %v765_v6, %v1064_v8  ;;  %v1160_v13 = vsel %vm1032_vm2, %v893_v7, %v1096_v9 }
 0x120   : > { %1193 = vst.msk [vmem:[%s1780_s19 + $0x38] sm:$0xff] %vm1185_vm1, %v1128_v12  ;;  %1225 = vst.msk [vmem:[%s1780_s19 + $0x138] sm:$0xff] %vm1185_vm1, %v1160_v13  ;;  %v770_v14 = vpop.f32.mrf.mxu0  ;;  %v898_v15 = vpop.f32.mrf.mxu1 }
 0x121   : > { %vm1001_vm3 = vcmp.gt.f32.partialorder %v770_v14, 0.0  ;;  %v1065_v16 = vmul.f32 0.2, %v770_v14  ;;  %vm1033_vm4 = vcmp.gt.f32.partialorder %v898_v15, 0.0  ;;  %v1097_v17 = vmul.f32 0.2, %v898_v15 }
 0x122   : > { %v772_v18 = vpop.f32.mrf.mxu0  ;;  %v900_v19 = vpop.f32.mrf.mxu1 }
 0x123   : > { %v1129_v20 = vsel %vm1001_vm3, %v770_v14, %v1065_v16  ;;  %v1161_v21 = vsel %vm1033_vm4, %v898_v15, %v1097_v17 }
 0x124   : > { %1194 = vst.msk [vmem:[%s1780_s19 + $0x40] sm:$0xff] %vm1185_vm1, %v1129_v20  ;;  %1226 = vst.msk [vmem:[%s1780_s19 + $0x140] sm:$0xff] %vm1185_vm1, %v1161_v21  ;;  %v773_v22 = vpop.f32.mrf.mxu0  ;;  %v901_v23 = vpop.f32.mrf.mxu1 }
 0x125   : > { %vm1002_vm5 = vcmp.gt.f32.partialorder %v773_v22, 0.0  ;;  %v1066_v24 = vmul.f32 0.2, %v773_v22  ;;  %vm1034_vm6 = vcmp.gt.f32.partialorder %v901_v23, 0.0  ;;  %v1098_v25 = vmul.f32 0.2, %v901_v23 }
 0x126   : > { %v775_v26 = vpop.f32.mrf.mxu0  ;;  %v903_v27 = vpop.f32.mrf.mxu1 }
 0x127   : > { %v1130_v28 = vsel %vm1002_vm5, %v773_v22, %v1066_v24  ;;  %v1162_v29 = vsel %vm1034_vm6, %v901_v23, %v1098_v25 }
 0x128   : > { %1195 = vst.msk [vmem:[%s1780_s19 + $0x48] sm:$0xff] %vm1185_vm1, %v1130_v28  ;;  %1227 = vst.msk [vmem:[%s1780_s19 + $0x148] sm:$0xff] %vm1185_vm1, %v1162_v29  ;;  %v778_v30 = vpop.f32.mrf.mxu0  ;;  %v906_v31 = vpop.f32.mrf.mxu1 }
 0x129   : > { %vm1003_vm7 = vcmp.gt.f32.partialorder %v778_v30, 0.0  ;;  %v1067_v32 = vmul.f32 0.2, %v778_v30  ;;  %vm1035_vm8 = vcmp.gt.f32.partialorder %v906_v31, 0.0  ;;  %v1099_v33 = vmul.f32 0.2, %v906_v31 }
 0x12a   : > { %v780_v34 = vpop.f32.mrf.mxu0  ;;  %v908_v35 = vpop.f32.mrf.mxu1 }
 0x12b   : > { %v1131_v36 = vsel %vm1003_vm7, %v778_v30, %v1067_v32  ;;  %v1163_v37 = vsel %vm1035_vm8, %v906_v31, %v1099_v33 }
 0x12c   : > { %1196 = vst.msk [vmem:[%s1780_s19 + $0x50] sm:$0xff] %vm1185_vm1, %v1131_v36  ;;  %1228 = vst.msk [vmem:[%s1780_s19 + $0x150] sm:$0xff] %vm1185_vm1, %v1163_v37  ;;  %v781_v38 = vpop.f32.mrf.mxu0  ;;  %v909_v39 = vpop.f32.mrf.mxu1 }
 0x12d   : > { %vm1004_vm9 = vcmp.gt.f32.partialorder %v781_v38, 0.0  ;;  %v1068_v40 = vmul.f32 0.2, %v781_v38  ;;  %vm1036_vm10 = vcmp.gt.f32.partialorder %v909_v39, 0.0  ;;  %v1100_v41 = vmul.f32 0.2, %v909_v39 }
 0x12e   : > { %v783_v42 = vpop.f32.mrf.mxu0  ;;  %v911_v43 = vpop.f32.mrf.mxu1 }
 0x12f   : > { %v1132_v44 = vsel %vm1004_vm9, %v781_v38, %v1068_v40  ;;  %v1164_v45 = vsel %vm1036_vm10, %v909_v39, %v1100_v41 }
 0x130   : > { %1197 = vst.msk [vmem:[%s1780_s19 + $0x58] sm:$0xff] %vm1185_vm1, %v1132_v44  ;;  %1229 = vst.msk [vmem:[%s1780_s19 + $0x158] sm:$0xff] %vm1185_vm1, %v1164_v45  ;;  %v786_v46 = vpop.f32.mrf.mxu0  ;;  %v914_v47 = vpop.f32.mrf.mxu1 }
 0x131   : > { %vm1005_vm11 = vcmp.gt.f32.partialorder %v786_v46, 0.0  ;;  %v1069_v48 = vmul.f32 0.2, %v786_v46  ;;  %vm1037_vm12 = vcmp.gt.f32.partialorder %v914_v47, 0.0  ;;  %v1101_v49 = vmul.f32 0.2, %v914_v47 }
 0x132   : > { %v788_v50 = vpop.f32.mrf.mxu0  ;;  %v916_v51 = vpop.f32.mrf.mxu1 }
 0x133   : > { %v1133_v52 = vsel %vm1005_vm11, %v786_v46, %v1069_v48  ;;  %v1165_v53 = vsel %vm1037_vm12, %v914_v47, %v1101_v49 }
 0x134   : > { %1198 = vst.msk [vmem:[%s1780_s19 + $0x60] sm:$0xff] %vm1185_vm1, %v1133_v52  ;;  %1230 = vst.msk [vmem:[%s1780_s19 + $0x160] sm:$0xff] %vm1185_vm1, %v1165_v53  ;;  %v789_v54 = vpop.f32.mrf.mxu0  ;;  %v917_v55 = vpop.f32.mrf.mxu1 }
 0x135   : > { %vm1006_vm13 = vcmp.gt.f32.partialorder %v789_v54, 0.0  ;;  %v1070_v56 = vmul.f32 0.2, %v789_v54  ;;  %vm1038_vm14 = vcmp.gt.f32.partialorder %v917_v55, 0.0  ;;  %v1102_v57 = vmul.f32 0.2, %v917_v55 }
 0x136   : > { %v791_v58 = vpop.f32.mrf.mxu0  ;;  %v919_v59 = vpop.f32.mrf.mxu1 }
 0x137   : > { %v1134_v60 = vsel %vm1006_vm13, %v789_v54, %v1070_v56  ;;  %v1166_v61 = vsel %vm1038_vm14, %v917_v55, %v1102_v57 }
 0x138   : > { %1199 = vst.msk [vmem:[%s1780_s19 + $0x68] sm:$0xff] %vm1185_vm1, %v1134_v60  ;;  %1231 = vst.msk [vmem:[%s1780_s19 + $0x168] sm:$0xff] %vm1185_vm1, %v1166_v61  ;;  %v794_v62 = vpop.f32.mrf.mxu0  ;;  %v922_v63 = vpop.f32.mrf.mxu1 }
 0x139   : > { %vm1007_vm15 = vcmp.gt.f32.partialorder %v794_v62, 0.0  ;;  %v1071_v0 = vmul.f32 0.2, %v794_v62  ;;  %vm1039_vm0 = vcmp.gt.f32.partialorder %v922_v63, 0.0  ;;  %v1103_v1 = vmul.f32 0.2, %v922_v63 }
 0x13a   : > { %v796_v2 = vpop.f32.mrf.mxu0  ;;  %v924_v3 = vpop.f32.mrf.mxu1 }
 0x13b   : > { %v1135_v4 = vsel %vm1007_vm15, %v794_v62, %v1071_v0  ;;  %v1167_v5 = vsel %vm1039_vm0, %v922_v63, %v1103_v1 }
 0x13c   : > { %1200 = vst.msk [vmem:[%s1780_s19 + $0x70] sm:$0xff] %vm1185_vm1, %v1135_v4  ;;  %1232 = vst.msk [vmem:[%s1780_s19 + $0x170] sm:$0xff] %vm1185_vm1, %v1167_v5  ;;  %v797_v6 = vpop.f32.mrf.mxu0  ;;  %v925_v7 = vpop.f32.mrf.mxu1 }
 0x13d   : > { %vm1008_vm2 = vcmp.gt.f32.partialorder %v797_v6, 0.0  ;;  %v1072_v8 = vmul.f32 0.2, %v797_v6  ;;  %vm1040_vm3 = vcmp.gt.f32.partialorder %v925_v7, 0.0  ;;  %v1104_v9 = vmul.f32 0.2, %v925_v7 }
 0x13e   : > { %v799_v10 = vpop.f32.mrf.mxu0  ;;  %v927_v11 = vpop.f32.mrf.mxu1 }
 0x13f   : > { %v1136_v12 = vsel %vm1008_vm2, %v797_v6, %v1072_v8  ;;  %v1168_v13 = vsel %vm1040_vm3, %v925_v7, %v1104_v9 }
 0x140   : > { %1201 = vst.msk [vmem:[%s1780_s19 + $0x78] sm:$0xff] %vm1185_vm1, %v1136_v12  ;;  %1233 = vst.msk [vmem:[%s1780_s19 + $0x178] sm:$0xff] %vm1185_vm1, %v1168_v13  ;;  %v802_v14 = vpop.f32.mrf.mxu0  ;;  %v930_v15 = vpop.f32.mrf.mxu1 }
 0x141   : > { %vm1009_vm4 = vcmp.gt.f32.partialorder %v802_v14, 0.0  ;;  %v1073_v16 = vmul.f32 0.2, %v802_v14  ;;  %vm1041_vm5 = vcmp.gt.f32.partialorder %v930_v15, 0.0  ;;  %v1105_v17 = vmul.f32 0.2, %v930_v15 }
 0x142   : > { %v804_v18 = vpop.f32.mrf.mxu0  ;;  %v932_v19 = vpop.f32.mrf.mxu1 }
 0x143   : > { %v1137_v20 = vsel %vm1009_vm4, %v802_v14, %v1073_v16  ;;  %v1169_v21 = vsel %vm1041_vm5, %v930_v15, %v1105_v17 }
 0x144   : > { %1202 = vst.msk [vmem:[%s1780_s19 + $0x80] sm:$0xff] %vm1185_vm1, %v1137_v20  ;;  %1234 = vst.msk [vmem:[%s1780_s19 + $0x180] sm:$0xff] %vm1185_vm1, %v1169_v21  ;;  %v805_v22 = vpop.f32.mrf.mxu0  ;;  %v933_v23 = vpop.f32.mrf.mxu1 }
 0x145   : > { %vm1010_vm6 = vcmp.gt.f32.partialorder %v805_v22, 0.0  ;;  %v1074_v24 = vmul.f32 0.2, %v805_v22  ;;  %vm1042_vm7 = vcmp.gt.f32.partialorder %v933_v23, 0.0  ;;  %v1106_v25 = vmul.f32 0.2, %v933_v23 }
 0x146   : > { %v807_v26 = vpop.f32.mrf.mxu0  ;;  %v935_v27 = vpop.f32.mrf.mxu1 }
 0x147   : > { %v1138_v28 = vsel %vm1010_vm6, %v805_v22, %v1074_v24  ;;  %v1170_v29 = vsel %vm1042_vm7, %v933_v23, %v1106_v25 }
 0x148   : > { %1203 = vst.msk [vmem:[%s1780_s19 + $0x88] sm:$0xff] %vm1185_vm1, %v1138_v28  ;;  %1235 = vst.msk [vmem:[%s1780_s19 + $0x188] sm:$0xff] %vm1185_vm1, %v1170_v29  ;;  %v810_v30 = vpop.f32.mrf.mxu0  ;;  %v938_v31 = vpop.f32.mrf.mxu1 }
 0x149   : > { %vm1011_vm8 = vcmp.gt.f32.partialorder %v810_v30, 0.0  ;;  %v1075_v32 = vmul.f32 0.2, %v810_v30  ;;  %vm1043_vm9 = vcmp.gt.f32.partialorder %v938_v31, 0.0  ;;  %v1107_v33 = vmul.f32 0.2, %v938_v31 }
 0x14a   : > { %v812_v34 = vpop.f32.mrf.mxu0  ;;  %v940_v35 = vpop.f32.mrf.mxu1 }
 0x14b   : > { %v1139_v36 = vsel %vm1011_vm8, %v810_v30, %v1075_v32  ;;  %v1171_v37 = vsel %vm1043_vm9, %v938_v31, %v1107_v33 }
 0x14c   : > { %1204 = vst.msk [vmem:[%s1780_s19 + $0x90] sm:$0xff] %vm1185_vm1, %v1139_v36  ;;  %1236 = vst.msk [vmem:[%s1780_s19 + $0x190] sm:$0xff] %vm1185_vm1, %v1171_v37  ;;  %v813_v38 = vpop.f32.mrf.mxu0  ;;  %v941_v39 = vpop.f32.mrf.mxu1 }
 0x14d   : > { %vm1012_vm10 = vcmp.gt.f32.partialorder %v813_v38, 0.0  ;;  %v1076_v40 = vmul.f32 0.2, %v813_v38  ;;  %vm1044_vm11 = vcmp.gt.f32.partialorder %v941_v39, 0.0  ;;  %v1108_v41 = vmul.f32 0.2, %v941_v39 }
 0x14e   : > { %v815_v42 = vpop.f32.mrf.mxu0  ;;  %v943_v43 = vpop.f32.mrf.mxu1 }
 0x14f   : > { %v1140_v44 = vsel %vm1012_vm10, %v813_v38, %v1076_v40  ;;  %v1172_v45 = vsel %vm1044_vm11, %v941_v39, %v1108_v41 }
 0x150   : > { %1205 = vst.msk [vmem:[%s1780_s19 + $0x98] sm:$0xff] %vm1185_vm1, %v1140_v44  ;;  %1237 = vst.msk [vmem:[%s1780_s19 + $0x198] sm:$0xff] %vm1185_vm1, %v1172_v45  ;;  %v818_v46 = vpop.f32.mrf.mxu0  ;;  %v946_v47 = vpop.f32.mrf.mxu1 }
 0x151   : > { %vm1013_vm12 = vcmp.gt.f32.partialorder %v818_v46, 0.0  ;;  %v1077_v48 = vmul.f32 0.2, %v818_v46  ;;  %vm1045_vm13 = vcmp.gt.f32.partialorder %v946_v47, 0.0  ;;  %v1109_v49 = vmul.f32 0.2, %v946_v47 }
 0x152   : > { %v820_v50 = vpop.f32.mrf.mxu0  ;;  %v948_v51 = vpop.f32.mrf.mxu1 }
 0x153   : > { %v1141_v52 = vsel %vm1013_vm12, %v818_v46, %v1077_v48  ;;  %v1173_v53 = vsel %vm1045_vm13, %v946_v47, %v1109_v49 }
 0x154   : > { %1206 = vst.msk [vmem:[%s1780_s19 + $0xa0] sm:$0xff] %vm1185_vm1, %v1141_v52  ;;  %1238 = vst.msk [vmem:[%s1780_s19 + $0x1a0] sm:$0xff] %vm1185_vm1, %v1173_v53  ;;  %v821_v54 = vpop.f32.mrf.mxu0  ;;  %v949_v55 = vpop.f32.mrf.mxu1 }
 0x155   : > { %vm1014_vm14 = vcmp.gt.f32.partialorder %v821_v54, 0.0  ;;  %v1078_v56 = vmul.f32 0.2, %v821_v54  ;;  %vm1046_vm15 = vcmp.gt.f32.partialorder %v949_v55, 0.0  ;;  %v1110_v57 = vmul.f32 0.2, %v949_v55 }
 0x156   : > { %v823_v58 = vpop.f32.mrf.mxu0  ;;  %v951_v59 = vpop.f32.mrf.mxu1 }
 0x157   : > { %v1142_v60 = vsel %vm1014_vm14, %v821_v54, %v1078_v56  ;;  %v1174_v61 = vsel %vm1046_vm15, %v949_v55, %v1110_v57 }
 0x158   : > { %1207 = vst.msk [vmem:[%s1780_s19 + $0xa8] sm:$0xff] %vm1185_vm1, %v1142_v60  ;;  %1239 = vst.msk [vmem:[%s1780_s19 + $0x1a8] sm:$0xff] %vm1185_vm1, %v1174_v61  ;;  %v826_v62 = vpop.f32.mrf.mxu0  ;;  %v954_v63 = vpop.f32.mrf.mxu1 }
 0x159   : > { %vm1015_vm0 = vcmp.gt.f32.partialorder %v826_v62, 0.0  ;;  %v1079_v0 = vmul.f32 0.2, %v826_v62  ;;  %vm1047_vm2 = vcmp.gt.f32.partialorder %v954_v63, 0.0  ;;  %v1111_v1 = vmul.f32 0.2, %v954_v63 }
 0x15a   : > { %v828_v2 = vpop.f32.mrf.mxu0  ;;  %v956_v3 = vpop.f32.mrf.mxu1 }
 0x15b   : > { %v1143_v4 = vsel %vm1015_vm0, %v826_v62, %v1079_v0  ;;  %v1175_v5 = vsel %vm1047_vm2, %v954_v63, %v1111_v1 }
 0x15c   : > { %1208 = vst.msk [vmem:[%s1780_s19 + $0xb0] sm:$0xff] %vm1185_vm1, %v1143_v4  ;;  %1240 = vst.msk [vmem:[%s1780_s19 + $0x1b0] sm:$0xff] %vm1185_vm1, %v1175_v5  ;;  %v829_v6 = vpop.f32.mrf.mxu0  ;;  %v957_v7 = vpop.f32.mrf.mxu1 }
 0x15d   : > { %vm1016_vm3 = vcmp.gt.f32.partialorder %v829_v6, 0.0  ;;  %v1080_v8 = vmul.f32 0.2, %v829_v6  ;;  %vm1048_vm4 = vcmp.gt.f32.partialorder %v957_v7, 0.0  ;;  %v1112_v9 = vmul.f32 0.2, %v957_v7 }
 0x15e   : > { %v831_v10 = vpop.f32.mrf.mxu0  ;;  %v959_v11 = vpop.f32.mrf.mxu1 }
 0x15f   : > { %v1144_v12 = vsel %vm1016_vm3, %v829_v6, %v1080_v8  ;;  %v1176_v13 = vsel %vm1048_vm4, %v957_v7, %v1112_v9 }
 0x160   : > { %1209 = vst.msk [vmem:[%s1780_s19 + $0xb8] sm:$0xff] %vm1185_vm1, %v1144_v12  ;;  %1241 = vst.msk [vmem:[%s1780_s19 + $0x1b8] sm:$0xff] %vm1185_vm1, %v1176_v13  ;;  %v834_v14 = vpop.f32.mrf.mxu0  ;;  %v962_v15 = vpop.f32.mrf.mxu1 }
 0x161   : > { %vm1017_vm5 = vcmp.gt.f32.partialorder %v834_v14, 0.0  ;;  %v1081_v16 = vmul.f32 0.2, %v834_v14  ;;  %vm1049_vm6 = vcmp.gt.f32.partialorder %v962_v15, 0.0  ;;  %v1113_v17 = vmul.f32 0.2, %v962_v15 }
 0x162   : > { %v836_v18 = vpop.f32.mrf.mxu0  ;;  %v964_v19 = vpop.f32.mrf.mxu1 }
 0x163   : > { %v1145_v20 = vsel %vm1017_vm5, %v834_v14, %v1081_v16  ;;  %v1177_v21 = vsel %vm1049_vm6, %v962_v15, %v1113_v17 }
 0x164   : > { %1210 = vst.msk [vmem:[%s1780_s19 + $0xc0] sm:$0xff] %vm1185_vm1, %v1145_v20  ;;  %1242 = vst.msk [vmem:[%s1780_s19 + $0x1c0] sm:$0xff] %vm1185_vm1, %v1177_v21  ;;  %v837_v22 = vpop.f32.mrf.mxu0  ;;  %v965_v23 = vpop.f32.mrf.mxu1 }
 0x165   : > { %vm1018_vm7 = vcmp.gt.f32.partialorder %v837_v22, 0.0  ;;  %v1082_v24 = vmul.f32 0.2, %v837_v22  ;;  %vm1050_vm8 = vcmp.gt.f32.partialorder %v965_v23, 0.0  ;;  %v1114_v25 = vmul.f32 0.2, %v965_v23 }
 0x166   : > { %v839_v26 = vpop.f32.mrf.mxu0  ;;  %v967_v27 = vpop.f32.mrf.mxu1 }
 0x167   : > { %v1146_v28 = vsel %vm1018_vm7, %v837_v22, %v1082_v24  ;;  %v1178_v29 = vsel %vm1050_vm8, %v965_v23, %v1114_v25 }
 0x168   : > { %1211 = vst.msk [vmem:[%s1780_s19 + $0xc8] sm:$0xff] %vm1185_vm1, %v1146_v28  ;;  %1243 = vst.msk [vmem:[%s1780_s19 + $0x1c8] sm:$0xff] %vm1185_vm1, %v1178_v29  ;;  %v842_v30 = vpop.f32.mrf.mxu0  ;;  %v970_v31 = vpop.f32.mrf.mxu1 }
 0x169   : > { %vm1019_vm9 = vcmp.gt.f32.partialorder %v842_v30, 0.0  ;;  %v1083_v32 = vmul.f32 0.2, %v842_v30  ;;  %vm1051_vm10 = vcmp.gt.f32.partialorder %v970_v31, 0.0  ;;  %v1115_v33 = vmul.f32 0.2, %v970_v31 }
 0x16a   : > { %v844_v34 = vpop.f32.mrf.mxu0  ;;  %v972_v35 = vpop.f32.mrf.mxu1 }
 0x16b   : > { %v1147_v36 = vsel %vm1019_vm9, %v842_v30, %v1083_v32  ;;  %v1179_v37 = vsel %vm1051_vm10, %v970_v31, %v1115_v33 }
 0x16c   : > { %1212 = vst.msk [vmem:[%s1780_s19 + $0xd0] sm:$0xff] %vm1185_vm1, %v1147_v36  ;;  %1244 = vst.msk [vmem:[%s1780_s19 + $0x1d0] sm:$0xff] %vm1185_vm1, %v1179_v37  ;;  %v845_v38 = vpop.f32.mrf.mxu0  ;;  %v973_v39 = vpop.f32.mrf.mxu1 }
 0x16d   : > { %vm1020_vm11 = vcmp.gt.f32.partialorder %v845_v38, 0.0  ;;  %v1084_v40 = vmul.f32 0.2, %v845_v38  ;;  %vm1052_vm12 = vcmp.gt.f32.partialorder %v973_v39, 0.0  ;;  %v1116_v41 = vmul.f32 0.2, %v973_v39 }
 0x16e   : > { %v847_v42 = vpop.f32.mrf.mxu0  ;;  %v975_v43 = vpop.f32.mrf.mxu1 }
 0x16f   : > { %v1148_v44 = vsel %vm1020_vm11, %v845_v38, %v1084_v40  ;;  %v1180_v45 = vsel %vm1052_vm12, %v973_v39, %v1116_v41 }
 0x170   : > { %1213 = vst.msk [vmem:[%s1780_s19 + $0xd8] sm:$0xff] %vm1185_vm1, %v1148_v44  ;;  %1245 = vst.msk [vmem:[%s1780_s19 + $0x1d8] sm:$0xff] %vm1185_vm1, %v1180_v45  ;;  %v850_v46 = vpop.f32.mrf.mxu0  ;;  %v978_v47 = vpop.f32.mrf.mxu1 }
 0x171   : > { %vm1021_vm13 = vcmp.gt.f32.partialorder %v850_v46, 0.0  ;;  %v1085_v48 = vmul.f32 0.2, %v850_v46  ;;  %vm1053_vm14 = vcmp.gt.f32.partialorder %v978_v47, 0.0  ;;  %v1117_v49 = vmul.f32 0.2, %v978_v47 }
 0x172   : > { %v852_v50 = vpop.f32.mrf.mxu0  ;;  %v980_v51 = vpop.f32.mrf.mxu1 }
 0x173   : > { %v1149_v52 = vsel %vm1021_vm13, %v850_v46, %v1085_v48  ;;  %v1181_v53 = vsel %vm1053_vm14, %v978_v47, %v1117_v49 }
 0x174   : > { %1214 = vst.msk [vmem:[%s1780_s19 + $0xe0] sm:$0xff] %vm1185_vm1, %v1149_v52  ;;  %1246 = vst.msk [vmem:[%s1780_s19 + $0x1e0] sm:$0xff] %vm1185_vm1, %v1181_v53  ;;  %v853_v54 = vpop.f32.mrf.mxu0  ;;  %v981_v55 = vpop.f32.mrf.mxu1 }
 0x175   : > { %vm1022_vm15 = vcmp.gt.f32.partialorder %v853_v54, 0.0  ;;  %v1086_v56 = vmul.f32 0.2, %v853_v54  ;;  %vm1054_vm0 = vcmp.gt.f32.partialorder %v981_v55, 0.0  ;;  %v1118_v57 = vmul.f32 0.2, %v981_v55 }
 0x176   : > { %v855_v58 = vpop.f32.mrf.mxu0  ;;  %v983_v59 = vpop.f32.mrf.mxu1 }
 0x177   : > { %v1150_v60 = vsel %vm1022_vm15, %v853_v54, %v1086_v56  ;;  %v1182_v61 = vsel %vm1054_vm0, %v981_v55, %v1118_v57 }
 0x178   : > { %1215 = vst.msk [vmem:[%s1780_s19 + $0xe8] sm:$0xff] %vm1185_vm1, %v1150_v60  ;;  %1247 = vst.msk [vmem:[%s1780_s19 + $0x1e8] sm:$0xff] %vm1185_vm1, %v1182_v61  ;;  %v858_v62 = vpop.f32.mrf.mxu0  ;;  %v986_v63 = vpop.f32.mrf.mxu1 }
 0x179   : > { %vm1023_vm2 = vcmp.gt.f32.partialorder %v858_v62, 0.0  ;;  %v1087_v0 = vmul.f32 0.2, %v858_v62  ;;  %vm1055_vm3 = vcmp.gt.f32.partialorder %v986_v63, 0.0  ;;  %v1119_v1 = vmul.f32 0.2, %v986_v63 }
 0x17a   : > { %v860_v2 = vpop.f32.mrf.mxu0  ;;  %v988_v3 = vpop.f32.mrf.mxu1 }
 0x17b   : > { %v1151_v4 = vsel %vm1023_vm2, %v858_v62, %v1087_v0  ;;  %v1183_v5 = vsel %vm1055_vm3, %v986_v63, %v1119_v1 }
 0x17c   : > { %1216 = vst.msk [vmem:[%s1780_s19 + $0xf0] sm:$0xff] %vm1185_vm1, %v1151_v4  ;;  %1248 = vst.msk [vmem:[%s1780_s19 + $0x1f0] sm:$0xff] %vm1185_vm1, %v1183_v5  ;;  %v861_v6 = vpop.f32.mrf.mxu0  ;;  %v989_v7 = vpop.f32.mrf.mxu1 }
 0x17d   : > { %vm1024_vm4 = vcmp.gt.f32.partialorder %v861_v6, 0.0  ;;  %v1088_v8 = vmul.f32 0.2, %v861_v6  ;;  %vm1056_vm5 = vcmp.gt.f32.partialorder %v989_v7, 0.0  ;;  %v1120_v9 = vmul.f32 0.2, %v989_v7 }
 0x17e   : > { %v863_v10 = vpop.f32.mrf.mxu0  ;;  %v991_v11 = vpop.f32.mrf.mxu1 }
 0x17f   : > { %v1152_v12 = vsel %vm1024_vm4, %v861_v6, %v1088_v8  ;;  %v1184_v13 = vsel %vm1056_vm5, %v989_v7, %v1120_v9 }
 0x180   : > { %1217 = vst.msk [vmem:[%s1780_s19 + $0xf8] sm:$0xff] %vm1185_vm1, %v1152_v12  ;;  %1249 = vst.msk [vmem:[%s1780_s19 + $0x1f8] sm:$0xff] %vm1185_vm1, %v1184_v13 }
 0x181 PF: > { %s12_s9 = sadd.s32 1, %s1578_s9  }
 0x182   : > { %p9_p4 = scmp.ge.s32.totalorder %s12_s9, 4  }
 0x184   :  { %11 = sbr.rel (!%p9_p4) target bundleno = 1 (0x1), region = 58 }

// kernel: discriminator_forward.8
= control target key start
LH: loop header
LB: loop body
LE: loop exit
PB: predicated region body
PF: predicated region fallthrough
CT: control target
= control target key end

     0   :  { %vm220_vm0 = vcmask 261120   ;;  %s579_s0 = inlined_call_operand.vmem [shape: f32[256,32], index: 0, kind: input, shape index: {}]   ;;  %s580_s1 = inlined_call_operand.vmem [shape: f32[1,32], index: 1, kind: input, shape index: {}]   ;;  %s581_s2 = inlined_call_operand.vmem [shape: f32[1,32], index: 2, kind: input, shape index: {}]   ;;  %s582_s3 = inlined_call_operand.vmem [shape: f32[256,32], index: 3, kind: output, shape index: {}]  }
   0x1   :  { %v14_v0 = vld [vmem:[%s579_s0] sm:$0xff]  ;;  %v15_v4 = vld [vmem:[%s579_s0 + $0x8] sm:$0xff]  ;;  %v16_v5 = vld [vmem:[%s579_s0 + $0x10] sm:$0xff] }
   0x2   :  { %v285_v1 = vld [vmem:[%s580_s1] ss:$0 sm:$0xff]  ;;  %v17_v6 = vld [vmem:[%s579_s0 + $0x18] sm:$0xff]  ;;  %v19_v11 = vld [vmem:[%s579_s0 + $0x28] sm:$0xff] }
   0x3   :  { %v290_v2 = vld [vmem:[%s581_s2] ss:$0 sm:$0xff]  ;;  %v53_v3 = vmul.f32 %v285_v1, %v14_v0  ;;  %v54_v7 = vmul.f32 %v285_v1, %v15_v4  ;;  %v55_v8 = vmul.f32 %v285_v1, %v16_v5  ;;  %v56_v9 = vmul.f32 %v285_v1, %v17_v6  ;;  %v20_v12 = vld [vmem:[%s579_s0 + $0x30] sm:$0xff]  ;;  %v21_v17 = vld [vmem:[%s579_s0 + $0x38] sm:$0xff] }
   0x4   :  { %v18_v10 = vld [vmem:[%s579_s0 + $0x20] sm:$0xff]  ;;  %v58_v15 = vmul.f32 %v285_v1, %v19_v11  ;;  %v59_v16 = vmul.f32 %v285_v1, %v20_v12  ;;  %v60_v21 = vmul.f32 %v285_v1, %v21_v17  ;;  %v23_v30 = vld [vmem:[%s579_s0 + $0x48] sm:$0xff]  ;;  %v24_v31 = vld [vmem:[%s579_s0 + $0x50] sm:$0xff] }
   0x5   :  { %v92_v13 = vadd.f32 %v290_v2, %v53_v3  ;;  %v57_v14 = vmul.f32 %v285_v1, %v18_v10  ;;  %v93_v18 = vadd.f32 %v290_v2, %v54_v7  ;;  %v94_v19 = vadd.f32 %v290_v2, %v55_v8  ;;  %v22_v25 = vld [vmem:[%s579_s0 + $0x40] sm:$0xff]  ;;  %v25_v43 = vld [vmem:[%s579_s0 + $0x58] sm:$0xff]  ;;  %v27_v45 = vld [vmem:[%s579_s0 + $0x68] sm:$0xff] }
   0x6   :  { %v95_v20 = vadd.f32 %v290_v2, %v56_v9  ;;  %v97_v24 = vadd.f32 %v290_v2, %v58_v15  ;;  %v98_v37 = vadd.f32 %v290_v2, %v59_v16  ;;  %v99_v38 = vadd.f32 %v290_v2, %v60_v21  ;;  %v26_v44 = vld [vmem:[%s579_s0 + $0x60] sm:$0xff]  ;;  %v28_v56 = vld [vmem:[%s579_s0 + $0x70] sm:$0xff]  ;;  %v29_v4 = vld [vmem:[%s579_s0 + $0x78] sm:$0xff] }
   0x7   :  { %vm124_vm1 = vcmp.gt.f32.partialorder %v92_v13, 0.0  ;;  %v156_v22 = vmul.f32 0.2, %v92_v13  ;;  %v96_v23 = vadd.f32 %v290_v2, %v57_v14  ;;  %vm125_vm2 = vcmp.gt.f32.partialorder %v93_v18, 0.0  ;;  %v30_v5 = vld [vmem:[%s579_s0 + $0x80] sm:$0xff]  ;;  %v31_v9 = vld [vmem:[%s579_s0 + $0x88] sm:$0xff] }
   0x8   :  { %v157_v26 = vmul.f32 0.2, %v93_v18  ;;  %vm126_vm3 = vcmp.gt.f32.partialorder %v94_v19, 0.0  ;;  %v158_v27 = vmul.f32 0.2, %v94_v19  ;;  %vm127_vm4 = vcmp.gt.f32.partialorder %v95_v20, 0.0 }
   0x9   :  { %v188_v28 = vsel %vm124_vm1, %v92_v13, %v156_v22  ;;  %v159_v29 = vmul.f32 0.2, %v95_v20  ;;  %vm128_vm5 = vcmp.gt.f32.partialorder %v96_v23, 0.0  ;;  %v160_v34 = vmul.f32 0.2, %v96_v23  ;;  %v32_v10 = vld [vmem:[%s579_s0 + $0x90] sm:$0xff] }
   0xa   :  { %221 = vst.msk [vmem:[%s582_s3] sm:$0xff] %vm220_vm0, %v188_v28  ;;  %v189_v32 = vsel %vm125_vm2, %v93_v18, %v157_v26  ;;  %v190_v33 = vsel %vm126_vm3, %v94_v19, %v158_v27  ;;  %vm129_vm6 = vcmp.gt.f32.partialorder %v97_v24, 0.0  ;;  %v161_v36 = vmul.f32 0.2, %v97_v24  ;;  %v33_v17 = vld [vmem:[%s579_s0 + $0x98] sm:$0xff]  ;;  %v34_v18 = vld [vmem:[%s579_s0 + $0xa0] sm:$0xff] }
   0xb   :  { %222 = vst.msk [vmem:[%s582_s3 + $0x8] sm:$0xff] %vm220_vm0, %v189_v32  ;;  %223 = vst.msk [vmem:[%s582_s3 + $0x10] sm:$0xff] %vm220_vm0, %v190_v33  ;;  %v191_v35 = vsel %vm127_vm4, %v95_v20, %v159_v29  ;;  %v192_v39 = vsel %vm128_vm5, %v96_v23, %v160_v34  ;;  %v61_v40 = vmul.f32 %v285_v1, %v22_v25  ;;  %vm130_vm7 = vcmp.gt.f32.partialorder %v98_v37, 0.0  ;;  %v35_v32 = vld [vmem:[%s579_s0 + $0xa8] sm:$0xff]  ;;  %v36_v33 = vld [vmem:[%s579_s0 + $0xb0] sm:$0xff] }
   0xc   :  { %224 = vst.msk [vmem:[%s582_s3 + $0x18] sm:$0xff] %vm220_vm0, %v191_v35  ;;  %v62_v41 = vmul.f32 %v285_v1, %v23_v30  ;;  %v63_v42 = vmul.f32 %v285_v1, %v24_v31  ;;  %225 = vst.msk [vmem:[%s582_s3 + $0x20] sm:$0xff] %vm220_vm0, %v192_v39  ;;  %v193_v46 = vsel %vm129_vm6, %v97_v24, %v161_v36  ;;  %v162_v47 = vmul.f32 0.2, %v98_v37 }
   0xd   :  { %vm131_vm8 = vcmp.gt.f32.partialorder %v99_v38, 0.0  ;;  %226 = vst.msk [vmem:[%s582_s3 + $0x28] sm:$0xff] %vm220_vm0, %v193_v46  ;;  %v163_v48 = vmul.f32 0.2, %v99_v38  ;;  %v100_v49 = vadd.f32 %v290_v2, %v61_v40  ;;  %v64_v53 = vmul.f32 %v285_v1, %v25_v43  ;;  %v37_v40 = vld [vmem:[%s579_s0 + $0xb8] sm:$0xff]  ;;  %v39_v46 = vld [vmem:[%s579_s0 + $0xc8] sm:$0xff] }
   0xe   :  { %v101_v50 = vadd.f32 %v290_v2, %v62_v41  ;;  %v102_v51 = vadd.f32 %v290_v2, %v63_v42  ;;  %v194_v52 = vsel %vm130_vm7, %v98_v37, %v162_v47  ;;  %v65_v54 = vmul.f32 %v285_v1, %v26_v44  ;;  %v40_v47 = vld [vmem:[%s579_s0 + $0xd0] sm:$0xff] }
   0xf   :  { %v66_v55 = vmul.f32 %v285_v1, %v27_v45  ;;  %227 = vst.msk [vmem:[%s582_s3 + $0x30] sm:$0xff] %vm220_vm0, %v194_v52  ;;  %v195_v57 = vsel %vm131_vm8, %v99_v38, %v163_v48  ;;  %vm132_vm9 = vcmp.gt.f32.partialorder %v100_v49, 0.0  ;;  %v164_v58 = vmul.f32 0.2, %v100_v49  ;;  %v38_v45 = vld [vmem:[%s579_s0 + $0xc0] sm:$0xff] }
  0x10   :  { %vm133_vm10 = vcmp.gt.f32.partialorder %v101_v50, 0.0  ;;  %228 = vst.msk [vmem:[%s582_s3 + $0x38] sm:$0xff] %vm220_vm0, %v195_v57  ;;  %v165_v59 = vmul.f32 0.2, %v101_v50  ;;  %vm134_vm11 = vcmp.gt.f32.partialorder %v102_v51, 0.0  ;;  %v103_v61 = vadd.f32 %v290_v2, %v64_v53 }
  0x11   :  { %v166_v60 = vmul.f32 0.2, %v102_v51  ;;  %v196_v62 = vsel %vm132_vm9, %v100_v49, %v164_v58  ;;  %v104_v63 = vadd.f32 %v290_v2, %v65_v54  ;;  %v105_v0 = vadd.f32 %v290_v2, %v66_v55  ;;  %v41_v58 = vld [vmem:[%s579_s0 + $0xd8] sm:$0xff] }
  0x12   :  { %v67_v3 = vmul.f32 %v285_v1, %v28_v56  ;;  %229 = vst.msk [vmem:[%s582_s3 + $0x40] sm:$0xff] %vm220_vm0, %v196_v62  ;;  %v197_v6 = vsel %vm133_vm10, %v101_v50, %v165_v59  ;;  %vm135_vm12 = vcmp.gt.f32.partialorder %v103_v61, 0.0  ;;  %v167_v8 = vmul.f32 0.2, %v103_v61  ;;  %v42_v59 = vld [vmem:[%s579_s0 + $0xe0] sm:$0xff] }
  0x13   :  { %v198_v7 = vsel %vm134_vm11, %v102_v51, %v166_v60  ;;  %230 = vst.msk [vmem:[%s582_s3 + $0x48] sm:$0xff] %vm220_vm0, %v197_v6  ;;  %vm136_vm13 = vcmp.gt.f32.partialorder %v104_v63, 0.0  ;;  %v168_v11 = vmul.f32 0.2, %v104_v63  ;;  %vm137_vm14 = vcmp.gt.f32.partialorder %v105_v0, 0.0 }
  0x14   :  { %231 = vst.msk [vmem:[%s582_s3 + $0x50] sm:$0xff] %vm220_vm0, %v198_v7  ;;  %v169_v12 = vmul.f32 0.2, %v105_v0  ;;  %v199_v13 = vsel %vm135_vm12, %v103_v61, %v167_v8  ;;  %v106_v14 = vadd.f32 %v290_v2, %v67_v3  ;;  %v68_v15 = vmul.f32 %v285_v1, %v29_v4 }
  0x15   :  { %v69_v16 = vmul.f32 %v285_v1, %v30_v5  ;;  %232 = vst.msk [vmem:[%s582_s3 + $0x58] sm:$0xff] %vm220_vm0, %v199_v13  ;;  %v200_v19 = vsel %vm136_vm13, %v104_v63, %v168_v11  ;;  %v70_v21 = vmul.f32 %v285_v1, %v31_v9  ;;  %v71_v22 = vmul.f32 %v285_v1, %v32_v10  ;;  %v43_v10 = vld [vmem:[%s579_s0 + $0xe8] sm:$0xff]  ;;  %v44_v11 = vld [vmem:[%s579_s0 + $0xf0] sm:$0xff] }
  0x16   :  { %v201_v20 = vsel %vm137_vm14, %v105_v0, %v169_v12  ;;  %233 = vst.msk [vmem:[%s582_s3 + $0x60] sm:$0xff] %vm220_vm0, %v200_v19  ;;  %vm138_vm15 = vcmp.gt.f32.partialorder %v106_v14, 0.0  ;;  %v170_v23 = vmul.f32 0.2, %v106_v14  ;;  %v107_v24 = vadd.f32 %v290_v2, %v68_v15 }
  0x17   :  { %234 = vst.msk [vmem:[%s582_s3 + $0x68] sm:$0xff] %vm220_vm0, %v201_v20  ;;  %v108_v25 = vadd.f32 %v290_v2, %v69_v16  ;;  %v109_v26 = vadd.f32 %v290_v2, %v70_v21  ;;  %v110_v27 = vadd.f32 %v290_v2, %v71_v22  ;;  %v72_v28 = vmul.f32 %v285_v1, %v33_v17 }
  0x18   :  { %v73_v29 = vmul.f32 %v285_v1, %v34_v18  ;;  %v202_v30 = vsel %vm138_vm15, %v106_v14, %v170_v23  ;;  %vm139_vm1 = vcmp.gt.f32.partialorder %v107_v24, 0.0  ;;  %v171_v31 = vmul.f32 0.2, %v107_v24  ;;  %v45_v18 = vld [vmem:[%s579_s0 + $0xf8] sm:$0xff] }
  0x19   :  { %vm140_vm2 = vcmp.gt.f32.partialorder %v108_v25, 0.0  ;;  %235 = vst.msk [vmem:[%s582_s3 + $0x70] sm:$0xff] %vm220_vm0, %v202_v30  ;;  %v172_v34 = vmul.f32 0.2, %v108_v25  ;;  %vm141_vm3 = vcmp.gt.f32.partialorder %v109_v26, 0.0  ;;  %vm142_vm4 = vcmp.gt.f32.partialorder %v110_v27, 0.0 }
  0x1a   :  { %v173_v35 = vmul.f32 0.2, %v109_v26  ;;  %v203_v36 = vsel %vm139_vm1, %v107_v24, %v171_v31  ;;  %v174_v37 = vmul.f32 0.2, %v110_v27  ;;  %v111_v38 = vadd.f32 %v290_v2, %v72_v28 }
  0x1b   :  { %v112_v39 = vadd.f32 %v290_v2, %v73_v29  ;;  %236 = vst.msk [vmem:[%s582_s3 + $0x78] sm:$0xff] %vm220_vm0, %v203_v36  ;;  %v204_v41 = vsel %vm140_vm2, %v108_v25, %v172_v34  ;;  %v74_v43 = vmul.f32 %v285_v1, %v35_v32  ;;  %v75_v44 = vmul.f32 %v285_v1, %v36_v33 }
  0x1c   :  { %v205_v42 = vsel %vm141_vm3, %v109_v26, %v173_v35  ;;  %237 = vst.msk [vmem:[%s582_s3 + $0x80] sm:$0xff] %vm220_vm0, %v204_v41  ;;  %v206_v48 = vsel %vm142_vm4, %v110_v27, %v174_v37  ;;  %vm143_vm5 = vcmp.gt.f32.partialorder %v111_v38, 0.0  ;;  %v175_v49 = vmul.f32 0.2, %v111_v38 }
  0x1d   :  { %238 = vst.msk [vmem:[%s582_s3 + $0x88] sm:$0xff] %vm220_vm0, %v205_v42  ;;  %vm144_vm6 = vcmp.gt.f32.partialorder %v112_v39, 0.0  ;;  %239 = vst.msk [vmem:[%s582_s3 + $0x90] sm:$0xff] %vm220_vm0, %v206_v48  ;;  %v176_v50 = vmul.f32 0.2, %v112_v39  ;;  %v113_v51 = vadd.f32 %v290_v2, %v74_v43  ;;  %v114_v52 = vadd.f32 %v290_v2, %v75_v44 }
  0x1e   :  { %v76_v53 = vmul.f32 %v285_v1, %v37_v40  ;;  %v207_v54 = vsel %vm143_vm5, %v111_v38, %v175_v49  ;;  %v77_v55 = vmul.f32 %v285_v1, %v38_v45  ;;  %v78_v56 = vmul.f32 %v285_v1, %v39_v46 }
  0x1f   :  { %v79_v57 = vmul.f32 %v285_v1, %v40_v47  ;;  %240 = vst.msk [vmem:[%s582_s3 + $0x98] sm:$0xff] %vm220_vm0, %v207_v54  ;;  %v208_v60 = vsel %vm144_vm6, %v112_v39, %v176_v50  ;;  %vm145_vm7 = vcmp.gt.f32.partialorder %v113_v51, 0.0  ;;  %v177_v61 = vmul.f32 0.2, %v113_v51 }
  0x20   :  { %vm146_vm8 = vcmp.gt.f32.partialorder %v114_v52, 0.0  ;;  %241 = vst.msk [vmem:[%s582_s3 + $0xa0] sm:$0xff] %vm220_vm0, %v208_v60  ;;  %v178_v62 = vmul.f32 0.2, %v114_v52  ;;  %v115_v63 = vadd.f32 %v290_v2, %v76_v53  ;;  %v116_v0 = vadd.f32 %v290_v2, %v77_v55 }
  0x21   :  { %v117_v3 = vadd.f32 %v290_v2, %v78_v56  ;;  %v209_v4 = vsel %vm145_vm7, %v113_v51, %v177_v61  ;;  %v118_v5 = vadd.f32 %v290_v2, %v79_v57  ;;  %v80_v6 = vmul.f32 %v285_v1, %v41_v58 }
  0x22   :  { %v81_v7 = vmul.f32 %v285_v1, %v42_v59  ;;  %242 = vst.msk [vmem:[%s582_s3 + $0xa8] sm:$0xff] %vm220_vm0, %v209_v4  ;;  %v210_v8 = vsel %vm146_vm8, %v114_v52, %v178_v62  ;;  %vm147_vm9 = vcmp.gt.f32.partialorder %v115_v63, 0.0  ;;  %v179_v9 = vmul.f32 0.2, %v115_v63 }
  0x23   :  { %vm148_vm10 = vcmp.gt.f32.partialorder %v116_v0, 0.0  ;;  %243 = vst.msk [vmem:[%s582_s3 + $0xb0] sm:$0xff] %vm220_vm0, %v210_v8  ;;  %v180_v12 = vmul.f32 0.2, %v116_v0  ;;  %vm149_vm11 = vcmp.gt.f32.partialorder %v117_v3, 0.0  ;;  %vm150_vm12 = vcmp.gt.f32.partialorder %v118_v5, 0.0 }
  0x24   :  { %v181_v13 = vmul.f32 0.2, %v117_v3  ;;  %v211_v14 = vsel %vm147_vm9, %v115_v63, %v179_v9  ;;  %v182_v15 = vmul.f32 0.2, %v118_v5  ;;  %v119_v16 = vadd.f32 %v290_v2, %v80_v6 }
  0x25   :  { %v120_v17 = vadd.f32 %v290_v2, %v81_v7  ;;  %244 = vst.msk [vmem:[%s582_s3 + $0xb8] sm:$0xff] %vm220_vm0, %v211_v14  ;;  %v212_v19 = vsel %vm148_vm10, %v116_v0, %v180_v12  ;;  %v82_v21 = vmul.f32 %v285_v1, %v43_v10  ;;  %v83_v22 = vmul.f32 %v285_v1, %v44_v11 }
  0x26   :  { %v213_v20 = vsel %vm149_vm11, %v117_v3, %v181_v13  ;;  %245 = vst.msk [vmem:[%s582_s3 + $0xc0] sm:$0xff] %vm220_vm0, %v212_v19  ;;  %v214_v23 = vsel %vm150_vm12, %v118_v5, %v182_v15  ;;  %vm151_vm13 = vcmp.gt.f32.partialorder %v119_v16, 0.0  ;;  %v183_v24 = vmul.f32 0.2, %v119_v16 }
  0x27   :  { %246 = vst.msk [vmem:[%s582_s3 + $0xc8] sm:$0xff] %vm220_vm0, %v213_v20  ;;  %vm152_vm14 = vcmp.gt.f32.partialorder %v120_v17, 0.0  ;;  %247 = vst.msk [vmem:[%s582_s3 + $0xd0] sm:$0xff] %vm220_vm0, %v214_v23  ;;  %v184_v25 = vmul.f32 0.2, %v120_v17  ;;  %v121_v26 = vadd.f32 %v290_v2, %v82_v21  ;;  %v122_v27 = vadd.f32 %v290_v2, %v83_v22 }
  0x28   :  { %v84_v28 = vmul.f32 %v285_v1, %v45_v18  ;;  %v215_v29 = vsel %vm151_vm13, %v119_v16, %v183_v24 }
  0x29   :  { %248 = vst.msk [vmem:[%s582_s3 + $0xd8] sm:$0xff] %vm220_vm0, %v215_v29  ;;  %v216_v30 = vsel %vm152_vm14, %v120_v17, %v184_v25  ;;  %vm153_vm15 = vcmp.gt.f32.partialorder %v121_v26, 0.0  ;;  %v185_v31 = vmul.f32 0.2, %v121_v26  ;;  %vm154_vm1 = vcmp.gt.f32.partialorder %v122_v27, 0.0 }
  0x2a   :  { %249 = vst.msk [vmem:[%s582_s3 + $0xe0] sm:$0xff] %vm220_vm0, %v216_v30  ;;  %v186_v32 = vmul.f32 0.2, %v122_v27  ;;  %v123_v33 = vadd.f32 %v290_v2, %v84_v28 }
  0x2b   :  { %v217_v34 = vsel %vm153_vm15, %v121_v26, %v185_v31 }
  0x2c   :  { %250 = vst.msk [vmem:[%s582_s3 + $0xe8] sm:$0xff] %vm220_vm0, %v217_v34  ;;  %v218_v1 = vsel %vm154_vm1, %v122_v27, %v186_v32  ;;  %vm155_vm2 = vcmp.gt.f32.partialorder %v123_v33, 0.0  ;;  %v187_v35 = vmul.f32 0.2, %v123_v33 }
  0x2d   :  { %251 = vst.msk [vmem:[%s582_s3 + $0xf0] sm:$0xff] %vm220_vm0, %v218_v1 }
  0x2e   :  { %v219_v36 = vsel %vm155_vm2, %v123_v33, %v187_v35 }
  0x2f   :  { %252 = vst.msk [vmem:[%s582_s3 + $0xf8] sm:$0xff] %vm220_vm0, %v219_v36 }

// kernel: discriminator_forward.7
= control target key start
LH: loop header
LB: loop body
LE: loop exit
PB: predicated region body
PF: predicated region fallthrough
CT: control target
= control target key end

     0   :  { %vm495_vm0 = vcmask 261120   ;;  %vm666_vm1 = vcmask 1040384   ;;  %vm668_vm2 = vcmask 254976   ;;  %s1420_s1 = inlined_call_operand.vmem [shape: bf16[256,32], index: 1, kind: input, shape index: {}]   ;;  %s1421_s0 = inlined_call_operand.vmem [shape: bf16[256,256], index: 0, kind: input, shape index: {}]   ;;  %s1422_s2 = inlined_call_operand.vmem [shape: f32[256,32], index: 2, kind: output, shape index: {0}]   ;;  %s1423_s3 = inlined_call_operand.vmem [shape: f32[1,2,32], index: 3, kind: output, shape index: {1}]  }
   0x1   :  { %v886_v0 = vld [vmem:[%s1420_s1 + $0x78] sm:$0xff]   ;;  %v888_v2 = vld [vmem:[%s1420_s1 + $0x70] sm:$0xff]   ;;  %v890_v4 = vld [vmem:[%s1420_s1 + $0x68] sm:$0xff]  }
   0x2   :  { %v887_v1 = vld [vmem:[%s1420_s1 + $0x38] sm:$0xff]   ;;  %758 = vmatprep.subr.bf16.mxu0 %v886_v0  ;;  %870 = vmatprep.subr.bf16.mxu1 %v886_v0  ;;  %v889_v3 = vld [vmem:[%s1420_s1 + $0x30] sm:$0xff]   ;;  %v891_v5 = vld [vmem:[%s1420_s1 + $0x28] sm:$0xff]  }
   0x3   :  { %759 = vmatpush3.bf16.msra.mxu0 %v887_v1  ;;  %878 = vmatpush3.bf16.msra.mxu1 %v887_v1  ;;  %v892_v6 = vld [vmem:[%s1420_s1 + $0x60] sm:$0xff]   ;;  %v894_v8 = vld [vmem:[%s1420_s1 + $0x58] sm:$0xff]   ;;  %v896_v10 = vld [vmem:[%s1420_s1 + $0x50] sm:$0xff]  }
   0x4   :  { %760 = vmatprep.subr.bf16.mxu0 %v888_v2  ;;  %871 = vmatprep.subr.bf16.mxu1 %v888_v2  ;;  %v893_v7 = vld [vmem:[%s1420_s1 + $0x20] sm:$0xff]   ;;  %v895_v9 = vld [vmem:[%s1420_s1 + $0x18] sm:$0xff]   ;;  %v897_v12 = vld [vmem:[%s1420_s1 + $0x10] sm:$0xff]  }
   0x5   :  { %v904_v11 = vld [vmem:[%s1421_s0 + $0x4] ss:$8 sps:$4 sm:$0xff]   ;;  %v902_v18 = vld [vmem:[%s1421_s0] ss:$8 sps:$4 sm:$0xff]   ;;  %v905_v19 = vld [vmem:[%s1421_s0 + $0x14] ss:$8 sps:$4 sm:$0xff]  }
   0x6   :  { %366 = vmatprep.mubr.bf16.mxu0 %v904_v11  ;;  %v898_v13 = vld [vmem:[%s1420_s1 + $0x48] sm:$0xff]   ;;  %v900_v16 = vld [vmem:[%s1420_s1 + $0x40] sm:$0xff]   ;;  %v920_v21 = vld [vmem:[%s1421_s0 + $0x94] ss:$8 sps:$4 sm:$0xff]  }
   0x7   :  { %761 = vmatpush3.bf16.msra.mxu0 %v889_v3  ;;  %879 = vmatpush3.bf16.msra.mxu1 %v889_v3  ;;  %v916_v14 = vld [vmem:[%s1421_s0 + $0x84] ss:$8 sps:$4 sm:$0xff]   ;;  %v914_v20 = vld [vmem:[%s1421_s0 + $0x80] ss:$8 sps:$4 sm:$0xff]   ;;  %v907_v22 = vld [vmem:[%s1421_s0 + $0x10] ss:$8 sps:$4 sm:$0xff]  }
   0x8   :  { %762 = vmatprep.subr.bf16.mxu0 %v890_v4  ;;  %872 = vmatprep.subr.bf16.mxu1 %v890_v4  ;;  %v899_v15 = vld [vmem:[%s1420_s1 + $0x8] sm:$0xff]   ;;  %v901_v17 = vld [vmem:[%s1420_s1] sm:$0xff]   ;;  %v922_v24 = vld [vmem:[%s1421_s0 + $0x90] ss:$8 sps:$4 sm:$0xff]  }
   0x9   :  { %430 = vmatprep.mubr.bf16.mxu1 %v916_v14  ;;  %v908_v23 = vld [vmem:[%s1421_s0 + $0x24] ss:$8 sps:$4 sm:$0xff]   ;;  %v910_v26 = vld [vmem:[%s1421_s0 + $0x20] ss:$8 sps:$4 sm:$0xff]   ;;  %v911_v27 = vld [vmem:[%s1421_s0 + $0x34] ss:$8 sps:$4 sm:$0xff]  }
   0xa   :  { %v926_v25 = vld [vmem:[%s1421_s0 + $0xa4] ss:$8 sps:$4 sm:$0xff]   ;;  %v928_v28 = vld [vmem:[%s1421_s0 + $0xa0] ss:$8 sps:$4 sm:$0xff]   ;;  %v932_v29 = vld [vmem:[%s1421_s0 + $0xb4] ss:$8 sps:$4 sm:$0xff]  }
   0xb   :  { %763 = vmatpush3.bf16.msra.mxu0 %v891_v5  ;;  %880 = vmatpush3.bf16.msra.mxu1 %v891_v5  ;;  %v913_v30 = vld [vmem:[%s1421_s0 + $0x30] ss:$8 sps:$4 sm:$0xff]   ;;  %v917_v31 = vld [vmem:[%s1421_s0 + $0x44] ss:$8 sps:$4 sm:$0xff]   ;;  %v919_v34 = vld [vmem:[%s1421_s0 + $0x40] ss:$8 sps:$4 sm:$0xff]  }
   0xc   :  { %764 = vmatprep.subr.bf16.mxu0 %v892_v6  ;;  %873 = vmatprep.subr.bf16.mxu1 %v892_v6  ;;  %v934_v32 = vld [vmem:[%s1421_s0 + $0xb0] ss:$8 sps:$4 sm:$0xff]   ;;  %v938_v33 = vld [vmem:[%s1421_s0 + $0xc4] ss:$8 sps:$4 sm:$0xff]   ;;  %v923_v35 = vld [vmem:[%s1421_s0 + $0x54] ss:$8 sps:$4 sm:$0xff]  }
   0xd   :  { %v940_v36 = vld [vmem:[%s1421_s0 + $0xc0] ss:$8 sps:$4 sm:$0xff]   ;;  %v941_v37 = vld [vmem:[%s1421_s0 + $0xd4] ss:$8 sps:$4 sm:$0xff]   ;;  %v925_v38 = vld [vmem:[%s1421_s0 + $0x50] ss:$8 sps:$4 sm:$0xff]  }
   0xe   :  { %v929_v39 = vld [vmem:[%s1421_s0 + $0x64] ss:$8 sps:$4 sm:$0xff]   ;;  %v943_v40 = vld [vmem:[%s1421_s0 + $0xd0] ss:$8 sps:$4 sm:$0xff]   ;;  %v931_v42 = vld [vmem:[%s1421_s0 + $0x60] ss:$8 sps:$4 sm:$0xff]  }
   0xf   :  { %765 = vmatpush3.bf16.msra.mxu0 %v893_v7  ;;  %881 = vmatpush3.bf16.msra.mxu1 %v893_v7  ;;  %v944_v41 = vld [vmem:[%s1421_s0 + $0xe4] ss:$8 sps:$4 sm:$0xff]   ;;  %v935_v43 = vld [vmem:[%s1421_s0 + $0x74] ss:$8 sps:$4 sm:$0xff]   ;;  %v946_v44 = vld [vmem:[%s1421_s0 + $0xe0] ss:$8 sps:$4 sm:$0xff]  }
  0x10   :  { %766 = vmatprep.subr.bf16.mxu0 %v894_v8  ;;  %874 = vmatprep.subr.bf16.mxu1 %v894_v8  ;;  %v947_v45 = vld [vmem:[%s1421_s0 + $0xf4] ss:$8 sps:$4 sm:$0xff]   ;;  %v937_v46 = vld [vmem:[%s1421_s0 + $0x70] ss:$8 sps:$4 sm:$0xff]  }
  0x11   :  { %v949_v47 = vld [vmem:[%s1421_s0 + $0xf0] ss:$8 sps:$4 sm:$0xff]  }
  0x13   :  { %767 = vmatpush3.bf16.msra.mxu0 %v895_v9  ;;  %882 = vmatpush3.bf16.msra.mxu1 %v895_v9 }
  0x14   :  { %768 = vmatprep.subr.bf16.mxu0 %v896_v10  ;;  %875 = vmatprep.subr.bf16.mxu1 %v896_v10 }
  0x17   :  { %769 = vmatpush3.bf16.msra.mxu0 %v897_v12  ;;  %883 = vmatpush3.bf16.msra.mxu1 %v897_v12 }
  0x18   :  { %770 = vmatprep.subr.bf16.mxu0 %v898_v13  ;;  %876 = vmatprep.subr.bf16.mxu1 %v898_v13 }
  0x1b   :  { %771 = vmatpush3.bf16.msra.mxu0 %v899_v15  ;;  %884 = vmatpush3.bf16.msra.mxu1 %v899_v15 }
  0x1c   :  { %772 = vmatprep.subr.bf16.mxu0 %v900_v16  ;;  %877 = vmatprep.subr.bf16.mxu1 %v900_v16 }
  0x1f   :  { %773 = vmatpush3.bf16.msra.mxu0 %v901_v17  ;;  %885 = vmatpush3.bf16.msra.mxu1 %v901_v17 }
  0x22   :  { %367 = vmatmul.mubr.bf16.vlgmr.msra.gmra.mxu0 %v902_v18  ;;  %431 = vmatmul.mubr.bf16.vlgmr.msra.gmra.mxu1 %v914_v20 }
  0x23   :  { %374 = vmatprep.mubr.bf16.mxu0 %v905_v19  ;;  %438 = vmatprep.mubr.bf16.mxu1 %v920_v21 }
  0x2a   :  { %375 = vmatmul.mubr.bf16.gmra.mxu0 %v907_v22  ;;  %439 = vmatmul.mubr.bf16.gmra.mxu1 %v922_v24 }
  0x2b   :  { %382 = vmatprep.mubr.bf16.mxu0 %v908_v23  ;;  %446 = vmatprep.mubr.bf16.mxu1 %v926_v25 }
  0x32   :  { %383 = vmatmul.mubr.bf16.gmra.mxu0 %v910_v26  ;;  %447 = vmatmul.mubr.bf16.gmra.mxu1 %v928_v28 }
  0x33   :  { %390 = vmatprep.mubr.bf16.mxu0 %v911_v27  ;;  %454 = vmatprep.mubr.bf16.mxu1 %v932_v29 }
  0x3a   :  { %391 = vmatmul.mubr.bf16.gmra.mxu0 %v913_v30  ;;  %455 = vmatmul.mubr.bf16.gmra.mxu1 %v934_v32 }
  0x3b   :  { %398 = vmatprep.mubr.bf16.mxu0 %v917_v31  ;;  %462 = vmatprep.mubr.bf16.mxu1 %v938_v33 }
  0x42   :  { %399 = vmatmul.mubr.bf16.gmra.mxu0 %v919_v34  ;;  %463 = vmatmul.mubr.bf16.gmra.mxu1 %v940_v36 }
  0x43   :  { %406 = vmatprep.mubr.bf16.mxu0 %v923_v35  ;;  %470 = vmatprep.mubr.bf16.mxu1 %v941_v37 }
  0x4a   :  { %407 = vmatmul.mubr.bf16.gmra.mxu0 %v925_v38  ;;  %471 = vmatmul.mubr.bf16.gmra.mxu1 %v943_v40 }
  0x4b   :  { %414 = vmatprep.mubr.bf16.mxu0 %v929_v39  ;;  %478 = vmatprep.mubr.bf16.mxu1 %v944_v41 }
  0x52   :  { %415 = vmatmul.mubr.bf16.gmra.mxu0 %v931_v42  ;;  %479 = vmatmul.mubr.bf16.gmra.mxu1 %v946_v44 }
  0x53   :  { %422 = vmatprep.mubr.bf16.mxu0 %v935_v43  ;;  %486 = vmatprep.mubr.bf16.mxu1 %v947_v45 }
  0x5a   :  { %423 = vmatmul.mubr.bf16.gmra.mxu0 %v937_v46  ;;  %487 = vmatmul.mubr.bf16.gmra.mxu1 %v949_v47 }
  0xe2   :  { %v774_v48 = vpop.f32.mrf.mxu0  ;;  %v822_v49 = vpop.f32.mrf.mxu1 }
  0xe4   :  { %v775_v50 = vpop.f32.mrf.mxu0  ;;  %v823_v52 = vpop.f32.mrf.mxu1 }
  0xe5   :  { %v1114_v51 = vadd.f32 %v775_v50, %v774_v48  ;;  %v1116_v54 = vadd.f32 %v823_v52, %v822_v49 }
  0xe6   :  { %v777_v53 = vpop.f32.mrf.mxu0  ;;  %v825_v55 = vpop.f32.mrf.mxu1 }
  0xe7   :  { %670 = vst.msk [vmem:[%s1422_s2] sm:$0xff] %vm495_vm0, %v1114_v51  ;;  %v1125_v57 = vsel %vm495_vm0, %v1116_v54, 0.0  ;;  %686 = vst.msk [vmem:[%s1422_s2 + $0x80] sm:$0xff] %vm495_vm0, %v1116_v54  ;;  %v565_v36 = vmul.f32 %v1114_v51, %v1114_v51  ;;  %v496_v44 = vsel %vm495_vm0, %v1114_v51, 0.0 }
  0xe8   :  { %v778_v56 = vpop.f32.mrf.mxu0  ;;  %v826_v59 = vpop.f32.mrf.mxu1 }
  0xe9   :  { %v779_v58 = vadd.f32 %v778_v56, %v777_v53  ;;  %v1132_v61 = vadd.f32 %v826_v59, %v825_v55  ;;  %v597_v49 = vsel %vm495_vm0, %v565_v36, 0.0 }
  0xea   :  { %v780_v60 = vpop.f32.mrf.mxu0  ;;  %v828_v62 = vpop.f32.mrf.mxu1 }
  0xeb   :  { %671 = vst.msk [vmem:[%s1422_s2 + $0x8] sm:$0xff] %vm495_vm0, %v779_v58  ;;  %687 = vst.msk [vmem:[%s1422_s2 + $0x88] sm:$0xff] %vm495_vm0, %v1132_v61  ;;  %v566_v34 = vmul.f32 %v779_v58, %v779_v58  ;;  %v497_v38 = vsel %vm495_vm0, %v779_v58, 0.0 }
  0xec   :  { %v781_v63 = vpop.f32.mrf.mxu0  ;;  %v829_v1 = vpop.f32.mrf.mxu1  ;;  %v498_v50 = vadd.f32 %v497_v38, %v496_v44 }
  0xed   :  { %v782_v0 = vadd.f32 %v781_v63, %v780_v60  ;;  %v1143_v3 = vadd.f32 %v829_v1, %v828_v62  ;;  %v598_v45 = vsel %vm495_vm0, %v566_v34, 0.0 }
  0xee   :  { %v783_v2 = vpop.f32.mrf.mxu0  ;;  %v831_v4 = vpop.f32.mrf.mxu1  ;;  %v599_v59 = vadd.f32 %v598_v45, %v597_v49 }
  0xef   :  { %672 = vst.msk [vmem:[%s1422_s2 + $0x10] sm:$0xff] %vm495_vm0, %v782_v0  ;;  %688 = vst.msk [vmem:[%s1422_s2 + $0x90] sm:$0xff] %vm495_vm0, %v1143_v3  ;;  %v567_v39 = vmul.f32 %v782_v0, %v782_v0  ;;  %v499_v46 = vsel %vm495_vm0, %v782_v0, 0.0 }
  0xf0   :  { %v784_v5 = vpop.f32.mrf.mxu0  ;;  %v832_v7 = vpop.f32.mrf.mxu1  ;;  %v500_v60 = vadd.f32 %v499_v46, %v498_v50 }
  0xf1   :  { %v785_v6 = vadd.f32 %v784_v5, %v783_v2  ;;  %v1154_v9 = vadd.f32 %v832_v7, %v831_v4  ;;  %v600_v51 = vsel %vm495_vm0, %v567_v39, 0.0 }
  0xf2   :  { %v786_v8 = vpop.f32.mrf.mxu0  ;;  %v834_v10 = vpop.f32.mrf.mxu1  ;;  %v601_v5 = vadd.f32 %v600_v51, %v599_v59 }
  0xf3   :  { %673 = vst.msk [vmem:[%s1422_s2 + $0x18] sm:$0xff] %vm495_vm0, %v785_v6  ;;  %689 = vst.msk [vmem:[%s1422_s2 + $0x98] sm:$0xff] %vm495_vm0, %v1154_v9  ;;  %v568_v47 = vmul.f32 %v785_v6, %v785_v6  ;;  %v501_v53 = vsel %vm495_vm0, %v785_v6, 0.0 }
  0xf4   :  { %v787_v11 = vpop.f32.mrf.mxu0  ;;  %v835_v13 = vpop.f32.mrf.mxu1  ;;  %v502_v6 = vadd.f32 %v501_v53, %v500_v60 }
  0xf5   :  { %v788_v12 = vadd.f32 %v787_v11, %v786_v8  ;;  %v1165_v15 = vadd.f32 %v835_v13, %v834_v10  ;;  %v602_v0 = vsel %vm495_vm0, %v568_v47, 0.0 }
  0xf6   :  { %v789_v14 = vpop.f32.mrf.mxu0  ;;  %v837_v16 = vpop.f32.mrf.mxu1 }
  0xf7   :  { %674 = vst.msk [vmem:[%s1422_s2 + $0x20] sm:$0xff] %vm495_vm0, %v788_v12  ;;  %690 = vst.msk [vmem:[%s1422_s2 + $0xa0] sm:$0xff] %vm495_vm0, %v1165_v15  ;;  %v569_v55 = vmul.f32 %v788_v12, %v788_v12  ;;  %v503_v1 = vsel %vm495_vm0, %v788_v12, 0.0 }
  0xf8   :  { %v790_v17 = vpop.f32.mrf.mxu0  ;;  %v838_v19 = vpop.f32.mrf.mxu1 }
  0xf9   :  { %v791_v18 = vadd.f32 %v790_v17, %v789_v14  ;;  %v1176_v21 = vadd.f32 %v838_v19, %v837_v16  ;;  %v604_v8 = vsel %vm495_vm0, %v569_v55, 0.0  ;;  %v603_v14 = vadd.f32 %v602_v0, %v601_v5 }
  0xfa   :  { %v792_v20 = vpop.f32.mrf.mxu0  ;;  %v840_v22 = vpop.f32.mrf.mxu1  ;;  %v504_v16 = vadd.f32 %v503_v1, %v502_v6 }
  0xfb   :  { %675 = vst.msk [vmem:[%s1422_s2 + $0x28] sm:$0xff] %vm495_vm0, %v791_v18  ;;  %691 = vst.msk [vmem:[%s1422_s2 + $0xa8] sm:$0xff] %vm495_vm0, %v1176_v21  ;;  %v570_v2 = vmul.f32 %v791_v18, %v791_v18  ;;  %v505_v10 = vsel %vm495_vm0, %v791_v18, 0.0 }
  0xfc   :  { %v793_v23 = vpop.f32.mrf.mxu0  ;;  %v841_v25 = vpop.f32.mrf.mxu1 }
  0xfd   :  { %v794_v24 = vadd.f32 %v793_v23, %v792_v20  ;;  %v1187_v27 = vadd.f32 %v841_v25, %v840_v22  ;;  %v606_v20 = vsel %vm495_vm0, %v570_v2, 0.0  ;;  %v605_v25 = vadd.f32 %v604_v8, %v603_v14 }
  0xfe   :  { %v795_v26 = vpop.f32.mrf.mxu0  ;;  %v843_v28 = vpop.f32.mrf.mxu1 }
  0xff   :  { %676 = vst.msk [vmem:[%s1422_s2 + $0x30] sm:$0xff] %vm495_vm0, %v794_v24  ;;  %692 = vst.msk [vmem:[%s1422_s2 + $0xb0] sm:$0xff] %vm495_vm0, %v1187_v27  ;;  %v571_v11 = vmul.f32 %v794_v24, %v794_v24  ;;  %v507_v22 = vsel %vm495_vm0, %v794_v24, 0.0 }
 0x100   :  { %v796_v29 = vpop.f32.mrf.mxu0  ;;  %v844_v31 = vpop.f32.mrf.mxu1 }
 0x101   :  { %v1198_v30 = vadd.f32 %v796_v29, %v795_v26  ;;  %v1200_v33 = vadd.f32 %v844_v31, %v843_v28  ;;  %v506_v26 = vadd.f32 %v505_v10, %v504_v16  ;;  %v608_v24 = vsel %vm495_vm0, %v571_v11, 0.0 }
 0x102   :  { %v798_v32 = vpop.f32.mrf.mxu0  ;;  %v846_v35 = vpop.f32.mrf.mxu1 }
 0x103   :  { %677 = vst.msk [vmem:[%s1422_s2 + $0x38] sm:$0xff] %vm495_vm0, %v1198_v30  ;;  %693 = vst.msk [vmem:[%s1422_s2 + $0xb8] sm:$0xff] %vm495_vm0, %v1200_v33  ;;  %v572_v23 = vmul.f32 %v1198_v30, %v1198_v30  ;;  %v509_v29 = vsel %vm495_vm0, %v1198_v30, 0.0  ;;  %v508_v36 = vadd.f32 %v507_v22, %v506_v26 }
 0x104   :  { %v799_v37 = vpop.f32.mrf.mxu0  ;;  %v847_v41 = vpop.f32.mrf.mxu1 }
 0x105   :  { %v800_v40 = vadd.f32 %v799_v37, %v798_v32  ;;  %v1215_v43 = vadd.f32 %v847_v41, %v846_v35  ;;  %v607_v35 = vadd.f32 %v606_v20, %v605_v25  ;;  %v610_v39 = vsel %vm495_vm0, %v572_v23, 0.0 }
 0x106   :  { %v801_v42 = vpop.f32.mrf.mxu0  ;;  %v849_v48 = vpop.f32.mrf.mxu1  ;;  %v510_v45 = vadd.f32 %v509_v29, %v508_v36 }
 0x107   :  { %678 = vst.msk [vmem:[%s1422_s2 + $0x40] sm:$0xff] %vm495_vm0, %v800_v40  ;;  %694 = vst.msk [vmem:[%s1422_s2 + $0xc0] sm:$0xff] %vm495_vm0, %v1215_v43  ;;  %v573_v31 = vmul.f32 %v800_v40, %v800_v40  ;;  %v511_v41 = vsel %vm495_vm0, %v800_v40, 0.0  ;;  %v609_v30 = vadd.f32 %v608_v24, %v607_v35 }
 0x108   :  { %v802_v52 = vpop.f32.mrf.mxu0  ;;  %v850_v58 = vpop.f32.mrf.mxu1  ;;  %v512_v51 = vadd.f32 %v511_v41, %v510_v45 }
 0x109   :  { %v803_v56 = vadd.f32 %v802_v52, %v801_v42  ;;  %v1233_v63 = vadd.f32 %v850_v58, %v849_v48  ;;  %v612_v47 = vsel %vm495_vm0, %v573_v31, 0.0  ;;  %v611_v52 = vadd.f32 %v610_v39, %v609_v30 }
 0x10a   :  { %v804_v62 = vpop.f32.mrf.mxu0  ;;  %v852_v4 = vpop.f32.mrf.mxu1 }
 0x10b   :  { %679 = vst.msk [vmem:[%s1422_s2 + $0x48] sm:$0xff] %vm495_vm0, %v803_v56  ;;  %695 = vst.msk [vmem:[%s1422_s2 + $0xc8] sm:$0xff] %vm495_vm0, %v1233_v63  ;;  %v574_v42 = vmul.f32 %v803_v56, %v803_v56  ;;  %v513_v40 = vsel %vm495_vm0, %v803_v56, 0.0  ;;  %v613_v56 = vadd.f32 %v612_v47, %v611_v52 }
 0x10c   :  { %v805_v7 = vpop.f32.mrf.mxu0  ;;  %v853_v13 = vpop.f32.mrf.mxu1  ;;  %v514_v0 = vadd.f32 %v513_v40, %v512_v51 }
 0x10d   :  { %v806_v12 = vadd.f32 %v805_v7, %v804_v62  ;;  %v1248_v19 = vadd.f32 %v853_v13, %v852_v4  ;;  %v614_v58 = vsel %vm495_vm0, %v574_v42, 0.0 }
 0x10e   :  { %v807_v17 = vpop.f32.mrf.mxu0  ;;  %v855_v18 = vpop.f32.mrf.mxu1  ;;  %v615_v8 = vadd.f32 %v614_v58, %v613_v56  ;;  %v583_v56 = vmul.f32 %v1143_v3, %v1143_v3 }
 0x10f   :  { %680 = vst.msk [vmem:[%s1422_s2 + $0x50] sm:$0xff] %vm495_vm0, %v806_v12  ;;  %696 = vst.msk [vmem:[%s1422_s2 + $0xd0] sm:$0xff] %vm495_vm0, %v1248_v19  ;;  %v575_v48 = vmul.f32 %v806_v12, %v806_v12  ;;  %v515_v59 = vsel %vm495_vm0, %v806_v12, 0.0 }
 0x110   :  { %v808_v28 = vpop.f32.mrf.mxu0  ;;  %v856_v34 = vpop.f32.mrf.mxu1  ;;  %v516_v10 = vadd.f32 %v515_v59, %v514_v0 }
 0x111   :  { %v809_v32 = vadd.f32 %v808_v28, %v807_v17  ;;  %v1266_v38 = vadd.f32 %v856_v34, %v855_v18  ;;  %v616_v2 = vsel %vm495_vm0, %v575_v48, 0.0  ;;  %v581_v48 = vmul.f32 %v1116_v54, %v1116_v54 }
 0x112   :  { %v810_v37 = vpop.f32.mrf.mxu0  ;;  %v858_v44 = vpop.f32.mrf.mxu1  ;;  %v617_v20 = vadd.f32 %v616_v2, %v615_v8  ;;  %v585_v8 = vmul.f32 %v1165_v15, %v1165_v15 }
 0x113   :  { %681 = vst.msk [vmem:[%s1422_s2 + $0x58] sm:$0xff] %vm495_vm0, %v809_v32  ;;  %697 = vst.msk [vmem:[%s1422_s2 + $0xd8] sm:$0xff] %vm495_vm0, %v1266_v38  ;;  %v576_v60 = vmul.f32 %v809_v32, %v809_v32  ;;  %v517_v4 = vsel %vm495_vm0, %v809_v32, 0.0 }
 0x114   :  { %v811_v46 = vpop.f32.mrf.mxu0  ;;  %v859_v50 = vpop.f32.mrf.mxu1  ;;  %v518_v22 = vadd.f32 %v517_v4, %v516_v10  ;;  %v531_v4 = vsel %vm495_vm0, %v1143_v3, 0.0  ;;  %v535_v3 = vsel %vm495_vm0, %v1165_v15, 0.0  ;;  %v539_v15 = vsel %vm495_vm0, %v1187_v27, 0.0 }
 0x115   :  { %v812_v49 = vadd.f32 %v811_v46, %v810_v37  ;;  %v1281_v55 = vadd.f32 %v859_v50, %v858_v44  ;;  %v618_v13 = vsel %vm495_vm0, %v576_v60, 0.0  ;;  %v628_v60 = vsel %vm495_vm0, %v581_v48, 0.0 }
 0x116   :  { %v813_v53 = vpop.f32.mrf.mxu0  ;;  %v861_v62 = vpop.f32.mrf.mxu1  ;;  %v619_v24 = vadd.f32 %v618_v13, %v617_v20  ;;  %v636_v20 = vsel %vm495_vm0, %v585_v8, 0.0 }
 0x117   :  { %682 = vst.msk [vmem:[%s1422_s2 + $0x60] sm:$0xff] %vm495_vm0, %v812_v49  ;;  %698 = vst.msk [vmem:[%s1422_s2 + $0xe0] sm:$0xff] %vm495_vm0, %v1281_v55  ;;  %v577_v5 = vmul.f32 %v812_v49, %v812_v49  ;;  %v519_v14 = vsel %vm495_vm0, %v812_v49, 0.0 }
 0x118   :  { %v814_v1 = vpop.f32.mrf.mxu0  ;;  %v862_v7 = vpop.f32.mrf.mxu1  ;;  %v520_v29 = vadd.f32 %v519_v14, %v518_v22  ;;  %v586_v14 = vmul.f32 %v1176_v21, %v1176_v21  ;;  %v587_v22 = vmul.f32 %v1187_v27, %v1187_v27  ;;  %v543_v27 = vsel %vm495_vm0, %v1215_v43, 0.0 }
 0x119   :  { %v815_v6 = vadd.f32 %v814_v1, %v813_v53  ;;  %v1296_v12 = vadd.f32 %v862_v7, %v861_v62  ;;  %v620_v18 = vsel %vm495_vm0, %v577_v5, 0.0  ;;  %v582_v53 = vmul.f32 %v1132_v61, %v1132_v61 }
 0x11a   :  { %v816_v11 = vpop.f32.mrf.mxu0  ;;  %v864_v17 = vpop.f32.mrf.mxu1  ;;  %v621_v39 = vadd.f32 %v620_v18, %v619_v24  ;;  %v529_v62 = vsel %vm495_vm0, %v1132_v61, 0.0  ;;  %v584_v5 = vmul.f32 %v1154_v9, %v1154_v9  ;;  %v632_v7 = vsel %vm495_vm0, %v583_v56, 0.0 }
 0x11b   :  { %v578_v16 = vmul.f32 %v815_v6, %v815_v6  ;;  %683 = vst.msk [vmem:[%s1422_s2 + $0x68] sm:$0xff] %vm495_vm0, %v815_v6  ;;  %699 = vst.msk [vmem:[%s1422_s2 + $0xe8] sm:$0xff] %vm495_vm0, %v1296_v12  ;;  %v521_v25 = vsel %vm495_vm0, %v815_v6, 0.0  ;;  %v630_v2 = vsel %vm495_vm0, %v582_v53, 0.0  ;;  %v533_v61 = vsel %vm495_vm0, %v1154_v9, 0.0 }
 0x11c   :  { %v817_v23 = vpop.f32.mrf.mxu0  ;;  %v865_v28 = vpop.f32.mrf.mxu1  ;;  %v522_v41 = vadd.f32 %v521_v25, %v520_v29  ;;  %v634_v13 = vsel %vm495_vm0, %v584_v5, 0.0  ;;  %v537_v9 = vsel %vm495_vm0, %v1176_v21, 0.0  ;;  %v638_v25 = vsel %vm495_vm0, %v586_v14, 0.0 }
 0x11d   :  { %v818_v26 = vadd.f32 %v817_v23, %v816_v11  ;;  %v1311_v32 = vadd.f32 %v865_v28, %v864_v17  ;;  %v622_v34 = vsel %vm495_vm0, %v578_v16, 0.0  ;;  %v640_v29 = vsel %vm495_vm0, %v587_v22, 0.0 }
 0x11e   :  { %v819_v31 = vpop.f32.mrf.mxu0  ;;  %v867_v37 = vpop.f32.mrf.mxu1  ;;  %v623_v46 = vadd.f32 %v622_v34, %v621_v39  ;;  %v541_v21 = vsel %vm495_vm0, %v1200_v33, 0.0 }
 0x11f   :  { %v523_v35 = vsel %vm495_vm0, %v818_v26, 0.0  ;;  %v579_v36 = vmul.f32 %v818_v26, %v818_v26  ;;  %684 = vst.msk [vmem:[%s1422_s2 + $0x70] sm:$0xff] %vm495_vm0, %v818_v26  ;;  %700 = vst.msk [vmem:[%s1422_s2 + $0xf0] sm:$0xff] %vm495_vm0, %v1311_v32  ;;  %v588_v26 = vmul.f32 %v1200_v33, %v1200_v33  ;;  %v545_v33 = vsel %vm495_vm0, %v1233_v63, 0.0 }
 0x120   :  { %v820_v42 = vpop.f32.mrf.mxu0  ;;  %v868_v45 = vpop.f32.mrf.mxu1  ;;  %v524_v47 = vadd.f32 %v523_v35, %v522_v41  ;;  %v595_v56 = vmul.f32 %v1311_v32, %v1311_v32 }
 0x121   :  { %v624_v44 = vsel %vm495_vm0, %v579_v36, 0.0  ;;  %v821_v30 = vadd.f32 %v820_v42, %v819_v31  ;;  %v1325_v40 = vadd.f32 %v868_v45, %v867_v37  ;;  %v589_v31 = vmul.f32 %v1215_v43, %v1215_v43 }
 0x122   :  { %v625_v52 = vadd.f32 %v624_v44, %v623_v46  ;;  %v642_v36 = vsel %vm495_vm0, %v588_v26, 0.0  ;;  %v590_v37 = vmul.f32 %v1233_v63, %v1233_v63  ;;  %v591_v44 = vmul.f32 %v1248_v19, %v1248_v19 }
 0x123   :  { %v525_v49 = vsel %vm495_vm0, %v821_v30, 0.0  ;;  %v580_v50 = vmul.f32 %v821_v30, %v821_v30  ;;  %685 = vst.msk [vmem:[%s1422_s2 + $0x78] sm:$0xff] %vm495_vm0, %v821_v30  ;;  %701 = vst.msk [vmem:[%s1422_s2 + $0xf8] sm:$0xff] %vm495_vm0, %v1325_v40  ;;  %v644_v42 = vsel %vm495_vm0, %v589_v31, 0.0  ;;  %v547_v43 = vsel %vm495_vm0, %v1248_v19, 0.0 }
 0x124   :  { %v526_v51 = vadd.f32 %v525_v49, %v524_v47  ;;  %v646_v46 = vsel %vm495_vm0, %v590_v37, 0.0  ;;  %v592_v47 = vmul.f32 %v1266_v38, %v1266_v38  ;;  %v549_v63 = vsel %vm495_vm0, %v1266_v38, 0.0 }
 0x125   :  { %v626_v54 = vsel %vm495_vm0, %v580_v50, 0.0  ;;  %v648_v50 = vsel %vm495_vm0, %v591_v44, 0.0  ;;  %v551_v19 = vsel %vm495_vm0, %v1281_v55, 0.0  ;;  %v553_v38 = vsel %vm495_vm0, %v1296_v12, 0.0 }
 0x126   :  { %v528_v58 = vadd.f32 %v1125_v57, %v526_v51  ;;  %v627_v59 = vadd.f32 %v626_v54, %v625_v52  ;;  %v593_v52 = vmul.f32 %v1281_v55, %v1281_v55  ;;  %v650_v54 = vsel %vm495_vm0, %v592_v47, 0.0 }
 0x127   :  { %v555_v55 = vsel %vm495_vm0, %v1311_v32, 0.0 }
 0x128   :  { %v530_v0 = vadd.f32 %v529_v62, %v528_v58  ;;  %v629_v1 = vadd.f32 %v628_v60, %v627_v59  ;;  %v594_v58 = vmul.f32 %v1296_v12, %v1296_v12  ;;  %v652_v62 = vsel %vm495_vm0, %v593_v52, 0.0 }
 0x129   :  { %v557_v12 = vsel %vm495_vm0, %v1325_v40, 0.0 }
 0x12a   :  { %v532_v57 = vadd.f32 %v531_v4, %v530_v0  ;;  %v631_v6 = vadd.f32 %v630_v2, %v629_v1  ;;  %v654_v2 = vsel %vm495_vm0, %v594_v58, 0.0  ;;  %v596_v4 = vmul.f32 %v1325_v40, %v1325_v40 }
 0x12c   :  { %v534_v10 = vadd.f32 %v533_v61, %v532_v57  ;;  %v633_v11 = vadd.f32 %v632_v7, %v631_v6  ;;  %v656_v6 = vsel %vm495_vm0, %v595_v56, 0.0  ;;  %v658_v8 = vsel %vm495_vm0, %v596_v4, 0.0 }
 0x12e   :  { %v635_v16 = vadd.f32 %v634_v13, %v633_v11  ;;  %v536_v17 = vadd.f32 %v535_v3, %v534_v10 }
 0x130   :  { %v538_v23 = vadd.f32 %v537_v9, %v536_v17  ;;  %v637_v18 = vadd.f32 %v636_v20, %v635_v16 }
 0x132   :  { %v540_v28 = vadd.f32 %v539_v15, %v538_v23  ;;  %v639_v24 = vadd.f32 %v638_v25, %v637_v18 }
 0x134   :  { %v542_v34 = vadd.f32 %v541_v21, %v540_v28  ;;  %v641_v35 = vadd.f32 %v640_v29, %v639_v24 }
 0x136   :  { %v544_v39 = vadd.f32 %v543_v27, %v542_v34  ;;  %v643_v41 = vadd.f32 %v642_v36, %v641_v35 }
 0x138   :  { %v546_v30 = vadd.f32 %v545_v33, %v544_v39  ;;  %v645_v45 = vadd.f32 %v644_v42, %v643_v41 }
 0x13a   :  { %v647_v48 = vadd.f32 %v646_v46, %v645_v45  ;;  %v548_v49 = vadd.f32 %v547_v43, %v546_v30 }
 0x13c   :  { %v649_v51 = vadd.f32 %v648_v50, %v647_v48  ;;  %v550_v53 = vadd.f32 %v549_v63, %v548_v49 }
 0x13e   :  { %v651_v59 = vadd.f32 %v650_v54, %v649_v51  ;;  %v552_v60 = vadd.f32 %v551_v19, %v550_v53 }
 0x140   :  { %v653_v0 = vadd.f32 %v652_v62, %v651_v59  ;;  %v554_v1 = vadd.f32 %v553_v38, %v552_v60 }
 0x142   :  { %v655_v5 = vadd.f32 %v654_v2, %v653_v0  ;;  %v556_v57 = vadd.f32 %v555_v55, %v554_v1 }
 0x144   :  { %v657_v7 = vadd.f32 %v656_v6, %v655_v5  ;;  %v558_v61 = vadd.f32 %v557_v12, %v556_v57 }
 0x146   :  { %v559_v10 = vrot.slane %v558_v61, 4  ;;  %v659_v11 = vadd.f32 %v658_v8, %v657_v7 }
 0x148   :  { %v560_v13 = vadd.f32 %v559_v10, %v558_v61  ;;  %v660_v3 = vrot.slane %v659_v11, 4 }
 0x14a   :  { %v561_v14 = vrot.slane %v560_v13, 2  ;;  %v661_v32 = vadd.f32 %v660_v3, %v659_v11 }
 0x14c   :  { %v562_v16 = vadd.f32 %v561_v14, %v560_v13  ;;  %v662_v17 = vrot.slane %v661_v32, 2 }
 0x14e   :  { %v563_v20 = vrot.slane %v562_v16, 1  ;;  %v663_v9 = vadd.f32 %v662_v17, %v661_v32 }
 0x150   :  { %v664_v22 = vrot.slane %v663_v9, 1  ;;  %v564_v23 = vadd.f32 %v563_v20, %v562_v16 }
 0x152   :  { %v665_v18 = vadd.f32 %v664_v22, %v663_v9 }
 0x154   :  { %v667_v40 = vsel %vm666_vm1, %v564_v23, %v665_v18 }
 0x155   :  { %669 = vst.msk [vmem:[%s1423_s3] sm:$0x3] %vm668_vm2, %v667_v40 }

// kernel: discriminator_forward.10
= control target key start
LH: loop header
LB: loop body
LE: loop exit
PB: predicated region body
PF: predicated region fallthrough
CT: control target
= control target key end

     0   :  { %vm76_vm0 = vcmask 523264   ;;  %s173_s0 = inlined_call_operand.vmem [shape: f32[64,64], index: 0, kind: input, shape index: {}]   ;;  %s174_s1 = inlined_call_operand.vmem [shape: f32[1,64], index: 1, kind: input, shape index: {}]   ;;  %s175_s2 = inlined_call_operand.vmem [shape: f32[1,64], index: 2, kind: input, shape index: {}]   ;;  %s176_s3 = inlined_call_operand.vmem [shape: f32[64,64], index: 3, kind: output, shape index: {}]  }
   0x1   :  { %v14_v0 = vld [vmem:[%s173_s0] sm:$0xff]  ;;  %v15_v4 = vld [vmem:[%s173_s0 + $0x8] sm:$0xff]  ;;  %v16_v5 = vld [vmem:[%s173_s0 + $0x10] sm:$0xff] }
   0x2   :  { %v89_v1 = vld [vmem:[%s174_s1] ss:$0 sm:$0xff]  ;;  %v17_v6 = vld [vmem:[%s173_s0 + $0x18] sm:$0xff]  ;;  %v19_v11 = vld [vmem:[%s173_s0 + $0x28] sm:$0xff] }
   0x3   :  { %v90_v2 = vld [vmem:[%s175_s2] ss:$0 sm:$0xff]  ;;  %v29_v3 = vmul.f32 %v89_v1, %v14_v0  ;;  %v30_v7 = vmul.f32 %v89_v1, %v15_v4  ;;  %v31_v8 = vmul.f32 %v89_v1, %v16_v5  ;;  %v32_v9 = vmul.f32 %v89_v1, %v17_v6  ;;  %v20_v12 = vld [vmem:[%s173_s0 + $0x30] sm:$0xff]  ;;  %v21_v17 = vld [vmem:[%s173_s0 + $0x38] sm:$0xff] }
   0x4   :  { %v18_v10 = vld [vmem:[%s173_s0 + $0x20] sm:$0xff]  ;;  %v34_v15 = vmul.f32 %v89_v1, %v19_v11  ;;  %v35_v16 = vmul.f32 %v89_v1, %v20_v12  ;;  %v36_v21 = vmul.f32 %v89_v1, %v21_v17 }
   0x5   :  { %v44_v13 = vadd.f32 %v90_v2, %v29_v3  ;;  %v33_v14 = vmul.f32 %v89_v1, %v18_v10  ;;  %v45_v18 = vadd.f32 %v90_v2, %v30_v7  ;;  %v46_v19 = vadd.f32 %v90_v2, %v31_v8 }
   0x6   :  { %v47_v20 = vadd.f32 %v90_v2, %v32_v9  ;;  %v49_v24 = vadd.f32 %v90_v2, %v34_v15  ;;  %v50_v34 = vadd.f32 %v90_v2, %v35_v16  ;;  %v51_v35 = vadd.f32 %v90_v2, %v36_v21 }
   0x7   :  { %vm52_vm1 = vcmp.gt.f32.partialorder %v44_v13, 0.0  ;;  %v60_v22 = vmul.f32 0.2, %v44_v13  ;;  %v48_v23 = vadd.f32 %v90_v2, %v33_v14  ;;  %vm53_vm2 = vcmp.gt.f32.partialorder %v45_v18, 0.0 }
   0x8   :  { %v61_v25 = vmul.f32 0.2, %v45_v18  ;;  %vm54_vm3 = vcmp.gt.f32.partialorder %v46_v19, 0.0  ;;  %v62_v26 = vmul.f32 0.2, %v46_v19  ;;  %vm55_vm4 = vcmp.gt.f32.partialorder %v47_v20, 0.0 }
   0x9   :  { %v68_v27 = vsel %vm52_vm1, %v44_v13, %v60_v22  ;;  %v63_v28 = vmul.f32 0.2, %v47_v20  ;;  %vm56_vm5 = vcmp.gt.f32.partialorder %v48_v23, 0.0  ;;  %v64_v31 = vmul.f32 0.2, %v48_v23 }
   0xa   :  { %77 = vst.msk [vmem:[%s176_s3] sm:$0xff] %vm76_vm0, %v68_v27  ;;  %v69_v29 = vsel %vm53_vm2, %v45_v18, %v61_v25  ;;  %v70_v30 = vsel %vm54_vm3, %v46_v19, %v62_v26  ;;  %vm57_vm6 = vcmp.gt.f32.partialorder %v49_v24, 0.0  ;;  %v65_v33 = vmul.f32 0.2, %v49_v24 }
   0xb   :  { %78 = vst.msk [vmem:[%s176_s3 + $0x8] sm:$0xff] %vm76_vm0, %v69_v29  ;;  %79 = vst.msk [vmem:[%s176_s3 + $0x10] sm:$0xff] %vm76_vm0, %v70_v30  ;;  %v71_v32 = vsel %vm55_vm4, %v47_v20, %v63_v28  ;;  %v72_v36 = vsel %vm56_vm5, %v48_v23, %v64_v31  ;;  %vm58_vm7 = vcmp.gt.f32.partialorder %v50_v34, 0.0  ;;  %v66_v38 = vmul.f32 0.2, %v50_v34 }
   0xc   :  { %80 = vst.msk [vmem:[%s176_s3 + $0x18] sm:$0xff] %vm76_vm0, %v71_v32  ;;  %81 = vst.msk [vmem:[%s176_s3 + $0x20] sm:$0xff] %vm76_vm0, %v72_v36  ;;  %v73_v37 = vsel %vm57_vm6, %v49_v24, %v65_v33  ;;  %vm59_vm8 = vcmp.gt.f32.partialorder %v51_v35, 0.0  ;;  %v67_v39 = vmul.f32 0.2, %v51_v35 }
   0xd   :  { %82 = vst.msk [vmem:[%s176_s3 + $0x28] sm:$0xff] %vm76_vm0, %v73_v37  ;;  %v74_v40 = vsel %vm58_vm7, %v50_v34, %v66_v38 }
   0xe   :  { %83 = vst.msk [vmem:[%s176_s3 + $0x30] sm:$0xff] %vm76_vm0, %v74_v40  ;;  %v75_v41 = vsel %vm59_vm8, %v51_v35, %v67_v39 }
   0xf   :  { %84 = vst.msk [vmem:[%s176_s3 + $0x38] sm:$0xff] %vm76_vm0, %v75_v41 }

// kernel: discriminator_forward.9
= control target key start
LH: loop header
LB: loop body
LE: loop exit
PB: predicated region body
PF: predicated region fallthrough
CT: control target
= control target key end

     0   :  { %vm496_vm0 = vcmask 523264   ;;  %vm547_vm1 = vcmask 1040384   ;;  %vm549_vm2 = vcmask 517120   ;;  %s966_s1 = inlined_call_operand.vmem [shape: bf16[512,64], index: 1, kind: input, shape index: {}]   ;;  %s967_s0 = inlined_call_operand.vmem [shape: bf16[64,512], index: 0, kind: input, shape index: {}]   ;;  %s968_s2 = inlined_call_operand.vmem [shape: f32[64,64], index: 2, kind: output, shape index: {0}]   ;;  %s969_s3 = inlined_call_operand.vmem [shape: f32[1,2,64], index: 3, kind: output, shape index: {1}]  }
   0x1   :  { %v695_v0 = vld [vmem:[%s966_s1 + $0x78] sm:$0xff]   ;;  %v699_v4 = vld [vmem:[%s966_s1 + $0x70] sm:$0xff]   ;;  %v703_v8 = vld [vmem:[%s966_s1 + $0x68] sm:$0xff]  }
   0x2   :  { %v696_v1 = vld [vmem:[%s966_s1 + $0xf8] sm:$0xff]   ;;  %615 = vmatprep.subr.bf16.mxu0 %v695_v0  ;;  %v700_v5 = vld [vmem:[%s966_s1 + $0xf0] sm:$0xff]   ;;  %v704_v9 = vld [vmem:[%s966_s1 + $0xe8] sm:$0xff]  }
   0x3   :  { %v697_v2 = vld [vmem:[%s966_s1 + $0x38] sm:$0xff]   ;;  %655 = vmatprep.subr.bf16.mxu1 %v696_v1  ;;  %v701_v6 = vld [vmem:[%s966_s1 + $0x30] sm:$0xff]   ;;  %v705_v10 = vld [vmem:[%s966_s1 + $0x28] sm:$0xff]  }
   0x4   :  { %v698_v3 = vld [vmem:[%s966_s1 + $0xb8] sm:$0xff]   ;;  %616 = vmatpush3.bf16.msra.mxu0 %v697_v2  ;;  %v702_v7 = vld [vmem:[%s966_s1 + $0xb0] sm:$0xff]   ;;  %v706_v11 = vld [vmem:[%s966_s1 + $0xa8] sm:$0xff]  }
   0x5   :  { %656 = vmatpush3.bf16.msra.mxu1 %v698_v3  ;;  %617 = vmatprep.subr.bf16.mxu0 %v699_v4  ;;  %v707_v12 = vld [vmem:[%s966_s1 + $0x60] sm:$0xff]   ;;  %v711_v16 = vld [vmem:[%s966_s1 + $0x58] sm:$0xff]   ;;  %v715_v20 = vld [vmem:[%s966_s1 + $0x50] sm:$0xff]  }
   0x6   :  { %657 = vmatprep.subr.bf16.mxu1 %v700_v5  ;;  %v708_v13 = vld [vmem:[%s966_s1 + $0xe0] sm:$0xff]   ;;  %v712_v17 = vld [vmem:[%s966_s1 + $0xd8] sm:$0xff]   ;;  %v716_v21 = vld [vmem:[%s966_s1 + $0xd0] sm:$0xff]  }
   0x7   :  { %v709_v14 = vld [vmem:[%s966_s1 + $0x20] sm:$0xff]   ;;  %v713_v18 = vld [vmem:[%s966_s1 + $0x18] sm:$0xff]   ;;  %v717_v22 = vld [vmem:[%s966_s1 + $0x10] sm:$0xff]  }
   0x8   :  { %618 = vmatpush3.bf16.msra.mxu0 %v701_v6  ;;  %v710_v15 = vld [vmem:[%s966_s1 + $0xa0] sm:$0xff]   ;;  %v714_v19 = vld [vmem:[%s966_s1 + $0x98] sm:$0xff]   ;;  %v718_v23 = vld [vmem:[%s966_s1 + $0x90] sm:$0xff]  }
   0x9   :  { %658 = vmatpush3.bf16.msra.mxu1 %v702_v7  ;;  %619 = vmatprep.subr.bf16.mxu0 %v703_v8  ;;  %v719_v24 = vld [vmem:[%s966_s1 + $0x48] sm:$0xff]   ;;  %v723_v28 = vld [vmem:[%s966_s1 + $0x40] sm:$0xff]  }
   0xa   :  { %659 = vmatprep.subr.bf16.mxu1 %v704_v9  ;;  %v720_v25 = vld [vmem:[%s966_s1 + $0xc8] sm:$0xff]   ;;  %v724_v29 = vld [vmem:[%s966_s1 + $0xc0] sm:$0xff]  }
   0xb   :  { %v721_v26 = vld [vmem:[%s966_s1 + $0x8] sm:$0xff]   ;;  %v725_v30 = vld [vmem:[%s966_s1] sm:$0xff]  }
   0xc   :  { %620 = vmatpush3.bf16.msra.mxu0 %v705_v10  ;;  %v722_v27 = vld [vmem:[%s966_s1 + $0x88] sm:$0xff]   ;;  %v726_v31 = vld [vmem:[%s966_s1 + $0x80] sm:$0xff]  }
   0xd   :  { %660 = vmatpush3.bf16.msra.mxu1 %v706_v11  ;;  %621 = vmatprep.subr.bf16.mxu0 %v707_v12  ;;  %v727_v32 = vld [vmem:[%s967_s0] ss:$16 sps:$4 sm:$0xff]   ;;  %v729_v33 = vld [vmem:[%s967_s0 + $0x4] ss:$16 sps:$4 sm:$0xff]   ;;  %v730_v34 = vld [vmem:[%s967_s0 + $0x8] ss:$16 sps:$4 sm:$0xff]  }
   0xe   :  { %661 = vmatprep.subr.bf16.mxu1 %v708_v13  ;;  %v732_v35 = vld [vmem:[%s967_s0 + $0xc] ss:$16 sps:$4 sm:$0xff]   ;;  %398 = vmatprep.mubr.bf16.mxu0 %v729_v33  ;;  %v733_v36 = vld [vmem:[%s967_s0 + $0x24] ss:$16 sps:$4 sm:$0xff]   ;;  %v737_v38 = vld [vmem:[%s967_s0 + $0x20] ss:$16 sps:$4 sm:$0xff]  }
   0xf   :  { %463 = vmatprep.mubr.bf16.mxu1 %v732_v35  ;;  %v735_v37 = vld [vmem:[%s967_s0 + $0x2c] ss:$16 sps:$4 sm:$0xff]   ;;  %v738_v39 = vld [vmem:[%s967_s0 + $0x28] ss:$16 sps:$4 sm:$0xff]   ;;  %v739_v40 = vld [vmem:[%s967_s0 + $0x44] ss:$16 sps:$4 sm:$0xff]  }
  0x10   :  { %622 = vmatpush3.bf16.msra.mxu0 %v709_v14  ;;  %v741_v41 = vld [vmem:[%s967_s0 + $0x4c] ss:$16 sps:$4 sm:$0xff]   ;;  %v743_v42 = vld [vmem:[%s967_s0 + $0x40] ss:$16 sps:$4 sm:$0xff]   ;;  %v744_v43 = vld [vmem:[%s967_s0 + $0x48] ss:$16 sps:$4 sm:$0xff]  }
  0x11   :  { %662 = vmatpush3.bf16.msra.mxu1 %v710_v15  ;;  %623 = vmatprep.subr.bf16.mxu0 %v711_v16  ;;  %v745_v44 = vld [vmem:[%s967_s0 + $0x64] ss:$16 sps:$4 sm:$0xff]   ;;  %v747_v45 = vld [vmem:[%s967_s0 + $0x6c] ss:$16 sps:$4 sm:$0xff]   ;;  %v749_v46 = vld [vmem:[%s967_s0 + $0x60] ss:$16 sps:$4 sm:$0xff]  }
  0x12   :  { %663 = vmatprep.subr.bf16.mxu1 %v712_v17  ;;  %v750_v47 = vld [vmem:[%s967_s0 + $0x68] ss:$16 sps:$4 sm:$0xff]  }
  0x14   :  { %624 = vmatpush3.bf16.msra.mxu0 %v713_v18 }
  0x15   :  { %664 = vmatpush3.bf16.msra.mxu1 %v714_v19  ;;  %625 = vmatprep.subr.bf16.mxu0 %v715_v20 }
  0x16   :  { %665 = vmatprep.subr.bf16.mxu1 %v716_v21 }
  0x18   :  { %626 = vmatpush3.bf16.msra.mxu0 %v717_v22 }
  0x19   :  { %666 = vmatpush3.bf16.msra.mxu1 %v718_v23  ;;  %627 = vmatprep.subr.bf16.mxu0 %v719_v24 }
  0x1a   :  { %667 = vmatprep.subr.bf16.mxu1 %v720_v25 }
  0x1c   :  { %628 = vmatpush3.bf16.msra.mxu0 %v721_v26 }
  0x1d   :  { %668 = vmatpush3.bf16.msra.mxu1 %v722_v27  ;;  %629 = vmatprep.subr.bf16.mxu0 %v723_v28 }
  0x1e   :  { %669 = vmatprep.subr.bf16.mxu1 %v724_v29 }
  0x20   :  { %630 = vmatpush3.bf16.msra.mxu0 %v725_v30 }
  0x21   :  { %670 = vmatpush3.bf16.msra.mxu1 %v726_v31 }
  0x23   :  { %399 = vmatmul.mubr.bf16.vlgmr.msra.gmra.mxu0 %v727_v32 }
  0x24   :  { %464 = vmatmul.mubr.bf16.vlgmr.msra.gmra.mxu1 %v730_v34  ;;  %406 = vmatprep.mubr.bf16.mxu0 %v733_v36 }
  0x25   :  { %471 = vmatprep.mubr.bf16.mxu1 %v735_v37 }
  0x2b   :  { %407 = vmatmul.mubr.bf16.gmra.mxu0 %v737_v38 }
  0x2c   :  { %472 = vmatmul.mubr.bf16.gmra.mxu1 %v738_v39  ;;  %414 = vmatprep.mubr.bf16.mxu0 %v739_v40 }
  0x2d   :  { %479 = vmatprep.mubr.bf16.mxu1 %v741_v41 }
  0x33   :  { %415 = vmatmul.mubr.bf16.gmra.mxu0 %v743_v42 }
  0x34   :  { %480 = vmatmul.mubr.bf16.gmra.mxu1 %v744_v43  ;;  %422 = vmatprep.mubr.bf16.mxu0 %v745_v44 }
  0x35   :  { %487 = vmatprep.mubr.bf16.mxu1 %v747_v45 }
  0x3b   :  { %423 = vmatmul.mubr.bf16.gmra.mxu0 %v749_v46 }
  0x3c   :  { %488 = vmatmul.mubr.bf16.gmra.mxu1 %v750_v47 }
  0xe3   :  { %v631_v48 = vpop.f32.mrf.mxu0 }
  0xe4   :  { %v671_v49 = vpop.f32.mrf.mxu1 }
  0xe5   :  { %v632_v50 = vpop.f32.mrf.mxu0 }
  0xe6   :  { %v633_v51 = vadd.f32 %v632_v50, %v631_v48  ;;  %v672_v52 = vpop.f32.mrf.mxu1 }
  0xe7   :  { %v673_v53 = vadd.f32 %v672_v52, %v671_v49  ;;  %v634_v54 = vpop.f32.mrf.mxu0 }
  0xe8   :  { %v674_v55 = vpop.f32.mrf.mxu1 }
  0xe9   :  { %v466_v56 = vadd.f32 %v673_v53, %v633_v51  ;;  %v635_v57 = vpop.f32.mrf.mxu0 }
  0xea   :  { %v636_v58 = vadd.f32 %v635_v57, %v634_v54  ;;  %v675_v59 = vpop.f32.mrf.mxu1 }
  0xeb   :  { %551 = vst.msk [vmem:[%s968_s2] sm:$0xff] %vm496_vm0, %v466_v56  ;;  %v676_v60 = vadd.f32 %v675_v59, %v674_v55  ;;  %v637_v61 = vpop.f32.mrf.mxu0  ;;  %v518_v20 = vmul.f32 %v466_v56, %v466_v56  ;;  %v497_v26 = vsel %vm496_vm0, %v466_v56, 0.0 }
  0xec   :  { %v677_v62 = vpop.f32.mrf.mxu1 }
  0xed   :  { %v469_v63 = vadd.f32 %v676_v60, %v636_v58  ;;  %v638_v0 = vpop.f32.mrf.mxu0  ;;  %v526_v34 = vsel %vm496_vm0, %v518_v20, 0.0 }
  0xee   :  { %v639_v1 = vadd.f32 %v638_v0, %v637_v61  ;;  %v678_v2 = vpop.f32.mrf.mxu1 }
  0xef   :  { %552 = vst.msk [vmem:[%s968_s2 + $0x8] sm:$0xff] %vm496_vm0, %v469_v63  ;;  %v679_v3 = vadd.f32 %v678_v2, %v677_v62  ;;  %v640_v4 = vpop.f32.mrf.mxu0  ;;  %v519_v17 = vmul.f32 %v469_v63, %v469_v63  ;;  %v498_v22 = vsel %vm496_vm0, %v469_v63, 0.0 }
  0xf0   :  { %v680_v5 = vpop.f32.mrf.mxu1  ;;  %v499_v35 = vadd.f32 %v498_v22, %v497_v26 }
  0xf1   :  { %v474_v6 = vadd.f32 %v679_v3, %v639_v1  ;;  %v641_v7 = vpop.f32.mrf.mxu0  ;;  %v527_v29 = vsel %vm496_vm0, %v519_v17, 0.0 }
  0xf2   :  { %v642_v8 = vadd.f32 %v641_v7, %v640_v4  ;;  %v681_v9 = vpop.f32.mrf.mxu1  ;;  %v528_v42 = vadd.f32 %v527_v29, %v526_v34 }
  0xf3   :  { %553 = vst.msk [vmem:[%s968_s2 + $0x10] sm:$0xff] %vm496_vm0, %v474_v6  ;;  %v682_v10 = vadd.f32 %v681_v9, %v680_v5  ;;  %v643_v11 = vpop.f32.mrf.mxu0  ;;  %v520_v23 = vmul.f32 %v474_v6, %v474_v6  ;;  %v500_v30 = vsel %vm496_vm0, %v474_v6, 0.0 }
  0xf4   :  { %v683_v12 = vpop.f32.mrf.mxu1  ;;  %v501_v43 = vadd.f32 %v500_v30, %v499_v35 }
  0xf5   :  { %v477_v13 = vadd.f32 %v682_v10, %v642_v8  ;;  %v644_v14 = vpop.f32.mrf.mxu0  ;;  %v529_v37 = vsel %vm496_vm0, %v520_v23, 0.0 }
  0xf6   :  { %v645_v15 = vadd.f32 %v644_v14, %v643_v11  ;;  %v684_v16 = vpop.f32.mrf.mxu1  ;;  %v530_v51 = vadd.f32 %v529_v37, %v528_v42 }
  0xf7   :  { %554 = vst.msk [vmem:[%s968_s2 + $0x18] sm:$0xff] %vm496_vm0, %v477_v13  ;;  %v685_v18 = vadd.f32 %v684_v16, %v683_v12  ;;  %v646_v19 = vpop.f32.mrf.mxu0  ;;  %v521_v31 = vmul.f32 %v477_v13, %v477_v13  ;;  %v502_v38 = vsel %vm496_vm0, %v477_v13, 0.0 }
  0xf8   :  { %v686_v21 = vpop.f32.mrf.mxu1  ;;  %v503_v52 = vadd.f32 %v502_v38, %v501_v43 }
  0xf9   :  { %v482_v24 = vadd.f32 %v685_v18, %v645_v15  ;;  %v647_v25 = vpop.f32.mrf.mxu0  ;;  %v531_v46 = vsel %vm496_vm0, %v521_v31, 0.0 }
  0xfa   :  { %v648_v27 = vadd.f32 %v647_v25, %v646_v19  ;;  %v687_v28 = vpop.f32.mrf.mxu1  ;;  %v532_v58 = vadd.f32 %v531_v46, %v530_v51 }
  0xfb   :  { %555 = vst.msk [vmem:[%s968_s2 + $0x20] sm:$0xff] %vm496_vm0, %v482_v24  ;;  %v688_v32 = vadd.f32 %v687_v28, %v686_v21  ;;  %v649_v33 = vpop.f32.mrf.mxu0  ;;  %v522_v39 = vmul.f32 %v482_v24, %v482_v24  ;;  %v504_v47 = vsel %vm496_vm0, %v482_v24, 0.0 }
  0xfc   :  { %v689_v36 = vpop.f32.mrf.mxu1  ;;  %v505_v59 = vadd.f32 %v504_v47, %v503_v52 }
  0xfd   :  { %v485_v40 = vadd.f32 %v688_v32, %v648_v27  ;;  %v650_v41 = vpop.f32.mrf.mxu0  ;;  %v533_v54 = vsel %vm496_vm0, %v522_v39, 0.0 }
  0xfe   :  { %v651_v44 = vadd.f32 %v650_v41, %v649_v33  ;;  %v690_v45 = vpop.f32.mrf.mxu1  ;;  %v534_v2 = vadd.f32 %v533_v54, %v532_v58 }
  0xff   :  { %v523_v48 = vmul.f32 %v485_v40, %v485_v40  ;;  %556 = vst.msk [vmem:[%s968_s2 + $0x28] sm:$0xff] %vm496_vm0, %v485_v40  ;;  %v691_v49 = vadd.f32 %v690_v45, %v689_v36  ;;  %v652_v50 = vpop.f32.mrf.mxu0  ;;  %v506_v55 = vsel %vm496_vm0, %v485_v40, 0.0 }
 0x100   :  { %v692_v53 = vpop.f32.mrf.mxu1  ;;  %v507_v3 = vadd.f32 %v506_v55, %v505_v59 }
 0x101   :  { %v490_v56 = vadd.f32 %v691_v49, %v651_v44  ;;  %v653_v57 = vpop.f32.mrf.mxu0  ;;  %v535_v62 = vsel %vm496_vm0, %v523_v48, 0.0 }
 0x102   :  { %v654_v60 = vadd.f32 %v653_v57, %v652_v50  ;;  %v693_v61 = vpop.f32.mrf.mxu1  ;;  %v536_v6 = vadd.f32 %v535_v62, %v534_v2 }
 0x103   :  { %v508_v63 = vsel %vm496_vm0, %v490_v56, 0.0  ;;  %v524_v0 = vmul.f32 %v490_v56, %v490_v56  ;;  %557 = vst.msk [vmem:[%s968_s2 + $0x30] sm:$0xff] %vm496_vm0, %v490_v56  ;;  %v694_v1 = vadd.f32 %v693_v61, %v692_v53 }
 0x104   :  { %v509_v7 = vadd.f32 %v508_v63, %v507_v3 }
 0x105   :  { %v537_v4 = vsel %vm496_vm0, %v524_v0, 0.0  ;;  %v493_v5 = vadd.f32 %v694_v1, %v654_v60 }
 0x106   :  { %v538_v10 = vadd.f32 %v537_v4, %v536_v6 }
 0x107   :  { %v510_v8 = vsel %vm496_vm0, %v493_v5, 0.0  ;;  %v525_v9 = vmul.f32 %v493_v5, %v493_v5  ;;  %558 = vst.msk [vmem:[%s968_s2 + $0x38] sm:$0xff] %vm496_vm0, %v493_v5 }
 0x108   :  { %v511_v11 = vadd.f32 %v510_v8, %v509_v7 }
 0x109   :  { %v539_v12 = vsel %vm496_vm0, %v525_v9, 0.0 }
 0x10a   :  { %v512_v13 = vrot.slane %v511_v11, 4  ;;  %v540_v14 = vadd.f32 %v539_v12, %v538_v10 }
 0x10c   :  { %v513_v15 = vadd.f32 %v512_v13, %v511_v11  ;;  %v541_v16 = vrot.slane %v540_v14, 4 }
 0x10e   :  { %v514_v17 = vrot.slane %v513_v15, 2  ;;  %v542_v18 = vadd.f32 %v541_v16, %v540_v14 }
 0x110   :  { %v515_v19 = vadd.f32 %v514_v17, %v513_v15  ;;  %v543_v20 = vrot.slane %v542_v18, 2 }
 0x112   :  { %v516_v21 = vrot.slane %v515_v19, 1  ;;  %v544_v22 = vadd.f32 %v543_v20, %v542_v18 }
 0x114   :  { %v545_v23 = vrot.slane %v544_v22, 1  ;;  %v517_v24 = vadd.f32 %v516_v21, %v515_v19 }
 0x116   :  { %v546_v25 = vadd.f32 %v545_v23, %v544_v22 }
 0x118   :  { %v548_v26 = vsel %vm547_vm1, %v517_v24, %v546_v25 }
 0x119   :  { %550 = vst.msk [vmem:[%s969_s3] sm:$0x3] %vm549_vm2, %v548_v26 }

// kernel: discriminator_forward.11
= control target key start
LH: loop header
LB: loop body
LE: loop exit
PB: predicated region body
PF: predicated region fallthrough
CT: control target
= control target key end

     0   :  { %vm722_vm0 = vcmask 7168   ;;  %s1186_s1 = inlined_call_operand.vmem [shape: bf16[1024,1], index: 1, kind: input, shape index: {}]   ;;  %s1187_s0 = inlined_call_operand.vmem [shape: bf16[8,1024], index: 0, kind: input, shape index: {}]   ;;  %s1188_s2 = inlined_call_operand.vmem [shape: f32[8,1], index: 2, kind: output, shape index: {}]  }
   0x1   :  { %v888_v0 = vld [vmem:[%s1186_s1 + $0x78] sm:$0xff]   ;;  %v892_v4 = vld [vmem:[%s1186_s1 + $0x70] sm:$0xff]   ;;  %v896_v8 = vld [vmem:[%s1186_s1 + $0x68] sm:$0xff]  }
   0x2   :  { %v889_v1 = vld [vmem:[%s1186_s1 + $0xf8] sm:$0xff]   ;;  %800 = vmatprep.subr.bf16.mxu0 %v888_v0  ;;  %v893_v5 = vld [vmem:[%s1186_s1 + $0xf0] sm:$0xff]   ;;  %v897_v9 = vld [vmem:[%s1186_s1 + $0xe8] sm:$0xff]  }
   0x3   :  { %v890_v2 = vld [vmem:[%s1186_s1 + $0x38] sm:$0xff]   ;;  %822 = vmatprep.subr.bf16.mxu1 %v889_v1  ;;  %v894_v6 = vld [vmem:[%s1186_s1 + $0x30] sm:$0xff]   ;;  %v898_v10 = vld [vmem:[%s1186_s1 + $0x28] sm:$0xff]  }
   0x4   :  { %v891_v3 = vld [vmem:[%s1186_s1 + $0xb8] sm:$0xff]   ;;  %801 = vmatpush3.bf16.msra.mxu0 %v890_v2  ;;  %v895_v7 = vld [vmem:[%s1186_s1 + $0xb0] sm:$0xff]   ;;  %v899_v11 = vld [vmem:[%s1186_s1 + $0xa8] sm:$0xff]  }
   0x5   :  { %823 = vmatpush3.bf16.msra.mxu1 %v891_v3  ;;  %802 = vmatprep.subr.bf16.mxu0 %v892_v4  ;;  %v900_v12 = vld [vmem:[%s1186_s1 + $0x60] sm:$0xff]   ;;  %v904_v16 = vld [vmem:[%s1186_s1 + $0x58] sm:$0xff]   ;;  %v908_v20 = vld [vmem:[%s1186_s1 + $0x50] sm:$0xff]  }
   0x6   :  { %824 = vmatprep.subr.bf16.mxu1 %v893_v5  ;;  %v901_v13 = vld [vmem:[%s1186_s1 + $0xe0] sm:$0xff]   ;;  %v905_v17 = vld [vmem:[%s1186_s1 + $0xd8] sm:$0xff]   ;;  %v909_v21 = vld [vmem:[%s1186_s1 + $0xd0] sm:$0xff]  }
   0x7   :  { %v902_v14 = vld [vmem:[%s1186_s1 + $0x20] sm:$0xff]   ;;  %v906_v18 = vld [vmem:[%s1186_s1 + $0x18] sm:$0xff]   ;;  %v910_v22 = vld [vmem:[%s1186_s1 + $0x10] sm:$0xff]  }
   0x8   :  { %803 = vmatpush3.bf16.msra.mxu0 %v894_v6  ;;  %v903_v15 = vld [vmem:[%s1186_s1 + $0xa0] sm:$0xff]   ;;  %v907_v19 = vld [vmem:[%s1186_s1 + $0x98] sm:$0xff]   ;;  %v911_v23 = vld [vmem:[%s1186_s1 + $0x90] sm:$0xff]  }
   0x9   :  { %825 = vmatpush3.bf16.msra.mxu1 %v895_v7  ;;  %804 = vmatprep.subr.bf16.mxu0 %v896_v8  ;;  %v912_v24 = vld [vmem:[%s1186_s1 + $0x48] sm:$0xff]   ;;  %v916_v28 = vld [vmem:[%s1186_s1 + $0x40] sm:$0xff]   ;;  %v924_v38 = vld [vmem:[%s1186_s1 + $0x178] sm:$0xff]  }
   0xa   :  { %826 = vmatprep.subr.bf16.mxu1 %v897_v9  ;;  %v913_v25 = vld [vmem:[%s1186_s1 + $0xc8] sm:$0xff]   ;;  %v917_v29 = vld [vmem:[%s1186_s1 + $0xc0] sm:$0xff]   ;;  %v925_v39 = vld [vmem:[%s1186_s1 + $0x1f8] sm:$0xff]  }
   0xb   :  { %v914_v26 = vld [vmem:[%s1186_s1 + $0x8] sm:$0xff]   ;;  %v918_v30 = vld [vmem:[%s1186_s1] sm:$0xff]   ;;  %v926_v40 = vld [vmem:[%s1186_s1 + $0x138] sm:$0xff]  }
   0xc   :  { %805 = vmatpush3.bf16.msra.mxu0 %v898_v10  ;;  %v915_v27 = vld [vmem:[%s1186_s1 + $0x88] sm:$0xff]   ;;  %v919_v31 = vld [vmem:[%s1186_s1 + $0x80] sm:$0xff]   ;;  %v927_v41 = vld [vmem:[%s1186_s1 + $0x1b8] sm:$0xff]  }
   0xd   :  { %827 = vmatpush3.bf16.msra.mxu1 %v899_v11  ;;  %806 = vmatprep.subr.bf16.mxu0 %v900_v12  ;;  %v12_v32 = vld [vmem:[%s1187_s0] sm:$0xff]  ;;  %v13_v33 = vld [vmem:[%s1187_s0 + $0x8] sm:$0xff]  ;;  %v928_v42 = vld [vmem:[%s1186_s1 + $0x170] sm:$0xff]  }
   0xe   :  { %828 = vmatprep.subr.bf16.mxu1 %v901_v13  ;;  %v728_v34 = vcombine.low %v12_v32, %v12_v32  ;;  %v729_v35 = vcombine.high %v12_v32, %v12_v32  ;;  %v730_v36 = vcombine.low %v13_v33, %v13_v33  ;;  %v731_v37 = vcombine.high %v13_v33, %v13_v33  ;;  %v929_v43 = vld [vmem:[%s1186_s1 + $0x1f0] sm:$0xff]   ;;  %v932_v46 = vld [vmem:[%s1186_s1 + $0x168] sm:$0xff]   ;;  %v936_v50 = vld [vmem:[%s1186_s1 + $0x160] sm:$0xff]  }
   0xf   :  { %v930_v44 = vld [vmem:[%s1186_s1 + $0x130] sm:$0xff]   ;;  %v933_v47 = vld [vmem:[%s1186_s1 + $0x1e8] sm:$0xff]   ;;  %v937_v51 = vld [vmem:[%s1186_s1 + $0x1e0] sm:$0xff]  }
  0x10   :  { %807 = vmatpush3.bf16.msra.mxu0 %v902_v14  ;;  %588 = vmatprep.mubr.bf16.mxu0 %v729_v35  ;;  %v931_v45 = vld [vmem:[%s1186_s1 + $0x1b0] sm:$0xff]   ;;  %v934_v48 = vld [vmem:[%s1186_s1 + $0x128] sm:$0xff]   ;;  %v938_v52 = vld [vmem:[%s1186_s1 + $0x120] sm:$0xff]  }
  0x11   :  { %829 = vmatpush3.bf16.msra.mxu1 %v903_v15  ;;  %808 = vmatprep.subr.bf16.mxu0 %v904_v16  ;;  %v935_v49 = vld [vmem:[%s1186_s1 + $0x1a8] sm:$0xff]   ;;  %v939_v53 = vld [vmem:[%s1186_s1 + $0x1a0] sm:$0xff]   ;;  %v940_v54 = vld [vmem:[%s1186_s1 + $0x158] sm:$0xff]  }
  0x12   :  { %830 = vmatprep.subr.bf16.mxu1 %v905_v17  ;;  %628 = vmatprep.mubr.bf16.mxu1 %v731_v37  ;;  %v941_v55 = vld [vmem:[%s1186_s1 + $0x1d8] sm:$0xff]   ;;  %v944_v58 = vld [vmem:[%s1186_s1 + $0x150] sm:$0xff]   ;;  %v948_v62 = vld [vmem:[%s1186_s1 + $0x148] sm:$0xff]  }
  0x13   :  { %v942_v56 = vld [vmem:[%s1186_s1 + $0x118] sm:$0xff]   ;;  %v945_v59 = vld [vmem:[%s1186_s1 + $0x1d0] sm:$0xff]   ;;  %v949_v63 = vld [vmem:[%s1186_s1 + $0x1c8] sm:$0xff]  }
  0x14   :  { %809 = vmatpush3.bf16.msra.mxu0 %v906_v18  ;;  %v943_v57 = vld [vmem:[%s1186_s1 + $0x198] sm:$0xff]   ;;  %v946_v60 = vld [vmem:[%s1186_s1 + $0x110] sm:$0xff]   ;;  %v950_v0 = vld [vmem:[%s1186_s1 + $0x108] sm:$0xff]  }
  0x15   :  { %831 = vmatpush3.bf16.msra.mxu1 %v907_v19  ;;  %810 = vmatprep.subr.bf16.mxu0 %v908_v20  ;;  %v947_v61 = vld [vmem:[%s1186_s1 + $0x190] sm:$0xff]   ;;  %v951_v1 = vld [vmem:[%s1186_s1 + $0x188] sm:$0xff]   ;;  %v952_v2 = vld [vmem:[%s1186_s1 + $0x140] sm:$0xff]  }
  0x16   :  { %832 = vmatprep.subr.bf16.mxu1 %v909_v21  ;;  %v953_v3 = vld [vmem:[%s1186_s1 + $0x1c0] sm:$0xff]   ;;  %v14_v6 = vld [vmem:[%s1187_s0 + $0x10] sm:$0xff]  ;;  %v15_v9 = vld [vmem:[%s1187_s0 + $0x18] sm:$0xff] }
  0x17   :  { %v954_v4 = vld [vmem:[%s1186_s1 + $0x100] sm:$0xff]   ;;  %v732_v7 = vcombine.low %v14_v6, %v14_v6  ;;  %v733_v8 = vcombine.high %v14_v6, %v14_v6  ;;  %v734_v10 = vcombine.low %v15_v9, %v15_v9  ;;  %v735_v11 = vcombine.high %v15_v9, %v15_v9 }
  0x18   :  { %811 = vmatpush3.bf16.msra.mxu0 %v910_v22  ;;  %v955_v5 = vld [vmem:[%s1186_s1 + $0x180] sm:$0xff]  }
  0x19   :  { %833 = vmatpush3.bf16.msra.mxu1 %v911_v23  ;;  %812 = vmatprep.subr.bf16.mxu0 %v912_v24 }
  0x1a   :  { %834 = vmatprep.subr.bf16.mxu1 %v913_v25 }
  0x1c   :  { %813 = vmatpush3.bf16.msra.mxu0 %v914_v26 }
  0x1d   :  { %835 = vmatpush3.bf16.msra.mxu1 %v915_v27  ;;  %814 = vmatprep.subr.bf16.mxu0 %v916_v28 }
  0x1e   :  { %836 = vmatprep.subr.bf16.mxu1 %v917_v29 }
  0x20   :  { %815 = vmatpush3.bf16.msra.mxu0 %v918_v30 }
  0x21   :  { %837 = vmatpush3.bf16.msra.mxu1 %v919_v31  ;;  %844 = vmatprep.subr.bf16.mxu0 %v924_v38 }
  0x22   :  { %866 = vmatprep.subr.bf16.mxu1 %v925_v39 }
  0x23   :  { %589 = vmatmul.mubr.bf16.vlgmr.msra.gmra.mxu0 %v728_v34 }
  0x24   :  { %629 = vmatmul.mubr.bf16.vlgmr.msra.gmra.mxu1 %v730_v36  ;;  %845 = vmatpush3.bf16.msra.mxu0 %v926_v40 }
  0x25   :  { %867 = vmatpush3.bf16.msra.mxu1 %v927_v41  ;;  %846 = vmatprep.subr.bf16.mxu0 %v928_v42 }
  0x26   :  { %868 = vmatprep.subr.bf16.mxu1 %v929_v43  ;;  %668 = vmatprep.mubr.bf16.mxu0 %v733_v8 }
  0x27   :  { %708 = vmatprep.mubr.bf16.mxu1 %v735_v11 }
  0x28   :  { %847 = vmatpush3.bf16.msra.mxu0 %v930_v44 }
  0x29   :  { %869 = vmatpush3.bf16.msra.mxu1 %v931_v45  ;;  %848 = vmatprep.subr.bf16.mxu0 %v932_v46 }
  0x2a   :  { %870 = vmatprep.subr.bf16.mxu1 %v933_v47 }
  0x2c   :  { %849 = vmatpush3.bf16.msra.mxu0 %v934_v48 }
  0x2d   :  { %871 = vmatpush3.bf16.msra.mxu1 %v935_v49  ;;  %850 = vmatprep.subr.bf16.mxu0 %v936_v50 }
  0x2e   :  { %872 = vmatprep.subr.bf16.mxu1 %v937_v51 }
  0x30   :  { %851 = vmatpush3.bf16.msra.mxu0 %v938_v52 }
  0x31   :  { %873 = vmatpush3.bf16.msra.mxu1 %v939_v53  ;;  %852 = vmatprep.subr.bf16.mxu0 %v940_v54 }
  0x32   :  { %874 = vmatprep.subr.bf16.mxu1 %v941_v55 }
  0x34   :  { %853 = vmatpush3.bf16.msra.mxu0 %v942_v56 }
  0x35   :  { %875 = vmatpush3.bf16.msra.mxu1 %v943_v57  ;;  %854 = vmatprep.subr.bf16.mxu0 %v944_v58 }
  0x36   :  { %876 = vmatprep.subr.bf16.mxu1 %v945_v59 }
  0x38   :  { %855 = vmatpush3.bf16.msra.mxu0 %v946_v60 }
  0x39   :  { %877 = vmatpush3.bf16.msra.mxu1 %v947_v61  ;;  %856 = vmatprep.subr.bf16.mxu0 %v948_v62 }
  0x3a   :  { %878 = vmatprep.subr.bf16.mxu1 %v949_v63 }
  0x3c   :  { %857 = vmatpush3.bf16.msra.mxu0 %v950_v0 }
  0x3d   :  { %879 = vmatpush3.bf16.msra.mxu1 %v951_v1  ;;  %858 = vmatprep.subr.bf16.mxu0 %v952_v2 }
  0x3e   :  { %880 = vmatprep.subr.bf16.mxu1 %v953_v3 }
  0x40   :  { %859 = vmatpush3.bf16.msra.mxu0 %v954_v4 }
  0x41   :  { %881 = vmatpush3.bf16.msra.mxu1 %v955_v5 }
  0x43   :  { %669 = vmatmul.mubr.bf16.vlgmr.msra.gmra.mxu0 %v732_v7 }
  0x44   :  { %709 = vmatmul.mubr.bf16.vlgmr.msra.gmra.mxu1 %v734_v10 }
  0xe3   :  { %v816_v12 = vpop.f32.mrf.mxu0 }
  0xe4   :  { %v838_v13 = vpop.f32.mrf.mxu1 }
  0xe5   :  { %v817_v14 = vpop.f32.mrf.mxu0 }
  0xe6   :  { %v839_v15 = vpop.f32.mrf.mxu1  ;;  %v818_v20 = vadd.f32 %v817_v14, %v816_v12 }
  0xe7   :  { %v819_v16 = vpop.f32.mrf.mxu0  ;;  %v840_v21 = vadd.f32 %v839_v15, %v838_v13 }
  0xe8   :  { %v841_v17 = vpop.f32.mrf.mxu1 }
  0xe9   :  { %v820_v18 = vpop.f32.mrf.mxu0  ;;  %v631_v26 = vadd.f32 %v840_v21, %v818_v20 }
  0xea   :  { %v842_v19 = vpop.f32.mrf.mxu1 }
 0x103   :  { %v860_v22 = vpop.f32.mrf.mxu0 }
 0x104   :  { %v882_v23 = vpop.f32.mrf.mxu1 }
 0x105   :  { %v861_v24 = vpop.f32.mrf.mxu0 }
 0x106   :  { %v883_v25 = vpop.f32.mrf.mxu1  ;;  %v862_v27 = vadd.f32 %v861_v24, %v860_v22 }
 0x107   :  { %v863_v28 = vpop.f32.mrf.mxu0  ;;  %v884_v31 = vadd.f32 %v883_v25, %v882_v23 }
 0x108   :  { %v885_v29 = vpop.f32.mrf.mxu1  ;;  %v671_v30 = vadd.f32 %v862_v27, %v631_v26 }
 0x109   :  { %v864_v32 = vpop.f32.mrf.mxu0 }
 0x10a   :  { %v886_v33 = vpop.f32.mrf.mxu1  ;;  %v711_v34 = vadd.f32 %v884_v31, %v671_v30 }
 0x10c   :  { %v716_v35 = vsub.f32 0.0, %v711_v34 }
 0x10e   :  { %v717_v36 = vmul.f32 1.442695, %v716_v35 }
 0x110   :  { %960 = vpow2.f32 %v717_v36 }
 0x11d   :  { %v961_v37 = vpop.eup %960 }
 0x11e   :  { %v719_v38 = vadd.f32 1.0, %v961_v37 }
 0x120   :  { %962 = vrcp.f32 %v719_v38 }
 0x12d   :  { %v963_v39 = vpop.eup %962 }
 0x12e   :  { %723 = vst.msk [vmem:[%s1188_s2] sm:$0xff] %vm722_vm0, %v963_v39 }

</bundles_post_ra>
